<compile_context>
chip_gen: v5e
topology: v5e:2x2
jax: 0.10.0
libtpu: 0.0.40
codegen_flags: <defaults>
</compile_context>

<pallas_src>
import functools

import jax
import jax.numpy as jnp
from jax import lax
from jax.experimental import pallas as pl
from jax.experimental.pallas import tpu as pltpu


def _softplus(x):
    # Matches torch.nn.Softplus(beta=1, threshold=20).
    return jnp.where(x > 20.0, x, jnp.log1p(jnp.exp(jnp.minimum(x, 20.0))))


def _round_up(n, m):
    return ((n + m - 1) // m) * m


def _low_rank_s2_kernel(dim, rank,
                        x_ref,
                        w1_ref, b1_ref,          # fused first layer: (dim, 512), (1, 512)
                        w2m_ref, b2m_ref,        # main layer 2:      (256, 256), (1, 256)
                        w3m_ref, b3m_ref,        # main layer 3 (r-major cols): (256, dim*rank)
                        w2d_ref, b2d_ref,        # diag layer 2:      (256, 256), (1, 256)
                        w3d_ref, b3d_ref,        # diag layer 3:      (256, dim), (1, dim)
                        out_ref):                # (TB, dim*dim) lane-dense
    tb = x_ref.shape[0]
    x = x_ref[...]                               # (TB, dim) f32
    xb = x.astype(jnp.bfloat16)

    # ---- fused first layer for both branches: (TB, dim) @ (dim, 512) ----
    h1 = jnp.dot(xb, w1_ref[...], preferred_element_type=jnp.float32) + b1_ref[...]
    h1 = _softplus(h1)                           # f32, (TB, 512)
    hm = h1[:, :256]                             # main branch hidden
    hd = h1[:, 256:]                             # diag branch hidden

    # ---- main branch: 256 -> 256 -> dim*rank ----
    hm = _softplus(jnp.dot(hm.astype(jnp.bfloat16), w2m_ref[...],
                           preferred_element_type=jnp.float32) + b2m_ref[...])
    cf = (jnp.dot(hm.astype(jnp.bfloat16), w3m_ref[...],
                  preferred_element_type=jnp.float32)
          + b3m_ref[...])                        # (TB, rank*dim), r-major, f32

    # ---- diag branch: 256 -> 256 -> dim ----
    hd = _softplus(jnp.dot(hd.astype(jnp.bfloat16), w2d_ref[...],
                           preferred_element_type=jnp.float32) + b2d_ref[...])
    cd = (jnp.dot(hd.astype(jnp.bfloat16), w3d_ref[...],
                  preferred_element_type=jnp.float32)
          + b3d_ref[...])                        # (TB, dim), f32

    # ---- Gram: unrolled rank-wise VPU outer products (keeps the MXU free) ----
    acc = None
    for r in range(rank):
        a = cf[:, r * dim:(r + 1) * dim]         # (TB, dim) contiguous lane slice
        p = a[:, :, None] * a[:, None, :]        # (TB, dim, dim)
        acc = p if acc is None else acc + p

    # ---- diagonal add via select mask (no eye() multiply) ----
    row = lax.broadcasted_iota(jnp.int32, (1, dim, dim), 1)
    col = lax.broadcasted_iota(jnp.int32, (1, dim, dim), 2)
    acc = acc + jnp.where(row == col, cd[:, :, None], jnp.float32(0.0))

    # ---- lane-dense flat store: (TB, dim*dim) ----
    out_ref[...] = acc.reshape(tb, dim * dim)


def init_params(dim, rank, key):
    """Deterministic synthetic parameters (weights stored as (in, out))."""
    ks = jax.random.split(key, 12)

    def w(k, i, o):
        return jax.random.normal(k, (i, o), jnp.float32) * 0.05

    def b(k, o):
        return jax.random.normal(k, (1, o), jnp.float32) * 0.05

    return dict(
        # main: dim -> 256 -> 256 -> dim*rank
        w1m=w(ks[0], dim, 256),        b1m=b(ks[1], 256),
        w2m=w(ks[2], 256, 256),        b2m=b(ks[3], 256),
        w3m=w(ks[4], dim, 256).T if False else w(ks[4], 256, dim * rank),
        b3m=b(ks[5], dim * rank),
        # diag: dim -> 256 -> 256 -> dim
        w1d=w(ks[6], dim, 256),        b1d=b(ks[7], 256),
        w2d=w(ks[8], 256, 256),        b2d=b(ks[9], 256),
        w3d=w(ks[10], 256, dim),       b3d=b(ks[11], dim),
    )


def low_rank_s2_forward(X, params, dim, rank, *, block_b=256):
    """Wrapper: flatten input, tile the batch over a grid, reshape output."""
    B = X.shape[0]
    x2d = X.reshape(B, -1).astype(jnp.float32)
    assert x2d.shape[1] == dim

    # --- weight preprocessing (done once, outside the kernel) ---
    # Fuse the two first layers: one (dim, 512) matmul instead of two K=32 matmuls.
    w1 = jnp.concatenate([params["w1m"], params["w1d"]], axis=1).astype(jnp.bfloat16)
    b1 = jnp.concatenate([params["b1m"], params["b1d"]], axis=1)
    # Reorder w3m columns to r-major so cf_r is a contiguous lane slice in-kernel.
    perm = jnp.arange(dim * rank).reshape(dim, rank).T.reshape(-1)
    w3m = params["w3m"][:, perm].astype(jnp.bfloat16)
    b3m = params["b3m"][:, perm]
    w2m = params["w2m"].astype(jnp.bfloat16)
    w2d = params["w2d"].astype(jnp.bfloat16)
    w3d = params["w3d"].astype(jnp.bfloat16)
    b2m, b2d, b3d = params["b2m"], params["b2d"], params["b3d"]

    # --- batch tiling: pad B to a multiple of the block ---
    tb = min(block_b, _round_up(B, 8))           # (8,128) rule: sublane dim multiple of 8
    b_pad = _round_up(B, tb)
    if b_pad != B:
        x2d = jnp.pad(x2d, ((0, b_pad - B), (0, 0)))
    grid = (b_pad // tb,)

    def resident(arr):
        # Constant block index -> fetched once, stays VMEM-resident across grid steps.
        return pl.BlockSpec(arr.shape, lambda i: (0, 0))

    args = (x2d, w1, b1, w2m, b2m, w3m, b3m, w2d, b2d, w3d, b3d)
    in_specs = ([pl.BlockSpec((tb, dim), lambda i: (i, 0))]
                + [resident(a) for a in args[1:]])

    out_flat = pl.pallas_call(
        functools.partial(_low_rank_s2_kernel, dim, rank),
        out_shape=jax.ShapeDtypeStruct((b_pad, dim * dim), jnp.float32),
        grid=grid,
        in_specs=in_specs,
        out_specs=pl.BlockSpec((tb, dim * dim), lambda i: (i, 0)),
        compiler_params=pltpu.CompilerParams(
            dimension_semantics=("parallel",),     # shard batch axis across TCs (v7x)
            vmem_limit_bytes=48 * 1024 * 1024,     # v5e default is 16 MiB; v7x phys 64 MiB
        ),
    )(*args)

    return out_flat[:B].reshape(B, dim, dim)


def low_rank_s2_reference(X, params, dim, rank):
    """Pure-JAX f32 reference matching the PyTorch forward exactly."""
    B = X.shape[0]
    x = X.reshape(B, -1).astype(jnp.float32)
    h = _softplus(x @ params["w1m"] + params["b1m"])
    h = _softplus(h @ params["w2m"] + params["b2m"])
    cf = (h @ params["w3m"] + params["b3m"]).reshape(B, dim, rank)
    d = _softplus(x @ params["w1d"] + params["b1d"])
    d = _softplus(d @ params["w2d"] + params["b2d"])
    cd = d @ params["w3d"] + params["b3d"]
    cov = jnp.einsum('bir,bjr->bij', cf, cf)
    return cov + jnp.eye(dim, dtype=jnp.float32)[None] * cd[:, :, None]


if __name__ == "__main__":
    B, dim, rank = 2, 32, 4
    key = jax.random.PRNGKey(0)
    k_x, k_p = jax.random.split(key)

    # Extra trailing dims are flattened by the forward pass (4*8 == dim).
    X = jax.random.normal(k_x, (B, 4, 8), jnp.float32)
    params = init_params(dim, rank, k_p)

    out = low_rank_s2_forward(X, params, dim, rank)
    out = jax.block_until_ready(out)

    ref = low_rank_s2_reference(X, params, dim, rank)
    assert out.shape == (B, dim, dim)
    # Tolerance accounts for bf16 MXU operands (accumulation is f32).
    assert jnp.allclose(out, ref, atol=1e-1, rtol=5e-2), "mismatch vs reference"

    print("KERNEL_OK")
</pallas_src>

<mosaic_0001>
module attributes {stable_mosaic.version = 11 : i64} {
  func.func @_low_rank_s2_kernel(%arg0: i32, %arg1: memref<8x32xf32, #tpu.memory_space<vmem>>, %arg2: memref<32x512xbf16, #tpu.memory_space<vmem>>, %arg3: memref<1x512xf32, #tpu.memory_space<vmem>>, %arg4: memref<256x256xbf16, #tpu.memory_space<vmem>>, %arg5: memref<1x256xf32, #tpu.memory_space<vmem>>, %arg6: memref<256x128xbf16, #tpu.memory_space<vmem>>, %arg7: memref<1x128xf32, #tpu.memory_space<vmem>>, %arg8: memref<256x256xbf16, #tpu.memory_space<vmem>>, %arg9: memref<1x256xf32, #tpu.memory_space<vmem>>, %arg10: memref<256x32xbf16, #tpu.memory_space<vmem>>, %arg11: memref<1x32xf32, #tpu.memory_space<vmem>>, %arg12: memref<8x1024xf32, #tpu.memory_space<vmem>>) attributes {dimension_semantics = [#tpu.dimension_semantics<parallel>], iteration_bounds = array<i64: 1>, scalar_prefetch = 0 : i64, scratch_operands = 0 : i64, tpu.core_type = #tpu.core_type<tc>, window_params = [{transform_indices = @transform_0, window_bounds = array<i64: 8, 32>}, {pipeline_mode = #tpu.pipeline_mode<synchronous>, transform_indices = @transform_1, window_bounds = array<i64: 32, 512>}, {pipeline_mode = #tpu.pipeline_mode<synchronous>, transform_indices = @transform_2, window_bounds = array<i64: 1, 512>}, {pipeline_mode = #tpu.pipeline_mode<synchronous>, transform_indices = @transform_3, window_bounds = array<i64: 256, 256>}, {pipeline_mode = #tpu.pipeline_mode<synchronous>, transform_indices = @transform_4, window_bounds = array<i64: 1, 256>}, {pipeline_mode = #tpu.pipeline_mode<synchronous>, transform_indices = @transform_5, window_bounds = array<i64: 256, 128>}, {pipeline_mode = #tpu.pipeline_mode<synchronous>, transform_indices = @transform_6, window_bounds = array<i64: 1, 128>}, {pipeline_mode = #tpu.pipeline_mode<synchronous>, transform_indices = @transform_7, window_bounds = array<i64: 256, 256>}, {pipeline_mode = #tpu.pipeline_mode<synchronous>, transform_indices = @transform_8, window_bounds = array<i64: 1, 256>}, {pipeline_mode = #tpu.pipeline_mode<synchronous>, transform_indices = @transform_9, window_bounds = array<i64: 256, 32>}, {pipeline_mode = #tpu.pipeline_mode<synchronous>, transform_indices = @transform_10, window_bounds = array<i64: 1, 32>}, {transform_indices = @transform_11, window_bounds = array<i64: 8, 1024>}]} {
    %c0 = arith.constant 0 : index
    %c0_0 = arith.constant 0 : index
    %0 = vector.load %arg1[%c0, %c0_0] : memref<8x32xf32, #tpu.memory_space<vmem>>, vector<8x32xf32>
    %1 = arith.truncf %0 : vector<8x32xf32> to vector<8x32xbf16>
    %c0_1 = arith.constant 0 : index
    %c0_2 = arith.constant 0 : index
    %2 = vector.load %arg2[%c0_1, %c0_2] : memref<32x512xbf16, #tpu.memory_space<vmem>>, vector<32x512xbf16>
    %cst = arith.constant dense<0.000000e+00> : vector<8x512xf32>
    %3 = tpu.matmul %1, %2, %cst {dimension_numbers = #tpu.dot_dimension_numbers<[1], [0], [0], [1], [0, 0, 1, 1], [], []>} : vector<8x32xbf16>, vector<32x512xbf16>, vector<8x512xf32> -> vector<8x512xf32>
    %c0_3 = arith.constant 0 : index
    %c0_4 = arith.constant 0 : index
    %4 = vector.load %arg3[%c0_3, %c0_4] : memref<1x512xf32, #tpu.memory_space<vmem>>, vector<1x512xf32>
    %5 = vector.broadcast %4 : vector<1x512xf32> to vector<8x512xf32>
    %6 = arith.addf %3, %5 : vector<8x512xf32>
    %cst_5 = arith.constant 2.000000e+01 : f32
    %7 = vector.broadcast %cst_5 : f32 to vector<8x512xf32>
    %8 = arith.cmpf ogt, %6, %7 : vector<8x512xf32>
    %cst_6 = arith.constant 2.000000e+01 : f32
    %9 = vector.broadcast %cst_6 : f32 to vector<8x512xf32>
    %10 = arith.minimumf %6, %9 : vector<8x512xf32>
    %11 = math.exp %10 : vector<8x512xf32>
    %12 = math.log1p %11 : vector<8x512xf32>
    %13 = arith.select %8, %6, %12 : vector<8x512xi1>, vector<8x512xf32>
    %14 = vector.extract_strided_slice %13 {offsets = [0, 0], sizes = [8, 256], strides = [1, 1]} : vector<8x512xf32> to vector<8x256xf32>
    %15 = vector.extract_strided_slice %13 {offsets = [0, 256], sizes = [8, 256], strides = [1, 1]} : vector<8x512xf32> to vector<8x256xf32>
    %16 = arith.truncf %14 : vector<8x256xf32> to vector<8x256xbf16>
    %c0_7 = arith.constant 0 : index
    %c0_8 = arith.constant 0 : index
    %17 = vector.load %arg4[%c0_7, %c0_8] : memref<256x256xbf16, #tpu.memory_space<vmem>>, vector<256x256xbf16>
    %cst_9 = arith.constant dense<0.000000e+00> : vector<8x256xf32>
    %18 = tpu.matmul %16, %17, %cst_9 {dimension_numbers = #tpu.dot_dimension_numbers<[1], [0], [0], [1], [0, 0, 1, 1], [], []>} : vector<8x256xbf16>, vector<256x256xbf16>, vector<8x256xf32> -> vector<8x256xf32>
    %c0_10 = arith.constant 0 : index
    %c0_11 = arith.constant 0 : index
    %19 = vector.load %arg5[%c0_10, %c0_11] : memref<1x256xf32, #tpu.memory_space<vmem>>, vector<1x256xf32>
    %20 = vector.broadcast %19 : vector<1x256xf32> to vector<8x256xf32>
    %21 = arith.addf %18, %20 : vector<8x256xf32>
    %cst_12 = arith.constant 2.000000e+01 : f32
    %22 = vector.broadcast %cst_12 : f32 to vector<8x256xf32>
    %23 = arith.cmpf ogt, %21, %22 : vector<8x256xf32>
    %cst_13 = arith.constant 2.000000e+01 : f32
    %24 = vector.broadcast %cst_13 : f32 to vector<8x256xf32>
    %25 = arith.minimumf %21, %24 : vector<8x256xf32>
    %26 = math.exp %25 : vector<8x256xf32>
    %27 = math.log1p %26 : vector<8x256xf32>
    %28 = arith.select %23, %21, %27 : vector<8x256xi1>, vector<8x256xf32>
    %29 = arith.truncf %28 : vector<8x256xf32> to vector<8x256xbf16>
    %c0_14 = arith.constant 0 : index
    %c0_15 = arith.constant 0 : index
    %30 = vector.load %arg6[%c0_14, %c0_15] : memref<256x128xbf16, #tpu.memory_space<vmem>>, vector<256x128xbf16>
    %cst_16 = arith.constant dense<0.000000e+00> : vector<8x128xf32>
    %31 = tpu.matmul %29, %30, %cst_16 {dimension_numbers = #tpu.dot_dimension_numbers<[1], [0], [0], [1], [0, 0, 1, 1], [], []>} : vector<8x256xbf16>, vector<256x128xbf16>, vector<8x128xf32> -> vector<8x128xf32>
    %c0_17 = arith.constant 0 : index
    %c0_18 = arith.constant 0 : index
    %32 = vector.load %arg7[%c0_17, %c0_18] : memref<1x128xf32, #tpu.memory_space<vmem>>, vector<1x128xf32>
    %33 = vector.broadcast %32 : vector<1x128xf32> to vector<8x128xf32>
    %34 = arith.addf %31, %33 : vector<8x128xf32>
    %35 = arith.truncf %15 : vector<8x256xf32> to vector<8x256xbf16>
    %c0_19 = arith.constant 0 : index
    %c0_20 = arith.constant 0 : index
    %36 = vector.load %arg8[%c0_19, %c0_20] : memref<256x256xbf16, #tpu.memory_space<vmem>>, vector<256x256xbf16>
    %cst_21 = arith.constant dense<0.000000e+00> : vector<8x256xf32>
    %37 = tpu.matmul %35, %36, %cst_21 {dimension_numbers = #tpu.dot_dimension_numbers<[1], [0], [0], [1], [0, 0, 1, 1], [], []>} : vector<8x256xbf16>, vector<256x256xbf16>, vector<8x256xf32> -> vector<8x256xf32>
    %c0_22 = arith.constant 0 : index
    %c0_23 = arith.constant 0 : index
    %38 = vector.load %arg9[%c0_22, %c0_23] : memref<1x256xf32, #tpu.memory_space<vmem>>, vector<1x256xf32>
    %39 = vector.broadcast %38 : vector<1x256xf32> to vector<8x256xf32>
    %40 = arith.addf %37, %39 : vector<8x256xf32>
    %cst_24 = arith.constant 2.000000e+01 : f32
    %41 = vector.broadcast %cst_24 : f32 to vector<8x256xf32>
    %42 = arith.cmpf ogt, %40, %41 : vector<8x256xf32>
    %cst_25 = arith.constant 2.000000e+01 : f32
    %43 = vector.broadcast %cst_25 : f32 to vector<8x256xf32>
    %44 = arith.minimumf %40, %43 : vector<8x256xf32>
    %45 = math.exp %44 : vector<8x256xf32>
    %46 = math.log1p %45 : vector<8x256xf32>
    %47 = arith.select %42, %40, %46 : vector<8x256xi1>, vector<8x256xf32>
    %48 = arith.truncf %47 : vector<8x256xf32> to vector<8x256xbf16>
    %c0_26 = arith.constant 0 : index
    %c0_27 = arith.constant 0 : index
    %49 = vector.load %arg10[%c0_26, %c0_27] : memref<256x32xbf16, #tpu.memory_space<vmem>>, vector<256x32xbf16>
    %cst_28 = arith.constant dense<0.000000e+00> : vector<8x32xf32>
    %50 = tpu.matmul %48, %49, %cst_28 {dimension_numbers = #tpu.dot_dimension_numbers<[1], [0], [0], [1], [0, 0, 1, 1], [], []>} : vector<8x256xbf16>, vector<256x32xbf16>, vector<8x32xf32> -> vector<8x32xf32>
    %c0_29 = arith.constant 0 : index
    %c0_30 = arith.constant 0 : index
    %51 = vector.load %arg11[%c0_29, %c0_30] : memref<1x32xf32, #tpu.memory_space<vmem>>, vector<1x32xf32>
    %52 = vector.broadcast %51 : vector<1x32xf32> to vector<8x32xf32>
    %53 = arith.addf %50, %52 : vector<8x32xf32>
    %54 = vector.extract_strided_slice %34 {offsets = [0, 0], sizes = [8, 32], strides = [1, 1]} : vector<8x128xf32> to vector<8x32xf32>
    %55 = vector.shape_cast %54 : vector<8x32xf32> to vector<8x32x1xf32>
    %56 = vector.shape_cast %54 : vector<8x32xf32> to vector<8x1x32xf32>
    %57 = vector.broadcast %55 : vector<8x32x1xf32> to vector<8x32x32xf32>
    %58 = vector.broadcast %56 : vector<8x1x32xf32> to vector<8x32x32xf32>
    %59 = arith.mulf %57, %58 : vector<8x32x32xf32>
    %60 = vector.extract_strided_slice %34 {offsets = [0, 32], sizes = [8, 32], strides = [1, 1]} : vector<8x128xf32> to vector<8x32xf32>
    %61 = vector.shape_cast %60 : vector<8x32xf32> to vector<8x32x1xf32>
    %62 = vector.shape_cast %60 : vector<8x32xf32> to vector<8x1x32xf32>
    %63 = vector.broadcast %61 : vector<8x32x1xf32> to vector<8x32x32xf32>
    %64 = vector.broadcast %62 : vector<8x1x32xf32> to vector<8x32x32xf32>
    %65 = arith.mulf %63, %64 : vector<8x32x32xf32>
    %66 = arith.addf %59, %65 : vector<8x32x32xf32>
    %67 = vector.extract_strided_slice %34 {offsets = [0, 64], sizes = [8, 32], strides = [1, 1]} : vector<8x128xf32> to vector<8x32xf32>
    %68 = vector.shape_cast %67 : vector<8x32xf32> to vector<8x32x1xf32>
    %69 = vector.shape_cast %67 : vector<8x32xf32> to vector<8x1x32xf32>
    %70 = vector.broadcast %68 : vector<8x32x1xf32> to vector<8x32x32xf32>
    %71 = vector.broadcast %69 : vector<8x1x32xf32> to vector<8x32x32xf32>
    %72 = arith.mulf %70, %71 : vector<8x32x32xf32>
    %73 = arith.addf %66, %72 : vector<8x32x32xf32>
    %74 = vector.extract_strided_slice %34 {offsets = [0, 96], sizes = [8, 32], strides = [1, 1]} : vector<8x128xf32> to vector<8x32xf32>
    %75 = vector.shape_cast %74 : vector<8x32xf32> to vector<8x32x1xf32>
    %76 = vector.shape_cast %74 : vector<8x32xf32> to vector<8x1x32xf32>
    %77 = vector.broadcast %75 : vector<8x32x1xf32> to vector<8x32x32xf32>
    %78 = vector.broadcast %76 : vector<8x1x32xf32> to vector<8x32x32xf32>
    %79 = arith.mulf %77, %78 : vector<8x32x32xf32>
    %80 = arith.addf %73, %79 : vector<8x32x32xf32>
    %81 = tpu.iota {dimensions = array<i32: 1>} : vector<1x32x32xi32>
    %82 = tpu.iota {dimensions = array<i32: 2>} : vector<1x32x32xi32>
    %83 = arith.cmpi eq, %81, %82 : vector<1x32x32xi32>
    %84 = vector.shape_cast %53 : vector<8x32xf32> to vector<8x32x1xf32>
    %cst_31 = arith.constant 0.000000e+00 : f32
    %85 = vector.shape_cast %83 : vector<1x32x32xi1> to vector<1x32x32xi1>
    %86 = vector.broadcast %85 : vector<1x32x32xi1> to vector<8x32x32xi1>
    %87 = vector.shape_cast %84 : vector<8x32x1xf32> to vector<8x32x1xf32>
    %88 = vector.broadcast %87 : vector<8x32x1xf32> to vector<8x32x32xf32>
    %89 = vector.broadcast %cst_31 : f32 to vector<8x32x32xf32>
    %90 = arith.select %86, %88, %89 : vector<8x32x32xi1>, vector<8x32x32xf32>
    %91 = arith.addf %80, %90 : vector<8x32x32xf32>
    %92 = vector.shape_cast %91 : vector<8x32x32xf32> to vector<8x1024xf32>
    %c0_32 = arith.constant 0 : index
    %c0_33 = arith.constant 0 : index
    %93 = vector.load %arg12[%c0_32, %c0_33] : memref<8x1024xf32, #tpu.memory_space<vmem>>, vector<8x1024xf32>
    tpu.vector_store %arg12[%c0_32, %c0_33], %92 {strides = array<i32>} : memref<8x1024xf32, #tpu.memory_space<vmem>>, vector<8x1024xf32>,
    return
  }
  func.func @transform_0(%arg0: i32) -> (i32, i32) {
    %c0_i32 = arith.constant 0 : i32
    %c0_i32_0 = arith.constant 0 : i32
    return %arg0, %c0_i32 : i32, i32
  }
  func.func @transform_1(%arg0: i32) -> (i32, i32) {
    %c0_i32 = arith.constant 0 : i32
    %c0_i32_0 = arith.constant 0 : i32
    %c0_i32_1 = arith.constant 0 : i32
    return %c0_i32, %c0_i32_0 : i32, i32
  }
  func.func @transform_2(%arg0: i32) -> (i32, i32) {
    %c0_i32 = arith.constant 0 : i32
    %c0_i32_0 = arith.constant 0 : i32
    %c0_i32_1 = arith.constant 0 : i32
    return %c0_i32, %c0_i32_0 : i32, i32
  }
  func.func @transform_3(%arg0: i32) -> (i32, i32) {
    %c0_i32 = arith.constant 0 : i32
    %c0_i32_0 = arith.constant 0 : i32
    %c0_i32_1 = arith.constant 0 : i32
    return %c0_i32, %c0_i32_0 : i32, i32
  }
  func.func @transform_4(%arg0: i32) -> (i32, i32) {
    %c0_i32 = arith.constant 0 : i32
    %c0_i32_0 = arith.constant 0 : i32
    %c0_i32_1 = arith.constant 0 : i32
    return %c0_i32, %c0_i32_0 : i32, i32
  }
  func.func @transform_5(%arg0: i32) -> (i32, i32) {
    %c0_i32 = arith.constant 0 : i32
    %c0_i32_0 = arith.constant 0 : i32
    %c0_i32_1 = arith.constant 0 : i32
    return %c0_i32, %c0_i32_0 : i32, i32
  }
  func.func @transform_6(%arg0: i32) -> (i32, i32) {
    %c0_i32 = arith.constant 0 : i32
    %c0_i32_0 = arith.constant 0 : i32
    %c0_i32_1 = arith.constant 0 : i32
    return %c0_i32, %c0_i32_0 : i32, i32
  }
  func.func @transform_7(%arg0: i32) -> (i32, i32) {
    %c0_i32 = arith.constant 0 : i32
    %c0_i32_0 = arith.constant 0 : i32
    %c0_i32_1 = arith.constant 0 : i32
    return %c0_i32, %c0_i32_0 : i32, i32
  }
  func.func @transform_8(%arg0: i32) -> (i32, i32) {
    %c0_i32 = arith.constant 0 : i32
    %c0_i32_0 = arith.constant 0 : i32
    %c0_i32_1 = arith.constant 0 : i32
    return %c0_i32, %c0_i32_0 : i32, i32
  }
  func.func @transform_9(%arg0: i32) -> (i32, i32) {
    %c0_i32 = arith.constant 0 : i32
    %c0_i32_0 = arith.constant 0 : i32
    %c0_i32_1 = arith.constant 0 : i32
    return %c0_i32, %c0_i32_0 : i32, i32
  }
  func.func @transform_10(%arg0: i32) -> (i32, i32) {
    %c0_i32 = arith.constant 0 : i32
    %c0_i32_0 = arith.constant 0 : i32
    %c0_i32_1 = arith.constant 0 : i32
    return %c0_i32, %c0_i32_0 : i32, i32
  }
  func.func @transform_11(%arg0: i32) -> (i32, i32) {
    %c0_i32 = arith.constant 0 : i32
    %c0_i32_0 = arith.constant 0 : i32
    return %arg0, %c0_i32 : i32, i32
  }
}

</mosaic_0001>

<bundles_post_ra>
// kernel: tpu_custom_call.1
= control target key start
LH: loop header
LB: loop body
LE: loop exit
PB: predicated region body
PF: predicated region fallthrough
CT: control target
= control target key end

     0   :  { %16 = vsyncpa [#allocation3], 0  ;;  %s6246_s0 = inlined_call_operand.vmem [shape: f32[8,32], index: 0, kind: input, shape index: {}]   ;;  %s6247_s1 = inlined_call_operand.hbm [shape: bf16[32,512], index: 1, kind: input, shape index: {}]   ;;  %s6248_s2 = inlined_call_operand.vmem [shape: f32[1,512], index: 2, kind: input, shape index: {}]   ;;  %s6249_s3 = inlined_call_operand.hbm [shape: bf16[256,256], index: 3, kind: input, shape index: {}]   ;;  %s6250_s4 = inlined_call_operand.vmem [shape: f32[1,256], index: 4, kind: input, shape index: {}]   ;;  %s6251_s5 = inlined_call_operand.vmem [shape: bf16[256,128], index: 5, kind: input, shape index: {}]   ;;  %s6252_s6 = inlined_call_operand.vmem [shape: f32[1,128], index: 6, kind: input, shape index: {}]   ;;  %s6253_s7 = inlined_call_operand.hbm [shape: bf16[256,256], index: 7, kind: input, shape index: {}]   ;;  %s6254_s8 = inlined_call_operand.vmem [shape: f32[1,256], index: 8, kind: input, shape index: {}]   ;;  %s6255_s9 = inlined_call_operand.vmem [shape: bf16[256,32], index: 9, kind: input, shape index: {}]   ;;  %s6256_s10 = inlined_call_operand.vmem [shape: f32[1,32], index: 10, kind: input, shape index: {}]   ;;  %s6257_s11 = inlined_call_operand.hbm [shape: f32[8,1024], index: 11, kind: output, shape index: {}]  }
   0x1   :  { %17 = vsyncpa [#allocation6], 0  ;;  %s40_s19 = sshll.u32 %s6249_s3, 4  ;;  %s41_s19 = int_to_ptr.hbm [resolvable:$true] %s40_s19 }
   0x2   :  { %18 = vsyncpa [#allocation4], 0  ;;  %s4254_s20 = smov [#allocation5]   ;;  %s25_s24 = sshll.u32 %s6247_s1, 4  ;;  %s26_s24 = int_to_ptr.hbm [resolvable:$true] %s25_s24 }
   0x3   :  { %s42_s21 = sshll.u32 %s4254_s20, 4  ;;  %s4255_s25 = smov 128   ;;  %s43_s21 = int_to_ptr.vmem [resolvable:$true] %s42_s21 }
   0x4   :  { %s4256_s26 = smov 8   ;;  %s4257_s27 = smov [#allocation2]  }
   0x5   :  { %48 = dma.hbm_to_vmem [thread:$0]  %s41_s19, 4096, %s43_s21, [#allocation6], %s4255_s25, %s4255_s25, %s4256_s26  }
   0x6   :  { %s27_s28 = sshll.u32 %s4257_s27, 4  ;;  %s4258_s29 = smov 256   ;;  %s28_s28 = int_to_ptr.vmem [resolvable:$true] %s27_s28 }
   0x7   :  { %s4259_s30 = smov 16   ;;  %s59_s13 = sshll.u32 %s6253_s7, 4  ;;  %s60_s13 = int_to_ptr.hbm [resolvable:$true] %s59_s13 }
   0x8   :  { %33 = dma.hbm_to_vmem [thread:$0]  %s26_s24, 1024, %s28_s28, [#allocation3], %s4258_s29, %s4258_s29, %s4259_s30  }
   0x9   :  { %s4260_s14 = smov [#allocation7]  }
   0xa   :  { %s61_s15 = sshll.u32 %s4260_s14, 4  ;;  %s62_s15 = int_to_ptr.vmem [resolvable:$true] %s61_s15 }
   0xb   :  { %67 = dma.hbm_to_vmem [thread:$0]  %s60_s13, 4096, %s62_s15, [#allocation6], %s4255_s25, %s4255_s25, %s4256_s26  }
   0xc   :  { %4248 = dma.done.wait [#allocation3], 1024  }
   0xd   :  { %4249 = vsyncadd [#allocation3], 4294966272 }
   0xe   :  { %4250 = dma.done.wait [#allocation6], 8192  }
   0xf   :  { %4251 = vsyncadd [#allocation6], 4294959104  ;;  %v3445_v0 = vld [vmem:[#allocation2 + $0x20] sm:$0xf]  ;;  %v3853_v1 = vld [vmem:[#allocation2 + $0x2c] sm:$0xf0] }
  0x10   :  { %v3851_v2 = vld [vmem:[#allocation2 + $0x24] sm:$0xf]  ;;  %v3446_v3 = vor.u32 %v3853_v1, %v3445_v0  ;;  %v3447_v4 = vld [vmem:[#allocation2 + $0x30] sm:$0xf0]  ;;  %v3429_v5 = vld [vmem:[#allocation2] sm:$0xf] }
  0x11   :  { %v3849_v6 = vld [vmem:[#allocation2 + $0xc] sm:$0xf0]  ;;  %v3450_v7 = vor.u32 %v3851_v2, %v3447_v4  ;;  %v3847_v8 = vld [vmem:[#allocation2 + $0x4] sm:$0xf]  ;;  %v3431_v9 = vld [vmem:[#allocation2 + $0x10] sm:$0xf0] }
  0x12   :  { %v87_v10 = vld [vmem:[%s6246_s0] sm:$0xff]  ;;  %vm147_vm0 = vcmask 261120   ;;  %157 = vmatpush.bf16.msra.mxu0 %v3446_v3  ;;  %v3430_v11 = vor.u32 %v3849_v6, %v3429_v5  ;;  %v3453_v12 = vld [vmem:[#allocation2 + $0x28] sm:$0xf]  ;;  %v3854_v13 = vld [vmem:[#allocation2 + $0x34] sm:$0xf0]  ;;  %v3434_v15 = vor.u32 %v3847_v8, %v3431_v9 }
  0x13   :  { %v3852_v14 = vld [vmem:[#allocation2 + $0x2c] sm:$0xf]  ;;  %170 = vmatpush.bf16.msra.mxu1 %v3450_v7  ;;  %v3454_v16 = vor.u32 %v3854_v13, %v3453_v12  ;;  %v3455_v17 = vld [vmem:[#allocation2 + $0x38] sm:$0xf0]  ;;  %v3437_v18 = vld [vmem:[#allocation2 + $0x8] sm:$0xf]  ;;  %v88_v24 = vpack.c.bf16 %v87_v10, %v87_v10 }
  0x14   :  { %v3850_v19 = vld [vmem:[#allocation2 + $0x14] sm:$0xf0]  ;;  %v3458_v20 = vor.u32 %v3852_v14, %v3455_v17  ;;  %v3848_v21 = vld [vmem:[#allocation2 + $0xc] sm:$0xf]  ;;  %v3439_v22 = vld [vmem:[#allocation2 + $0x18] sm:$0xf0] }
  0x15   :  { %v3521_v23 = vld [vmem:[#allocation5 + $0x70] sm:$0xf]  ;;  %183 = vmatpush.bf16.msra.mxu2 %v3454_v16  ;;  %v3438_v25 = vor.u32 %v3850_v19, %v3437_v18  ;;  %v3870_v26 = vld [vmem:[#allocation5 + $0x74] sm:$0xf0]  ;;  %v3442_v29 = vor.u32 %v3848_v21, %v3439_v22  ;;  %v3869_v32 = vld [vmem:[#allocation5 + $0x74] sm:$0xf] }
  0x16   :  { %v3585_v27 = vld [vmem:[#allocation5 + $0xf0] sm:$0xf]  ;;  %v3886_v28 = vld [vmem:[#allocation5 + $0xf4] sm:$0xf0]  ;;  %158 = vmatpush.bf16.msra.mxu0 %v3430_v11  ;;  %196 = vmatpush.bf16.msra.mxu3 %v3458_v20  ;;  %v3522_v30 = vor.u32 %v3870_v26, %v3521_v23  ;;  %v3523_v33 = vld [vmem:[#allocation5 + $0x78] sm:$0xf0] }
  0x17   :  { %v3586_v31 = vor.u32 %v3886_v28, %v3585_v27  ;;  %v3885_v34 = vld [vmem:[#allocation5 + $0xf4] sm:$0xf]  ;;  %171 = vmatpush.bf16.msra.mxu1 %v3434_v15  ;;  %v3526_v35 = vor.u32 %v3869_v32, %v3523_v33  ;;  %v3587_v36 = vld [vmem:[#allocation5 + $0xf8] sm:$0xf0]  ;;  %v3513_v38 = vld [vmem:[#allocation5 + $0x60] sm:$0xf] }
  0x18   :  { %v3590_v37 = vor.u32 %v3885_v34, %v3587_v36  ;;  %v3868_v39 = vld [vmem:[#allocation5 + $0x64] sm:$0xf0]  ;;  %v3577_v41 = vld [vmem:[#allocation5 + $0xe0] sm:$0xf]  ;;  %v3867_v43 = vld [vmem:[#allocation5 + $0x64] sm:$0xf] }
  0x19   :  { %3459 = vmatmul.msk.bf16.vlgmr.msra.gmra.mxu0 %vm147_vm0, %v88_v24  ;;  %184 = vmatpush.bf16.msra.mxu2 %v3438_v25  ;;  %v3514_v40 = vor.u32 %v3868_v39, %v3513_v38  ;;  %v3884_v42 = vld [vmem:[#allocation5 + $0xe4] sm:$0xf0]  ;;  %v3515_v45 = vld [vmem:[#allocation5 + $0x68] sm:$0xf0]  ;;  %v3883_v46 = vld [vmem:[#allocation5 + $0xe4] sm:$0xf] }
  0x1a   :  { %459 = vmatpush.bf16.msrb.mxu0 %v3522_v30  ;;  %3460 = vmatmul.msk.bf16.vlgmr.msra.gmra.mxu1 %vm147_vm0, %v88_v24  ;;  %v3578_v44 = vor.u32 %v3884_v42, %v3577_v41  ;;  %v3579_v47 = vld [vmem:[#allocation5 + $0xe8] sm:$0xf0]  ;;  %v3518_v48 = vor.u32 %v3867_v43, %v3515_v45  ;;  %v3505_v50 = vld [vmem:[#allocation5 + $0x50] sm:$0xf]  ;;  %v3866_v51 = vld [vmem:[#allocation5 + $0x54] sm:$0xf0] }
  0x1b   :  { %472 = vmatpush.bf16.msrb.mxu1 %v3586_v31  ;;  %197 = vmatpush.bf16.msra.mxu3 %v3442_v29  ;;  %v3582_v49 = vor.u32 %v3883_v46, %v3579_v47  ;;  %v3569_v52 = vld [vmem:[#allocation5 + $0xd0] sm:$0xf]  ;;  %v3506_v53 = vor.u32 %v3866_v51, %v3505_v50  ;;  %v3882_v54 = vld [vmem:[#allocation5 + $0xd4] sm:$0xf0]  ;;  %v3865_v55 = vld [vmem:[#allocation5 + $0x54] sm:$0xf] }
  0x1c   :  { %3461 = vmatmul.msk.bf16.vlgmr.msra.gmra.mxu2 %vm147_vm0, %v88_v24  ;;  %v3507_v56 = vld [vmem:[#allocation5 + $0x58] sm:$0xf0]  ;;  %v3570_v57 = vor.u32 %v3882_v54, %v3569_v52  ;;  %v3881_v59 = vld [vmem:[#allocation5 + $0xd4] sm:$0xf]  ;;  %v3497_v62 = vld [vmem:[#allocation5 + $0x40] sm:$0xf] }
  0x1d   :  { %485 = vmatpush.bf16.msrb.mxu2 %v3526_v35  ;;  %v3510_v58 = vor.u32 %v3865_v55, %v3507_v56  ;;  %v3571_v60 = vld [vmem:[#allocation5 + $0xd8] sm:$0xf0]  ;;  %v3864_v63 = vld [vmem:[#allocation5 + $0x44] sm:$0xf0]  ;;  %v3561_v0 = vld [vmem:[#allocation5 + $0xc0] sm:$0xf] }
  0x1e   :  { %3462 = vmatmul.msk.bf16.vlgmr.msra.gmra.mxu3 %vm147_vm0, %v88_v24  ;;  %460 = vmatpush.bf16.msrb.mxu0 %v3514_v40  ;;  %v3574_v61 = vor.u32 %v3881_v59, %v3571_v60  ;;  %v3498_v1 = vor.u32 %v3864_v63, %v3497_v62  ;;  %v3880_v2 = vld [vmem:[#allocation5 + $0xc4] sm:$0xf0]  ;;  %v3863_v3 = vld [vmem:[#allocation5 + $0x44] sm:$0xf]  ;;  %v3499_v4 = vld [vmem:[#allocation5 + $0x48] sm:$0xf0] }
  0x1f   :  { %498 = vmatpush.bf16.msrb.mxu3 %v3590_v37  ;;  %473 = vmatpush.bf16.msrb.mxu1 %v3578_v44  ;;  %v3562_v5 = vor.u32 %v3880_v2, %v3561_v0  ;;  %v3502_v6 = vor.u32 %v3863_v3, %v3499_v4  ;;  %v3879_v7 = vld [vmem:[#allocation5 + $0xc4] sm:$0xf]  ;;  %v3563_v8 = vld [vmem:[#allocation5 + $0xc8] sm:$0xf0]  ;;  %v3489_v9 = vld [vmem:[#allocation5 + $0x30] sm:$0xf] }
  0x20   :  { %v3566_v10 = vor.u32 %v3879_v7, %v3563_v8  ;;  %v3862_v11 = vld [vmem:[#allocation5 + $0x34] sm:$0xf0]  ;;  %v3553_v12 = vld [vmem:[#allocation5 + $0xb0] sm:$0xf]  ;;  %v3861_v16 = vld [vmem:[#allocation5 + $0x34] sm:$0xf] }
  0x21   :  { %486 = vmatpush.bf16.msrb.mxu2 %v3518_v48  ;;  %v3878_v13 = vld [vmem:[#allocation5 + $0xb4] sm:$0xf0]  ;;  %v3490_v14 = vor.u32 %v3862_v11, %v3489_v9  ;;  %v3491_v17 = vld [vmem:[#allocation5 + $0x38] sm:$0xf0]  ;;  %v3877_v18 = vld [vmem:[#allocation5 + $0xb4] sm:$0xf] }
  0x22   :  { %461 = vmatpush.bf16.msrb.mxu0 %v3506_v53  ;;  %v3554_v15 = vor.u32 %v3878_v13, %v3553_v12  ;;  %v3494_v19 = vor.u32 %v3861_v16, %v3491_v17  ;;  %v3555_v20 = vld [vmem:[#allocation5 + $0xb8] sm:$0xf0]  ;;  %v3481_v21 = vld [vmem:[#allocation5 + $0x20] sm:$0xf]  ;;  %v3860_v22 = vld [vmem:[#allocation5 + $0x24] sm:$0xf0] }
  0x23   :  { %499 = vmatpush.bf16.msrb.mxu3 %v3582_v49  ;;  %474 = vmatpush.bf16.msrb.mxu1 %v3570_v57  ;;  %v3558_v23 = vor.u32 %v3877_v18, %v3555_v20  ;;  %v3545_v24 = vld [vmem:[#allocation5 + $0xa0] sm:$0xf]  ;;  %v3876_v25 = vld [vmem:[#allocation5 + $0xa4] sm:$0xf0]  ;;  %v3859_v26 = vld [vmem:[#allocation5 + $0x24] sm:$0xf]  ;;  %v3482_v27 = vor.u32 %v3860_v22, %v3481_v21 }
  0x24   :  { %v3483_v28 = vld [vmem:[#allocation5 + $0x28] sm:$0xf0]  ;;  %v3875_v29 = vld [vmem:[#allocation5 + $0xa4] sm:$0xf]  ;;  %v3546_v31 = vor.u32 %v3876_v25, %v3545_v24  ;;  %v3473_v32 = vld [vmem:[#allocation5 + $0x10] sm:$0xf] }
  0x25   :  { %487 = vmatpush.bf16.msrb.mxu2 %v3510_v58  ;;  %v3547_v30 = vld [vmem:[#allocation5 + $0xa8] sm:$0xf0]  ;;  %v3858_v33 = vld [vmem:[#allocation5 + $0x14] sm:$0xf0]  ;;  %v3486_v34 = vor.u32 %v3859_v26, %v3483_v28  ;;  %v3537_v36 = vld [vmem:[#allocation5 + $0x90] sm:$0xf] }
  0x26   :  { %462 = vmatpush.bf16.msrb.mxu0 %v3498_v1  ;;  %v3550_v35 = vor.u32 %v3875_v29, %v3547_v30  ;;  %v3874_v37 = vld [vmem:[#allocation5 + $0x94] sm:$0xf0]  ;;  %v3857_v38 = vld [vmem:[#allocation5 + $0x14] sm:$0xf]  ;;  %v3475_v39 = vld [vmem:[#allocation5 + $0x18] sm:$0xf0]  ;;  %v3474_v42 = vor.u32 %v3858_v33, %v3473_v32 }
  0x27   :  { %500 = vmatpush.bf16.msrb.mxu3 %v3574_v61  ;;  %475 = vmatpush.bf16.msrb.mxu1 %v3562_v5  ;;  %v3873_v40 = vld [vmem:[#allocation5 + $0x94] sm:$0xf]  ;;  %v3539_v41 = vld [vmem:[#allocation5 + $0x98] sm:$0xf0]  ;;  %v3538_v43 = vor.u32 %v3874_v37, %v3537_v36  ;;  %v3465_v44 = vld [vmem:[#allocation5] sm:$0xf]  ;;  %v3478_v46 = vor.u32 %v3857_v38, %v3475_v39 }
  0x28   :  { %v3856_v45 = vld [vmem:[#allocation5 + $0x4] sm:$0xf0]  ;;  %v3542_v47 = vor.u32 %v3873_v40, %v3539_v41  ;;  %v3529_v48 = vld [vmem:[#allocation5 + $0x80] sm:$0xf]  ;;  %v3855_v50 = vld [vmem:[#allocation5 + $0x4] sm:$0xf] }
  0x29   :  { %488 = vmatpush.bf16.msrb.mxu2 %v3502_v6  ;;  %v3872_v49 = vld [vmem:[#allocation5 + $0x84] sm:$0xf0]  ;;  %v3467_v51 = vld [vmem:[#allocation5 + $0x8] sm:$0xf0]  ;;  %v3871_v52 = vld [vmem:[#allocation5 + $0x84] sm:$0xf]  ;;  %v3466_v54 = vor.u32 %v3856_v45, %v3465_v44 }
  0x2a   :  { %463 = vmatpush.bf16.msrb.mxu0 %v3490_v14  ;;  %v3531_v53 = vld [vmem:[#allocation5 + $0x88] sm:$0xf0]  ;;  %v3530_v55 = vor.u32 %v3872_v49, %v3529_v48  ;;  %v3470_v56 = vor.u32 %v3855_v50, %v3467_v51  ;;  %v97_v58 = vld [vmem:[%s6248_s2] sm:$0xf]  ;;  %v3713_v61 = vld [vmem:[#allocation7 + $0x70] sm:$0xf] }
  0x2b   :  { %501 = vmatpush.bf16.msrb.mxu3 %v3566_v10  ;;  %476 = vmatpush.bf16.msrb.mxu1 %v3554_v15  ;;  %v3534_v57 = vor.u32 %v3871_v52, %v3531_v53  ;;  %v99_v59 = vperm.slane %v97_v58, 0  ;;  %v100_v60 = vperm.slane %v97_v58, 1  ;;  %v3918_v62 = vld [vmem:[#allocation7 + $0x74] sm:$0xf0]  ;;  %v101_v7 = vperm.slane %v97_v58, 2  ;;  %s4262_s12 = smov 64  }
  0x2c   :  { %v3714_v63 = vor.u32 %v3918_v62, %v3713_v61  ;;  %v3777_v9 = vld [vmem:[#allocation7 + $0xf0] sm:$0xf]  ;;  %v3934_v10 = vld [vmem:[#allocation7 + $0xf4] sm:$0xf0]  ;;  %v102_v12 = vperm.slane %v97_v58, 3  ;;  %s4263_s13 = smov 32  }
  0x2d   :  { %489 = vmatpush.bf16.msrb.mxu2 %v3494_v19  ;;  %v3778_v11 = vor.u32 %v3934_v10, %v3777_v9  ;;  %v3705_v13 = vld [vmem:[#allocation7 + $0x60] sm:$0xf]  ;;  %v3916_v14 = vld [vmem:[#allocation7 + $0x64] sm:$0xf0]  ;;  %v3697_v19 = vld [vmem:[#allocation7 + $0x50] sm:$0xf] }
  0x2e   :  { %464 = vmatpush.bf16.msrb.mxu0 %v3482_v27  ;;  %v3706_v16 = vor.u32 %v3916_v14, %v3705_v13  ;;  %v3769_v17 = vld [vmem:[#allocation7 + $0xe0] sm:$0xf]  ;;  %v3932_v18 = vld [vmem:[#allocation7 + $0xe4] sm:$0xf0]  ;;  %v3761_v27 = vld [vmem:[#allocation7 + $0xd0] sm:$0xf] }
  0x2f   :  { %502 = vmatpush.bf16.msrb.mxu3 %v3558_v23  ;;  %477 = vmatpush.bf16.msrb.mxu1 %v3546_v31  ;;  %v3770_v22 = vor.u32 %v3932_v18, %v3769_v17  ;;  %v3914_v23 = vld [vmem:[#allocation7 + $0x54] sm:$0xf0]  ;;  %v3689_v30 = vld [vmem:[#allocation7 + $0x40] sm:$0xf]  ;;  %v3912_v31 = vld [vmem:[#allocation7 + $0x44] sm:$0xf0] }
  0x30   :  { %v3698_v26 = vor.u32 %v3914_v23, %v3697_v19  ;;  %v3930_v28 = vld [vmem:[#allocation7 + $0xd4] sm:$0xf0]  ;;  %v3753_v36 = vld [vmem:[#allocation7 + $0xc0] sm:$0xf]  ;;  %v3928_v37 = vld [vmem:[#allocation7 + $0xc4] sm:$0xf0]  ;;  %v3690_v41 = vor.u32 %v3912_v31, %v3689_v30 }
  0x31   :  { %490 = vmatpush.bf16.msrb.mxu2 %v3486_v34  ;;  %v3894_v48 = vld [vmem:[%s6251_s5 + $0x38] sm:$0xff]  ;;  %v3754_v50 = vor.u32 %v3928_v37, %v3753_v36  ;;  %v3745_v51 = vld [vmem:[#allocation7 + $0xb0] sm:$0xf]  ;;  %v3904_v36 = vld [vmem:[#allocation7 + $0x4] sm:$0xf0]  ;;  %s4266_s14 = smov [#allocation8]  }
  0x32   :  { %465 = vmatpush.bf16.msrb.mxu0 %v3474_v42  ;;  %v3681_v42 = vld [vmem:[#allocation7 + $0x30] sm:$0xf]  ;;  %v3902_v62 = vld [vmem:[%s6251_s5 + $0x78] sm:$0xff]  ;;  %v3891_v37 = vld [vmem:[%s6251_s5 + $0x20] sm:$0xff]  ;;  %s3414_s15 = sshll.u32 %s4266_s14, 4  ;;  %s3416_s0 = sshll.u32 %s6257_s11, 4  ;;  %s3415_s15 = int_to_ptr.vmem [resolvable:$true] %s3414_s15  ;;  %s3417_s0 = int_to_ptr.hbm [resolvable:$true] %s3416_s0 }
  0x33   :  { %503 = vmatpush.bf16.msrb.mxu3 %v3550_v35  ;;  %478 = vmatpush.bf16.msrb.mxu1 %v3538_v43  ;;  %v3762_v35 = vor.u32 %v3930_v28, %v3761_v27  ;;  %v3906_v17 = vld [vmem:[#allocation7 + $0x14] sm:$0xf0] }
  0x35   :  { %491 = vmatpush.bf16.msrb.mxu2 %v3478_v46  ;;  %v3910_v46 = vld [vmem:[#allocation7 + $0x34] sm:$0xf0] }
  0x36   :  { %466 = vmatpush.bf16.msrb.mxu0 %v3466_v54  ;;  %v3682_v53 = vor.u32 %v3910_v46, %v3681_v42  ;;  %v3926_v54 = vld [vmem:[#allocation7 + $0xb4] sm:$0xf0] }
  0x37   :  { %504 = vmatpush.bf16.msrb.mxu3 %v3542_v47  ;;  %479 = vmatpush.bf16.msrb.mxu1 %v3530_v55  ;;  %v3673_v55 = vld [vmem:[#allocation7 + $0x20] sm:$0xf] }
  0x39   :  { %492 = vmatpush.bf16.msrb.mxu2 %v3470_v56  ;;  %v3893_v56 = vld [vmem:[%s6251_s5 + $0x30] sm:$0xff] }
  0x3a   :  { %673 = vmatpush.bf16.msra.mxu0 %v3894_v48 }
  0x3b   :  { %505 = vmatpush.bf16.msrb.mxu3 %v3534_v57  ;;  %686 = vmatpush.bf16.msra.mxu1 %v3902_v62  ;;  %v3887_v62 = vld [vmem:[%s6251_s5] sm:$0xff] }
  0x3d   :  { %899 = vmatpush.bf16.msra.mxu2 %v3714_v63  ;;  %v3917_v63 = vld [vmem:[#allocation7 + $0x74] sm:$0xf] }
  0x3e   :  { %674 = vmatpush.bf16.msra.mxu0 %v3893_v56 }
  0x3f   :  { %912 = vmatpush.bf16.msra.mxu3 %v3778_v11 }
  0x41   :  { %900 = vmatpush.bf16.msra.mxu2 %v3706_v16  ;;  %v3665_v16 = vld [vmem:[#allocation7 + $0x10] sm:$0xf] }
  0x42   :  { %v3666_v31 = vor.u32 %v3906_v17, %v3665_v16  ;;  %v3771_v16 = vld [vmem:[#allocation7 + $0xe8] sm:$0xf0] }
  0x43   :  { %913 = vmatpush.bf16.msra.mxu3 %v3770_v22 }
  0x45   :  { %901 = vmatpush.bf16.msra.mxu2 %v3698_v26 }
  0x47   :  { %914 = vmatpush.bf16.msra.mxu3 %v3762_v35 }
  0x49   :  { %902 = vmatpush.bf16.msra.mxu2 %v3690_v41 }
  0x4b   :  { %915 = vmatpush.bf16.msra.mxu3 %v3754_v50 }
  0x4d   :  { %903 = vmatpush.bf16.msra.mxu2 %v3682_v53 }
  0x96   :  { %v160_v0 = vpop.f32.mrf.mxu0 }
  0x97   :  { %v4346_v1 = vadd.f32 %v160_v0, %v99_v59  ;;  %v173_v2 = vpop.f32.mrf.mxu1  ;;  %v3746_v0 = vor.u32 %v3926_v54, %v3745_v51 }
  0x98   :  { %v4348_v3 = vadd.f32 %v173_v2, %v100_v60  ;;  %v3908_v60 = vld [vmem:[#allocation7 + $0x24] sm:$0xf0] }
  0x99   :  { %v207_v4 = vmin.f32 %v4346_v1, 20.0  ;;  %vm203_vm2 = vcmp.gt.f32.partialorder %v4346_v1, 20.0  ;;  %916 = vmatpush.bf16.msra.mxu3 %v3746_v0  ;;  %v3715_v0 = vld [vmem:[#allocation7 + $0x78] sm:$0xf0] }
  0x9a   :  { %v208_v5 = vmin.f32 %v4348_v3, 20.0  ;;  %vm204_vm3 = vcmp.gt.f32.partialorder %v4348_v3, 20.0 }
  0x9b   :  { %v211_v6 = vmul.f32 1.442695, %v207_v4  ;;  %v3674_v4 = vor.u32 %v3908_v60, %v3673_v55  ;;  %v3888_v60 = vld [vmem:[%s6251_s5 + $0x8] sm:$0xff] }
  0x9c   :  { %v213_v8 = vmul.f32 1.442695, %v208_v5  ;;  %v3737_v5 = vld [vmem:[#allocation7 + $0xa0] sm:$0xf] }
  0x9d   :  { %4120 = vpow2.f32 %v211_v6  ;;  %v3924_v6 = vld [vmem:[#allocation7 + $0xa4] sm:$0xf0]  ;;  %904 = vmatpush.bf16.msra.mxu2 %v3674_v4 }
  0x9e   :  { %4122 = vpow2.f32 %v213_v8  ;;  %v162_v15 = vpop.f32.mrf.mxu0  ;;  %v3738_v22 = vor.u32 %v3924_v6, %v3737_v5  ;;  %v3896_v4 = vld [vmem:[%s6251_s5 + $0x48] sm:$0xff]  ;;  %v3915_v5 = vld [vmem:[#allocation7 + $0x64] sm:$0xf] }
  0x9f   :  { %v175_v20 = vpop.f32.mrf.mxu1  ;;  %v186_v21 = vpop.f32.mrf.mxu2  ;;  %v3707_v6 = vld [vmem:[#allocation7 + $0x68] sm:$0xf0] }
  0xa0   :  { %v4352_v24 = vadd.f32 %v186_v21, %v101_v7  ;;  %v3892_v7 = vld [vmem:[%s6251_s5 + $0x28] sm:$0xff]  ;;  %917 = vmatpush.bf16.msra.mxu3 %v3738_v22  ;;  %v3929_v22 = vld [vmem:[#allocation7 + $0xd4] sm:$0xf] }
  0xa1   :  { %v199_v25 = vpop.f32.mrf.mxu3  ;;  %675 = vmatpush.bf16.msra.mxu0 %v3892_v7  ;;  %905 = vmatpush.bf16.msra.mxu2 %v3666_v31  ;;  %v3710_v7 = vor.u32 %v3915_v5, %v3707_v6  ;;  %v3919_v6 = vld [vmem:[#allocation7 + $0x84] sm:$0xf] }
  0xa2   :  { %v4354_v29 = vadd.f32 %v199_v25, %v102_v12  ;;  %v209_v32 = vmin.f32 %v4352_v24, 20.0  ;;  %v3901_v12 = vld [vmem:[%s6251_s5 + $0x70] sm:$0xff]  ;;  %vm205_vm7 = vcmp.gt.f32.partialorder %v4352_v24, 20.0 }
  0xa3   :  { %v4121_v33 = vpop.eup %4120  ;;  %687 = vmatpush.bf16.msra.mxu1 %v3901_v12  ;;  %v3913_v12 = vld [vmem:[#allocation7 + $0x54] sm:$0xf] }
  0xa4   :  { %v210_v34 = vmin.f32 %v4354_v29, 20.0  ;;  %v4123_v38 = vpop.eup %4122  ;;  %v219_v39 = vadd.f32 1.0, %v4121_v33  ;;  %v215_v40 = vmul.f32 1.442695, %v209_v32  ;;  %v222_v43 = vmul.f32 -0.5, %v4121_v33 }
  0xa5   :  { %v228_v44 = vadd.f32 1.0, %v4123_v38  ;;  %v231_v47 = vmul.f32 -0.5, %v4123_v38  ;;  %v225_v49 = vand.u32 2147483647, %v4121_v33  ;;  %v234_v59 = vand.u32 2147483647, %v4123_v38  ;;  %676 = vmatpush.bf16.msra.mxu0 %v3891_v37 }
  0xa6   :  { %v217_v45 = vmul.f32 1.442695, %v210_v34  ;;  %4124 = vlog2.f32 %v219_v39  ;;  %v223_v58 = vadd.f32 1.0, %v222_v43  ;;  %v3729_v32 = vld [vmem:[#allocation7 + $0x90] sm:$0xf]  ;;  %vm206_vm8 = vcmp.gt.f32.partialorder %v4354_v29, 20.0 }
  0xa7   :  { %4126 = vlog2.f32 %v228_v44  ;;  %v188_v52 = vpop.f32.mrf.mxu2  ;;  %v232_v61 = vadd.f32 1.0, %v231_v47  ;;  %vm4367_vm1 = vcmp.lt.f32.partialorder %v225_v49, 0.0004427343  ;;  %vm4376_vm4 = vcmp.lt.f32.partialorder %v234_v59, 0.0004427343  ;;  %v3898_v59 = vld [vmem:[%s6251_s5 + $0x58] sm:$0xff] }
  0xa8   :  { %4128 = vpow2.f32 %v215_v40  ;;  %v224_v10 = vmul.f32 %v4121_v33, %v223_v58  ;;  %v3922_v33 = vld [vmem:[#allocation7 + $0x94] sm:$0xf0]  ;;  %v3721_v43 = vld [vmem:[#allocation7 + $0x80] sm:$0xf]  ;;  %v3920_v44 = vld [vmem:[#allocation7 + $0x84] sm:$0xf0] }
  0xa9   :  { %v201_v57 = vpop.f32.mrf.mxu3  ;;  %4130 = vpow2.f32 %v217_v45  ;;  %v233_v15 = vmul.f32 %v4123_v38, %v232_v61  ;;  %v3730_v40 = vor.u32 %v3922_v33, %v3729_v32  ;;  %v3722_v50 = vor.u32 %v3920_v44, %v3721_v43  ;;  %v3889_v58 = vld [vmem:[%s6251_s5 + $0x10] sm:$0xff]  ;;  %v3927_v32 = vld [vmem:[#allocation7 + $0xc4] sm:$0xf]  ;;  %v3755_v33 = vld [vmem:[#allocation7 + $0xc8] sm:$0xf0] }
  0xaa   :  { %v3900_v57 = vld [vmem:[%s6251_s5 + $0x68] sm:$0xff]  ;;  %v3897_v61 = vld [vmem:[%s6251_s5 + $0x50] sm:$0xff] }
  0xab   :  { %918 = vmatpush.bf16.msra.mxu3 %v3730_v40  ;;  %688 = vmatpush.bf16.msra.mxu1 %v3900_v57  ;;  %v3675_v37 = vld [vmem:[#allocation7 + $0x28] sm:$0xf0]  ;;  %v3925_v40 = vld [vmem:[#allocation7 + $0xb4] sm:$0xf] }
  0xac   :  { %v4125_v2 = vpop.eup %4124  ;;  %v3905_v44 = vld [vmem:[#allocation7 + $0x14] sm:$0xf]  ;;  %v3659_v57 = vld [vmem:[#allocation7 + $0x8] sm:$0xf0] }
  0xad   :  { %v4127_v8 = vpop.eup %4126  ;;  %v221_v9 = vmul.f32 0.6931472, %v4125_v2  ;;  %v3718_v2 = vor.u32 %v3917_v63, %v3715_v0 }
  0xae   :  { %v4129_v13 = vpop.eup %4128  ;;  %v230_v14 = vmul.f32 0.6931472, %v4127_v8  ;;  %v3895_v8 = vld [vmem:[%s6251_s5 + $0x40] sm:$0xff] }
  0xaf   :  { %v4131_v18 = vpop.eup %4130  ;;  %v227_v19 = vsel %vm4367_vm1, %v224_v10, %v221_v9  ;;  %v237_v20 = vadd.f32 1.0, %v4129_v13  ;;  %v240_v21 = vmul.f32 -0.5, %v4129_v13  ;;  %v243_v38 = vand.u32 2147483647, %v4129_v13  ;;  %919 = vmatpush.bf16.msra.mxu3 %v3722_v50  ;;  %v3933_v9 = vld [vmem:[#allocation7 + $0xf4] sm:$0xf] }
  0xb0   :  { %v255_v23 = vsel %vm203_vm2, %v4346_v1, %v227_v19  ;;  %v236_v25 = vsel %vm4376_vm4, %v233_v15, %v230_v14  ;;  %v246_v26 = vadd.f32 1.0, %v4131_v18  ;;  %v249_v27 = vmul.f32 -0.5, %v4131_v18  ;;  %v3657_v1 = vld [vmem:[#allocation7] sm:$0xf]  ;;  %v3779_v10 = vld [vmem:[#allocation7 + $0xf8] sm:$0xf0] }
  0xb1   :  { %v259_v28 = vpack.c.bf16 %v255_v23, %v255_v23  ;;  %v256_v30 = vsel %vm204_vm3, %v4348_v3, %v236_v25  ;;  %4132 = vlog2.f32 %v237_v20  ;;  %v241_v35 = vadd.f32 1.0, %v240_v21  ;;  %v3931_v15 = vld [vmem:[#allocation7 + $0xe4] sm:$0xf]  ;;  %v3691_v20 = vld [vmem:[#allocation7 + $0x48] sm:$0xf0] }
  0xb2   :  { %v260_v34 = vpack.c.bf16 %v256_v30, %v256_v30  ;;  %4134 = vlog2.f32 %v246_v26  ;;  %v250_v39 = vadd.f32 1.0, %v249_v27  ;;  %v252_v3 = vand.u32 2147483647, %v4131_v18  ;;  %v3911_v19 = vld [vmem:[#allocation7 + $0x44] sm:$0xf] }
  0xb3   :  { %467 = vmatmul.bf16.vlgmr.msrb.gmra.mxu0 %v259_v28  ;;  %493 = vmatmul.bf16.vlgmr.msrb.gmra.mxu2 %v259_v28  ;;  %v3658_v41 = vor.u32 %v3904_v36, %v3657_v1  ;;  %v242_v42 = vmul.f32 %v4129_v13, %v241_v35  ;;  %vm244_vm5 = vcmp.lt.f32.partialorder %v243_v38, 0.0004427343  ;;  %v3782_v11 = vor.u32 %v3933_v9, %v3779_v10  ;;  %v3699_v13 = vld [vmem:[#allocation7 + $0x58] sm:$0xf0]  ;;  %v3909_v27 = vld [vmem:[#allocation7 + $0x34] sm:$0xf] }
  0xb4   :  { %480 = vmatmul.bf16.vlgmr.msrb.gmra.mxu1 %v260_v34  ;;  %506 = vmatmul.bf16.vlgmr.msrb.gmra.mxu3 %v260_v34  ;;  %v251_v46 = vmul.f32 %v4131_v18, %v250_v39  ;;  %vm253_vm6 = vcmp.lt.f32.partialorder %v252_v3, 0.0004427343  ;;  %v3702_v14 = vor.u32 %v3913_v12, %v3699_v13  ;;  %v3774_v17 = vor.u32 %v3931_v15, %v3771_v16  ;;  %v293_v18 = vld [vmem:[%s6250_s4] sm:$0x3]  ;;  %v3763_v23 = vld [vmem:[#allocation7 + $0xd8] sm:$0xf0] }
  0xb5   :  { %906 = vmatpush.bf16.msra.mxu2 %v3658_v41  ;;  %v3694_v21 = vor.u32 %v3911_v19, %v3691_v20  ;;  %v295_v25 = vperm.slane %v293_v18, 0  ;;  %v3766_v26 = vor.u32 %v3929_v22, %v3763_v23  ;;  %v3683_v28 = vld [vmem:[#allocation7 + $0x38] sm:$0xf0]  ;;  %v3758_v1 = vor.u32 %v3927_v32, %v3755_v33  ;;  %v3907_v36 = vld [vmem:[#allocation7 + $0x24] sm:$0xf] }
  0xb6   :  { %v3686_v30 = vor.u32 %v3909_v27, %v3683_v28  ;;  %v296_v39 = vperm.slane %v293_v18, 1  ;;  %v3678_v3 = vor.u32 %v3907_v36, %v3675_v37  ;;  %v3747_v41 = vld [vmem:[#allocation7 + $0xb8] sm:$0xf0]  ;;  %v3903_v50 = vld [vmem:[#allocation7 + $0x4] sm:$0xf]  ;;  %vm2831_vm4 = vcmask 1047556  }
  0xb7   :  { %v4133_v45 = vpop.eup %4132  ;;  %v3750_v43 = vor.u32 %v3925_v40, %v3747_v41  ;;  %v4448_v13 = vld [vmem:[%s6254_s8] sm:$0x3] }
  0xb8   :  { %v4135_v47 = vpop.eup %4134  ;;  %v239_v48 = vmul.f32 0.6931472, %v4133_v45  ;;  %v3667_v45 = vld [vmem:[#allocation7 + $0x18] sm:$0xf0]  ;;  %v3939_v40 = vld [vmem:[%s6255_s9 + $0x20] sm:$0xff] }
  0xb9   :  { %v248_v49 = vmul.f32 0.6931472, %v4135_v47  ;;  %v3670_v47 = vor.u32 %v3905_v44, %v3667_v45  ;;  %v3938_v44 = vld [vmem:[%s6255_s9 + $0x18] sm:$0xff] }
  0xba   :  { %v245_v51 = vsel %vm244_vm5, %v242_v42, %v239_v48  ;;  %v3923_v48 = vld [vmem:[#allocation7 + $0xa4] sm:$0xf] }
  0xbb   :  { %v254_v52 = vsel %vm253_vm6, %v251_v46, %v248_v49  ;;  %v257_v53 = vsel %vm205_vm7, %v4352_v24, %v245_v51  ;;  %v3890_v24 = vld [vmem:[%s6251_s5 + $0x18] sm:$0xff]  ;;  %v3739_v49 = vld [vmem:[#allocation7 + $0xa8] sm:$0xf0]  ;;  %vm3376_vm7 = vcmask 523264  }
  0xbc   :  { %v258_v54 = vsel %vm206_vm8, %v4354_v29, %v254_v52  ;;  %v4400_v55 = vpack.c.bf16 %v257_v53, %v257_v53  ;;  %677 = vmatpush.bf16.msra.mxu0 %v3890_v24  ;;  %v3899_v29 = vld [vmem:[%s6251_s5 + $0x60] sm:$0xff]  ;;  %vm3378_vm8 = vcmask 785408  }
  0xbd   :  { %v4402_v56 = vpack.c.bf16 %v258_v54, %v258_v54  ;;  %689 = vmatpush.bf16.msra.mxu1 %v3899_v29  ;;  %v3742_v54 = vor.u32 %v3923_v48, %v3739_v49  ;;  %v3921_v29 = vld [vmem:[#allocation7 + $0x94] sm:$0xf] }
  0xbe   :  { %v3937_v48 = vld [vmem:[%s6255_s9 + $0x10] sm:$0xff] }
  0xc0   :  { %678 = vmatpush.bf16.msra.mxu0 %v3889_v58  ;;  %v3731_v58 = vld [vmem:[#allocation7 + $0x98] sm:$0xf0] }
  0xc1   :  { %690 = vmatpush.bf16.msra.mxu1 %v3898_v59  ;;  %v3734_v63 = vor.u32 %v3921_v29, %v3731_v58 }
  0xc3   :  { %907 = vmatmul.bf16.vlgmr.msra.gmra.mxu2 %v4400_v55 }
  0xc4   :  { %920 = vmatmul.bf16.vlgmr.msra.gmra.mxu3 %v4402_v56  ;;  %679 = vmatpush.bf16.msra.mxu0 %v3888_v60 }
  0xc5   :  { %691 = vmatpush.bf16.msra.mxu1 %v3897_v61  ;;  %v3662_v61 = vor.u32 %v3903_v50, %v3659_v57 }
  0xc8   :  { %680 = vmatpush.bf16.msra.mxu0 %v3887_v62 }
  0xc9   :  { %692 = vmatpush.bf16.msra.mxu1 %v3896_v4 }
  0xcc   :  { %925 = vmatpush.bf16.msrb.mxu0 %v3718_v2 }
  0xcd   :  { %693 = vmatpush.bf16.msra.mxu1 %v3895_v8 }
  0xd0   :  { %926 = vmatpush.bf16.msrb.mxu0 %v3710_v7  ;;  %v3723_v7 = vld [vmem:[#allocation7 + $0x88] sm:$0xf0] }
  0xd1   :  { %938 = vmatpush.bf16.msrb.mxu1 %v3782_v11  ;;  %v3726_v9 = vor.u32 %v3919_v6, %v3723_v7 }
  0xd4   :  { %927 = vmatpush.bf16.msrb.mxu0 %v3702_v14  ;;  %v3942_v14 = vld [vmem:[%s6255_s9 + $0x38] sm:$0xff] }
  0xd5   :  { %939 = vmatpush.bf16.msrb.mxu1 %v3774_v17  ;;  %v735_v17 = vperm.slane %v4448_v13, 0  ;;  %1113 = vmatpush.bf16.msrb.mxu2 %v3942_v14 }
  0xd8   :  { %928 = vmatpush.bf16.msrb.mxu0 %v3694_v21  ;;  %v3941_v21 = vld [vmem:[%s6255_s9 + $0x30] sm:$0xff] }
  0xd9   :  { %940 = vmatpush.bf16.msrb.mxu1 %v3766_v26  ;;  %1114 = vmatpush.bf16.msrb.mxu2 %v3941_v21 }
  0xdc   :  { %929 = vmatpush.bf16.msrb.mxu0 %v3686_v30 }
  0xdd   :  { %941 = vmatpush.bf16.msrb.mxu1 %v3758_v1 }
  0xe0   :  { %930 = vmatpush.bf16.msrb.mxu0 %v3678_v3 }
  0xe1   :  { %942 = vmatpush.bf16.msrb.mxu1 %v3750_v43 }
  0xe4   :  { %931 = vmatpush.bf16.msrb.mxu0 %v3670_v47 }
  0xe5   :  { %943 = vmatpush.bf16.msrb.mxu1 %v3742_v54  ;;  %v3935_v54 = vld [vmem:[%s6255_s9] sm:$0xff] }
  0xe8   :  { %932 = vmatpush.bf16.msrb.mxu0 %v3662_v61  ;;  %v3950_v61 = vld [vmem:[%s6255_s9 + $0x78] sm:$0xff] }
  0xe9   :  { %944 = vmatpush.bf16.msrb.mxu1 %v3734_v63  ;;  %1126 = vmatpush.bf16.msrb.mxu3 %v3950_v61 }
  0xed   :  { %945 = vmatpush.bf16.msrb.mxu1 %v3726_v9 }
 0x130   :  { %v468_v31 = vpop.f32.mrf.mxu0 }
 0x131   :  { %v469_v34 = vadd.f32 %v468_v31, %v295_v25  ;;  %v481_v35 = vpop.f32.mrf.mxu1  ;;  %v3940_v31 = vld [vmem:[%s6255_s9 + $0x28] sm:$0xff] }
 0x132   :  { %1115 = vmatpush.bf16.msrb.mxu2 %v3940_v31 }
 0x133   :  { %v4439_v38 = vadd.f32 %v481_v35, %v469_v34 }
 0x135   :  { %v513_v42 = vmin.f32 %v4439_v38, 20.0  ;;  %vm511_vm10 = vcmp.gt.f32.partialorder %v4439_v38, 20.0 }
 0x136   :  { %v494_v46 = vpop.f32.mrf.mxu2  ;;  %1116 = vmatpush.bf16.msrb.mxu2 %v3939_v40 }
 0x137   :  { %v515_v51 = vmul.f32 1.442695, %v513_v42  ;;  %v495_v52 = vadd.f32 %v494_v46, %v296_v39  ;;  %v507_v53 = vpop.f32.mrf.mxu3 }
 0x138   :  { %v470_v24 = vpop.f32.mrf.mxu0 }
 0x139   :  { %4136 = vpow2.f32 %v515_v51  ;;  %v4442_v59 = vadd.f32 %v507_v53, %v495_v52  ;;  %v483_v60 = vpop.f32.mrf.mxu1  ;;  %v3936_v51 = vld [vmem:[%s6255_s9 + $0x8] sm:$0xff] }
 0x13a   :  { %1117 = vmatpush.bf16.msrb.mxu2 %v3938_v44 }
 0x13b   :  { %v514_v62 = vmin.f32 %v4442_v59, 20.0  ;;  %vm512_vm12 = vcmp.gt.f32.partialorder %v4442_v59, 20.0 }
 0x13d   :  { %v517_v0 = vmul.f32 1.442695, %v514_v62  ;;  %v3948_v62 = vld [vmem:[%s6255_s9 + $0x68] sm:$0xff] }
 0x13e   :  { %v496_v2 = vpop.f32.mrf.mxu2  ;;  %1118 = vmatpush.bf16.msrb.mxu2 %v3937_v48 }
 0x13f   :  { %v4137_v4 = vpop.eup %4136  ;;  %4138 = vpow2.f32 %v517_v0  ;;  %v509_v5 = vpop.f32.mrf.mxu3  ;;  %v4118_v0 = vld [vmem:[%s6252_s6] ss:$0 sm:$0xff] }
 0x140   :  { %v519_v8 = vadd.f32 1.0, %v4137_v4  ;;  %v522_v10 = vmul.f32 -0.5, %v4137_v4  ;;  %v525_v15 = vand.u32 2147483647, %v4137_v4  ;;  %v3947_v2 = vld [vmem:[%s6255_s9 + $0x60] sm:$0xff]  ;;  %v3946_v5 = vld [vmem:[%s6255_s9 + $0x58] sm:$0xff] }
 0x142   :  { %4140 = vlog2.f32 %v519_v8  ;;  %v523_v12 = vadd.f32 1.0, %v522_v10  ;;  %vm526_vm9 = vcmp.lt.f32.partialorder %v525_v15, 0.0004427343  ;;  %1119 = vmatpush.bf16.msrb.mxu2 %v3936_v51 }
 0x144   :  { %v524_v26 = vmul.f32 %v4137_v4, %v523_v12  ;;  %v3944_v12 = vld [vmem:[%s6255_s9 + $0x48] sm:$0xff] }
 0x145   :  { %v4139_v11 = vpop.eup %4138 }
 0x146   :  { %v528_v16 = vadd.f32 1.0, %v4139_v11  ;;  %v908_v18 = vpop.f32.mrf.mxu2  ;;  %v531_v19 = vmul.f32 -0.5, %v4139_v11  ;;  %v534_v33 = vand.u32 2147483647, %v4139_v11  ;;  %1120 = vmatpush.bf16.msrb.mxu2 %v3935_v54 }
 0x147   :  { %v921_v20 = vpop.f32.mrf.mxu3  ;;  %v909_v23 = vadd.f32 %v908_v18, %v735_v17  ;;  %v736_v18 = vperm.slane %v4448_v13, 1 }
 0x148   :  { %v4141_v22 = vpop.eup %4140  ;;  %4142 = vlog2.f32 %v528_v16  ;;  %v532_v30 = vadd.f32 1.0, %v531_v19  ;;  %vm535_vm11 = vcmp.lt.f32.partialorder %v534_v33, 0.0004427343  ;;  %v3943_v19 = vld [vmem:[%s6255_s9 + $0x40] sm:$0xff] }
 0x149   :  { %v521_v25 = vmul.f32 0.6931472, %v4141_v22  ;;  %v922_v27 = vadd.f32 %v921_v20, %v909_v23 }
 0x14a   :  { %v533_v3 = vmul.f32 %v4139_v11, %v532_v30  ;;  %v3945_v11 = vld [vmem:[%s6255_s9 + $0x50] sm:$0xff] }
 0x14b   :  { %v527_v28 = vsel %vm526_vm9, %v524_v26, %v521_v25  ;;  %v953_v34 = vmin.f32 %v922_v27, 20.0  ;;  %vm951_vm14 = vcmp.gt.f32.partialorder %v922_v27, 20.0 }
 0x14c   :  { %v537_v32 = vsel %vm511_vm10, %v4439_v38, %v527_v28 }
 0x14d   :  { %v539_v35 = vpack.c.bf16 %v537_v32, %v537_v32  ;;  %v955_v36 = vmul.f32 1.442695, %v953_v34 }
 0x14e   :  { %v4143_v1 = vpop.eup %4142  ;;  %v910_v37 = vpop.f32.mrf.mxu2 }
 0x14f   :  { %v530_v39 = vmul.f32 0.6931472, %v4143_v1  ;;  %681 = vmatmul.bf16.vlgmr.msra.gmra.mxu0 %v539_v35  ;;  %v923_v41 = vpop.f32.mrf.mxu3  ;;  %4144 = vpow2.f32 %v955_v36 }
 0x151   :  { %v536_v38 = vsel %vm535_vm11, %v533_v3, %v530_v39 }
 0x152   :  { %v538_v42 = vsel %vm512_vm12, %v4442_v59, %v536_v38  ;;  %v6258_v59 = vlaneseq }
 0x153   :  { %v540_v43 = vpack.c.bf16 %v538_v42, %v538_v42 }
 0x154   :  { %v4482_v60 = vshrl.u32 %v6258_v59, 7 }
 0x155   :  { %694 = vmatmul.bf16.vlgmr.msra.gmra.mxu1 %v540_v43  ;;  %v4145_v45 = vpop.eup %4144 }
 0x156   :  { %v959_v46 = vadd.f32 1.0, %v4145_v45  ;;  %v962_v47 = vmul.f32 -0.5, %v4145_v45  ;;  %v965_v50 = vand.u32 2147483647, %v4145_v45  ;;  %3968 = vset.pattern.permute.xlu2 %v4482_v60  ;;  %3964 = vset.pattern.permute.xlu0 %v4482_v60  ;;  %v4526_v15 = vadd.s32 8, %v4482_v60 }
 0x157   :  { %v4529_v16 = vadd.s32 24, %v4482_v60  ;;  %v4557_v40 = vadd.s32 40, %v4482_v60  ;;  %v4566_v38 = vadd.s32 48, %v4482_v60  ;;  %v4578_v44 = vadd.s32 56, %v4482_v60 }
 0x158   :  { %4146 = vlog2.f32 %v959_v46  ;;  %v963_v49 = vadd.f32 1.0, %v962_v47  ;;  %vm966_vm13 = vcmp.lt.f32.partialorder %v965_v50, 0.0004427343  ;;  %v4119_v50 = vld [vmem:[%s6256_s10] ss:$0 sm:$0xff]  ;;  %v4637_v54 = vadd.s32 88, %v4482_v60 }
 0x159   :  { %6273 = vst [vmem:[#allocation12_spill] sm:$0xff] %v4529_v16  ;;  %s4261_s10 = smov 96  }
 0x15a   :  { %v964_v52 = vmul.f32 %v4145_v45, %v963_v49  ;;  %v4587_v45 = vadd.s32 32, %v4482_v60  ;;  %v4623_v49 = vadd.s32 80, %v4482_v60 }
 0x15e   :  { %v4147_v53 = vpop.eup %4146 }
 0x15f   :  { %933 = vmatmul.bf16.vlgmr.msrb.gmra.mxu0 %v4400_v55  ;;  %v961_v57 = vmul.f32 0.6931472, %v4147_v53  ;;  %v4487_v55 = vadd.s32 16, %v4482_v60 }
 0x161   :  { %v967_v24 = vsel %vm966_vm13, %v964_v52, %v961_v57  ;;  %3966 = vset.pattern.permute.xlu1 %v4487_v55 }
 0x162   :  { %v977_v29 = vsel %vm951_vm14, %v922_v27, %v967_v24  ;;  %v4646_v24 = vadd.s32 64, %v4482_v60 }
 0x163   :  { %v979_v58 = vpack.c.bf16 %v977_v29, %v977_v29  ;;  %v4655_v29 = vadd.s32 72, %v4482_v60 }
 0x165   :  { %946 = vmatmul.bf16.vlgmr.msrb.gmra.mxu1 %v4402_v56  ;;  %1121 = vmatmul.bf16.vlgmr.msrb.gmra.mxu2 %v979_v58  ;;  %v3949_v56 = vld [vmem:[%s6255_s9 + $0x70] sm:$0xff] }
 0x166   :  { %1127 = vmatpush.bf16.msrb.mxu3 %v3949_v56  ;;  %v4680_v56 = vadd.s32 104, %v4482_v60 }
 0x16a   :  { %1128 = vmatpush.bf16.msrb.mxu3 %v3948_v62 }
 0x16e   :  { %1129 = vmatpush.bf16.msrb.mxu3 %v3947_v2 }
 0x172   :  { %1130 = vmatpush.bf16.msrb.mxu3 %v3946_v5 }
 0x176   :  { %1131 = vmatpush.bf16.msrb.mxu3 %v3945_v11 }
 0x17a   :  { %1132 = vmatpush.bf16.msrb.mxu3 %v3944_v12  ;;  %v4714_v12 = vadd.s32 120, %v4482_v60 }
 0x17e   :  { %1133 = vmatpush.bf16.msrb.mxu3 %v3943_v19 }
 0x1cc   :  { %v682_v63 = vpop.f32.mrf.mxu0 }
 0x1cd   :  { %v683_v4 = vadd.f32 %v4118_v0, %v682_v63 }
 0x1d2   :  { %v695_v6 = vpop.f32.mrf.mxu1 }
 0x1d3   :  { %v4508_v7 = vadd.f32 %v695_v6, %v683_v4  ;;  %v4697_v4 = vadd.s32 112, %v4482_v60 }
 0x1d4   :  { %v684_v8 = vpop.f32.mrf.mxu0 }
 0x1d5   :  { %v4511_v9 = vperm.slane %v4508_v7, 0  ;;  %v4514_v10 = vperm.slane %v4508_v7, 1  ;;  %v4545_v32 = vperm.slane %v4508_v7, 2  ;;  %v4551_v3 = vperm.slane %v4508_v7, 7 }
 0x1d6   :  { %v4569_v42 = vperm.slane %v4508_v7, 3  ;;  %v4590_v46 = vperm.slane %v4508_v7, 4  ;;  %v4599_v47 = vperm.slane %v4508_v7, 5  ;;  %v4611_v48 = vperm.slane %v4508_v7, 6 }
 0x1d7   :  { %1169 = vperm.xlu2 %3968, %v4514_v10   ;;  %1156 = vperm.xlu1 %3966, %v4511_v9  }
 0x1d8   :  { %1144 = vperm.xlu0 %3964, %v4511_v9  }
 0x1da   :  { %v697_v14 = vpop.f32.mrf.mxu1 }
 0x1dc   :  { %v934_v17 = vpop.f32.mrf.mxu0 }
 0x1dd   :  { %v935_v20 = vadd.f32 %v934_v17, %v736_v18 }
 0x1df   :  { %3969 = vset.pattern.permute.xlu2 %v4526_v15  ;;  %3967 = vset.pattern.permute.xlu1 %v4529_v16 }
 0x1e0   :  { %3965 = vset.pattern.permute.xlu0 %v4526_v15 }
 0x1e2   :  { %v947_v21 = vpop.f32.mrf.mxu1 }
 0x1e3   :  { %v948_v22 = vadd.f32 %v947_v21, %v935_v20  ;;  %v4731_v20 = vadd.s32 96, %v4482_v60 }
 0x1e4   :  { %v936_v23 = vpop.f32.mrf.mxu0 }
 0x1e5   :  { %v954_v25 = vmin.f32 %v948_v22, 20.0  ;;  %vm952_vm1 = vcmp.gt.f32.partialorder %v948_v22, 20.0 }
 0x1e7   :  { %v957_v26 = vmul.f32 1.442695, %v954_v25  ;;  %1175 = vperm.xlu2 %3969, %v4514_v10   ;;  %1162 = vperm.xlu1 %3967, %v4511_v9  }
 0x1e8   :  { %1150 = vperm.xlu0 %3965, %v4511_v9   ;;  %v1122_v41 = vpop.f32.mrf.mxu2 }
 0x1e9   :  { %4148 = vpow2.f32 %v957_v26  ;;  %v1123_v51 = vadd.f32 %v4119_v50, %v1122_v41  ;;  %v1340_v41 = vrot.slane %v4508_v7, 1 }
 0x1ea   :  { %v949_v13 = vpop.f32.mrf.mxu1 }
 0x1ef   :  { %v4149_v27 = vpop.eup %4148  ;;  %3971 = vset.pattern.permute.xlu2 %v4529_v16  ;;  %3970 = vset.pattern.permute.xlu1 %v4487_v55 }
 0x1f0   :  { %v968_v28 = vadd.f32 1.0, %v4149_v27  ;;  %3972 = vset.pattern.permute.xlu0 %v4482_v60  ;;  %v971_v30 = vmul.f32 -0.5, %v4149_v27  ;;  %v974_v33 = vand.u32 2147483647, %v4149_v27  ;;  %v1124_v43 = vpop.f32.mrf.mxu2 }
 0x1f2   :  { %4150 = vlog2.f32 %v968_v28  ;;  %v972_v31 = vadd.f32 1.0, %v971_v30  ;;  %vm975_vm15 = vcmp.lt.f32.partialorder %v974_v33, 0.0004427343 }
 0x1f4   :  { %v973_v1 = vmul.f32 %v4149_v27, %v972_v31 }
 0x1f7   :  { %1187 = vperm.xlu2 %3971, %v4514_v10   ;;  %1181 = vperm.xlu1 %3970, %v4514_v10  }
 0x1f8   :  { %v4151_v34 = vpop.eup %4150  ;;  %1194 = vperm.xlu0 %3972, %v4545_v32  }
 0x1f9   :  { %v970_v35 = vmul.f32 0.6931472, %v4151_v34 }
 0x1fb   :  { %v976_v36 = vsel %vm975_vm15, %v973_v1, %v970_v35 }
 0x1fc   :  { %v978_v37 = vsel %vm952_vm1, %v948_v22, %v976_v36 }
 0x1fd   :  { %v980_v39 = vpack.c.bf16 %v978_v37, %v978_v37 }
 0x1ff   :  { %1134 = vmatmul.bf16.vlgmr.msrb.gmra.mxu3 %v980_v39  ;;  %3974 = vset.pattern.permute.xlu2 %v4487_v55 }
 0x200   :  { %3973 = vset.pattern.permute.xlu1 %v4526_v15  ;;  %1319 = vperm.xlu0 %3972, %v4551_v3  }
 0x207   :  { %1206 = vperm.xlu2 %3974, %v4545_v32  }
 0x208   :  { %1200 = vperm.xlu1 %3973, %v4545_v32   ;;  %3993 = vset.pattern.permute.xlu0 %v4557_v40 }
 0x20f   :  { %3976 = vset.pattern.permute.xlu2 %v4482_v60 }
 0x210   :  { %3975 = vset.pattern.permute.xlu1 %v4529_v16  ;;  %1405 = vperm.xlu0 %3993, %v4511_v9  }
 0x217   :  { %1219 = vperm.xlu2 %3976, %v4569_v42  }
 0x218   :  { %1212 = vperm.xlu1 %3975, %v4545_v32   ;;  %3998 = vset.pattern.permute.xlu0 %v4566_v38 }
 0x21f   :  { %3978 = vset.pattern.permute.xlu2 %v4529_v16 }
 0x220   :  { %3977 = vset.pattern.permute.xlu1 %v4487_v55  ;;  %1435 = vperm.xlu0 %3998, %v4514_v10  }
 0x227   :  { %1237 = vperm.xlu2 %3978, %v4569_v42  }
 0x228   :  { %1231 = vperm.xlu1 %3977, %v4569_v42   ;;  %4003 = vset.pattern.permute.xlu0 %v4578_v44 }
 0x22f   :  { %3980 = vset.pattern.permute.xlu2 %v4526_v15 }
 0x230   :  { %3979 = vset.pattern.permute.xlu1 %v4482_v60  ;;  %1465 = vperm.xlu0 %4003, %v4545_v32  }
 0x231   :  { %v4675_v58 = vpop.permute.xlu2 %1169 }
 0x232   :  { %6274 = vst [vmem:[#allocation13_spill] sm:$0xff] %v4675_v58 }
 0x237   :  { %1250 = vperm.xlu2 %3980, %v4590_v46  }
 0x238   :  { %1244 = vperm.xlu1 %3979, %v4590_v46   ;;  %4008 = vset.pattern.permute.xlu0 %v4587_v45 }
 0x23f   :  { %3982 = vset.pattern.permute.xlu2 %v4482_v60 }
 0x240   :  { %3981 = vset.pattern.permute.xlu1 %v4529_v16  ;;  %1495 = vperm.xlu0 %4008, %v4590_v46  }
 0x241   :  { %v4685_v62 = vpop.permute.xlu2 %1175 }
 0x242   :  { %6276 = vst [vmem:[#allocation15_spill] sm:$0xff] %v4685_v62 }
 0x247   :  { %1269 = vperm.xlu2 %3982, %v4599_v47  }
 0x248   :  { %1262 = vperm.xlu1 %3981, %v4590_v46   ;;  %4013 = vset.pattern.permute.xlu0 %v4557_v40 }
 0x249   :  { %v4677_v61 = vpop.permute.xlu1 %1156 }
 0x24a   :  { %6275 = vst [vmem:[#allocation14_spill] sm:$0xff] %v4677_v61  ;;  %v4762_v30 = vpop.permute.xlu0 %1144 }
 0x24b   :  { %6296 = vst [vmem:[#allocation35_spill] sm:$0xff] %v4762_v30  ;;  %v1342_v30 = vrot.slane %v4508_v7, 3 }
 0x24f   :  { %3984 = vset.pattern.permute.xlu2 %v4487_v55 }
 0x250   :  { %3983 = vset.pattern.permute.xlu1 %v4526_v15  ;;  %1525 = vperm.xlu0 %4013, %v4599_v47  }
 0x251   :  { %v4692_v0 = vpop.permute.xlu2 %1187 }
 0x252   :  { %6278 = vst [vmem:[#allocation17_spill] sm:$0xff] %v4692_v0 }
 0x257   :  { %1281 = vperm.xlu2 %3984, %v4599_v47  }
 0x258   :  { %1275 = vperm.xlu1 %3983, %v4599_v47   ;;  %4018 = vset.pattern.permute.xlu0 %v4566_v38 }
 0x259   :  { %v4687_v63 = vpop.permute.xlu1 %1162 }
 0x25a   :  { %6277 = vst [vmem:[#allocation16_spill] sm:$0xff] %v4687_v63  ;;  %v4771_v34 = vpop.permute.xlu0 %1150 }
 0x25b   :  { %6299 = vst [vmem:[#allocation38_spill] sm:$0xff] %v4771_v34 }
 0x25f   :  { %3986 = vset.pattern.permute.xlu2 %v4526_v15 }
 0x260   :  { %3985 = vset.pattern.permute.xlu1 %v4482_v60  ;;  %1555 = vperm.xlu0 %4018, %v4611_v48  }
 0x261   :  { %v4702_v5 = vpop.permute.xlu2 %1206 }
 0x262   :  { %6280 = vst [vmem:[#allocation19_spill] sm:$0xff] %v4702_v5 }
 0x267   :  { %1300 = vperm.xlu2 %3986, %v4611_v48  }
 0x268   :  { %1294 = vperm.xlu1 %3985, %v4611_v48   ;;  %4023 = vset.pattern.permute.xlu0 %v4578_v44 }
 0x269   :  { %v4694_v2 = vpop.permute.xlu1 %1181 }
 0x26a   :  { %6279 = vst [vmem:[#allocation18_spill] sm:$0xff] %v4694_v2  ;;  %v4780_v36 = vpop.permute.xlu0 %1194 }
 0x26b   :  { %6301 = vst [vmem:[#allocation40_spill] sm:$0xff] %v4780_v36 }
 0x26f   :  { %3988 = vset.pattern.permute.xlu2 %v4529_v16 }
 0x270   :  { %3987 = vset.pattern.permute.xlu1 %v4487_v55  ;;  %1585 = vperm.xlu0 %4023, %v4551_v3  }
 0x271   :  { %v4709_v8 = vpop.permute.xlu2 %1219 }
 0x272   :  { %6282 = vst [vmem:[#allocation21_spill] sm:$0xff] %v4709_v8  ;;  %v4792_v43 = vpop.permute.xlu0 %1319 }
 0x273   :  { %6302 = vst [vmem:[#allocation41_spill] sm:$0xff] %v4792_v43 }
 0x277   :  { %1312 = vperm.xlu2 %3988, %v4611_v48  }
 0x278   :  { %1306 = vperm.xlu1 %3987, %v4611_v48   ;;  %4026 = vset.pattern.permute.xlu0 %v4623_v49 }
 0x27a   :  { %v4704_v6 = vpop.permute.xlu1 %1200 }
 0x27b   :  { %6281 = vst [vmem:[#allocation20_spill] sm:$0xff] %v4704_v6 }
 0x27f   :  { %3990 = vset.pattern.permute.xlu2 %v4487_v55 }
 0x280   :  { %3989 = vset.pattern.permute.xlu1 %v4526_v15  ;;  %1795 = vperm.xlu0 %4026, %v4511_v9  }
 0x281   :  { %v4719_v14 = vpop.permute.xlu2 %1237 }
 0x282   :  { %v1135_v52 = vpop.f32.mrf.mxu3  ;;  %6284 = vst [vmem:[#allocation23_spill] sm:$0xff] %v4719_v14 }
 0x283   :  { %v4634_v53 = vadd.f32 %v1135_v52, %v1123_v51  ;;  %v4796_v52 = vperm.slane %v1340_v41, 0  ;;  %v1341_v41 = vrot.slane %v4508_v7, 2 }
 0x285   :  { %v4814_v63 = vperm.slane %v1341_v41, 0  ;;  %v1343_v41 = vrot.slane %v4508_v7, 4 }
 0x287   :  { %1331 = vperm.xlu2 %3990, %v4551_v3  }
 0x288   :  { %1325 = vperm.xlu1 %3989, %v4551_v3   ;;  %4031 = vset.pattern.permute.xlu0 %v4637_v54 }
 0x28a   :  { %v1137_v57 = vpop.f32.mrf.mxu3  ;;  %v4711_v11 = vpop.permute.xlu1 %1212 }
 0x28b   :  { %6283 = vst [vmem:[#allocation22_spill] sm:$0xff] %v4711_v11  ;;  %v1344_v11 = vrot.slane %v4508_v7, 5 }
 0x28d   :  { %v4867_v14 = vperm.slane %v1344_v11, 0  ;;  %v1346_v11 = vrot.slane %v4508_v7, 7 }
 0x28f   :  { %3992 = vset.pattern.permute.xlu2 %v4587_v45  ;;  %v4885_v34 = vperm.slane %v1346_v11, 0 }
 0x290   :  { %3991 = vset.pattern.permute.xlu1 %v4529_v16  ;;  %1825 = vperm.xlu0 %4031, %v4514_v10  }
 0x291   :  { %v4726_v18 = vpop.permute.xlu2 %1250 }
 0x292   :  { %6286 = vst [vmem:[#allocation25_spill] sm:$0xff] %v4726_v18 }
 0x297   :  { %1399 = vperm.xlu2 %3992, %v4511_v9  }
 0x298   :  { %1337 = vperm.xlu1 %3991, %v4551_v3   ;;  %4036 = vset.pattern.permute.xlu0 %v4646_v24 }
 0x29a   :  { %v4721_v17 = vpop.permute.xlu1 %1231 }
 0x29b   :  { %6285 = vst [vmem:[#allocation24_spill] sm:$0xff] %v4721_v17 }
 0x29f   :  { %3995 = vset.pattern.permute.xlu2 %v4578_v44 }
 0x2a0   :  { %3994 = vset.pattern.permute.xlu1 %v4566_v38  ;;  %1855 = vperm.xlu0 %4036, %v4569_v42  }
 0x2a1   :  { %v4736_v21 = vpop.permute.xlu2 %1269 }
 0x2a2   :  { %6288 = vst [vmem:[#allocation27_spill] sm:$0xff] %v4736_v21 }
 0x2a7   :  { %1417 = vperm.xlu2 %3995, %v4511_v9  }
 0x2a8   :  { %1411 = vperm.xlu1 %3994, %v4511_v9   ;;  %4041 = vset.pattern.permute.xlu0 %v4655_v29 }
 0x2aa   :  { %v4728_v19 = vpop.permute.xlu1 %1244 }
 0x2ab   :  { %6287 = vst [vmem:[#allocation26_spill] sm:$0xff] %v4728_v19 }
 0x2af   :  { %3997 = vset.pattern.permute.xlu2 %v4557_v40 }
 0x2b0   :  { %3996 = vset.pattern.permute.xlu1 %v4587_v45  ;;  %1885 = vperm.xlu0 %4041, %v4590_v46  }
 0x2b1   :  { %v4743_v23 = vpop.permute.xlu2 %1281 }
 0x2b2   :  { %6290 = vst [vmem:[#allocation29_spill] sm:$0xff] %v4743_v23 }
 0x2b7   :  { %1429 = vperm.xlu2 %3997, %v4514_v10  }
 0x2b8   :  { %1423 = vperm.xlu1 %3996, %v4514_v10   ;;  %4046 = vset.pattern.permute.xlu0 %v4623_v49 }
 0x2ba   :  { %v4738_v22 = vpop.permute.xlu1 %1262 }
 0x2bb   :  { %6289 = vst [vmem:[#allocation28_spill] sm:$0xff] %v4738_v22 }
 0x2bf   :  { %4000 = vset.pattern.permute.xlu2 %v4587_v45 }
 0x2c0   :  { %3999 = vset.pattern.permute.xlu1 %v4578_v44  ;;  %1915 = vperm.xlu0 %4046, %v4599_v47  }
 0x2c1   :  { %v4750_v26 = vpop.permute.xlu2 %1300 }
 0x2c2   :  { %6292 = vst [vmem:[#allocation31_spill] sm:$0xff] %v4750_v26 }
 0x2c7   :  { %1447 = vperm.xlu2 %4000, %v4545_v32  }
 0x2c8   :  { %1441 = vperm.xlu1 %3999, %v4514_v10   ;;  %4051 = vset.pattern.permute.xlu0 %v4637_v54 }
 0x2ca   :  { %v4745_v25 = vpop.permute.xlu1 %1275 }
 0x2cb   :  { %6291 = vst [vmem:[#allocation30_spill] sm:$0xff] %v4745_v25 }
 0x2cf   :  { %4002 = vset.pattern.permute.xlu2 %v4566_v38 }
 0x2d0   :  { %4001 = vset.pattern.permute.xlu1 %v4557_v40  ;;  %1945 = vperm.xlu0 %4051, %v4611_v48  }
 0x2d1   :  { %v4757_v27 = vpop.permute.xlu2 %1312 }
 0x2d2   :  { %6294 = vst [vmem:[#allocation33_spill] sm:$0xff] %v4757_v27 }
 0x2d7   :  { %1459 = vperm.xlu2 %4002, %v4545_v32  }
 0x2d8   :  { %1453 = vperm.xlu1 %4001, %v4545_v32   ;;  %4057 = vset.pattern.permute.xlu0 %v4680_v56 }
 0x2da   :  { %v4752_v13 = vpop.permute.xlu1 %1294 }
 0x2db   :  { %6293 = vst [vmem:[#allocation32_spill] sm:$0xff] %v4752_v13 }
 0x2df   :  { %4005 = vset.pattern.permute.xlu2 %v4557_v40 }
 0x2e0   :  { %4004 = vset.pattern.permute.xlu1 %v4587_v45  ;;  %2173 = vperm.xlu0 %4057, %v4511_v9  }
 0x2e1   :  { %v4766_v31 = vpop.permute.xlu2 %1331 }
 0x2e2   :  { %6297 = vst [vmem:[#allocation36_spill] sm:$0xff] %v4766_v31  ;;  %v4830_v31 = vperm.slane %v1343_v41, 0 }
 0x2e7   :  { %1477 = vperm.xlu2 %4005, %v4569_v42  }
 0x2e8   :  { %1471 = vperm.xlu1 %4004, %v4569_v42   ;;  %4062 = vset.pattern.permute.xlu0 %v4697_v4 }
 0x2ea   :  { %v4759_v28 = vpop.permute.xlu1 %1306 }
 0x2eb   :  { %6295 = vst [vmem:[#allocation34_spill] sm:$0xff] %v4759_v28 }
 0x2ef   :  { %4007 = vset.pattern.permute.xlu2 %v4578_v44 }
 0x2f0   :  { %4006 = vset.pattern.permute.xlu1 %v4566_v38  ;;  %2203 = vperm.xlu0 %4062, %v4514_v10  }
 0x2f1   :  { %v4775_v35 = vpop.permute.xlu2 %1399 }
 0x2f7   :  { %1489 = vperm.xlu2 %4007, %v4569_v42  }
 0x2f8   :  { %1483 = vperm.xlu1 %4006, %v4569_v42   ;;  %4067 = vset.pattern.permute.xlu0 %v4714_v12 }
 0x2fa   :  { %v4768_v33 = vpop.permute.xlu1 %1325 }
 0x2fb   :  { %6298 = vst [vmem:[#allocation37_spill] sm:$0xff] %v4768_v33 }
 0x2ff   :  { %4010 = vset.pattern.permute.xlu2 %v4566_v38 }
 0x300   :  { %4009 = vset.pattern.permute.xlu1 %v4557_v40  ;;  %2233 = vperm.xlu0 %4067, %v4545_v32  }
 0x301   :  { %v4784_v37 = vpop.permute.xlu2 %1417 }
 0x307   :  { %1507 = vperm.xlu2 %4010, %v4590_v46  }
 0x308   :  { %1501 = vperm.xlu1 %4009, %v4590_v46   ;;  %4072 = vset.pattern.permute.xlu0 %v4731_v20 }
 0x30a   :  { %v4777_v1 = vpop.permute.xlu1 %1337 }
 0x30b   :  { %6300 = vst [vmem:[#allocation39_spill] sm:$0xff] %v4777_v1 }
 0x30f   :  { %4012 = vset.pattern.permute.xlu2 %v4587_v45 }
 0x310   :  { %4011 = vset.pattern.permute.xlu1 %v4578_v44  ;;  %2263 = vperm.xlu0 %4072, %v4590_v46  }
 0x311   :  { %v4794_v50 = vpop.permute.xlu2 %1429 }
 0x317   :  { %1519 = vperm.xlu2 %4012, %v4599_v47  }
 0x318   :  { %1513 = vperm.xlu1 %4011, %v4590_v46   ;;  %4077 = vset.pattern.permute.xlu0 %v4680_v56 }
 0x31a   :  { %v4786_v39 = vpop.permute.xlu1 %1411 }
 0x31f   :  { %4015 = vset.pattern.permute.xlu2 %v4578_v44 }
 0x320   :  { %4014 = vset.pattern.permute.xlu1 %v4566_v38  ;;  %2293 = vperm.xlu0 %4077, %v4599_v47  }
 0x327   :  { %1537 = vperm.xlu2 %4015, %v4599_v47  }
 0x328   :  { %1531 = vperm.xlu1 %4014, %v4599_v47   ;;  %4082 = vset.pattern.permute.xlu0 %v4697_v4 }
 0x32a   :  { %v1424_v51 = vpop.permute.xlu1 %1423 }
 0x32b   :  { %v1591_v57 = vmul.f32 %v1424_v51, %v4796_v52 }
 0x32f   :  { %4017 = vset.pattern.permute.xlu2 %v4557_v40 }
 0x330   :  { %4016 = vset.pattern.permute.xlu1 %v4587_v45  ;;  %2323 = vperm.xlu0 %4082, %v4611_v48  }
 0x337   :  { %1549 = vperm.xlu2 %4017, %v4611_v48  }
 0x338   :  { %1543 = vperm.xlu1 %4016, %v4611_v48   ;;  %4087 = vset.pattern.permute.xlu0 %v4714_v12 }
 0x33a   :  { %v1442_v59 = vpop.permute.xlu1 %1441 }
 0x33b   :  { %v1594_v6 = vmul.f32 %v1442_v59, %v4796_v52 }
 0x33f   :  { %4020 = vset.pattern.permute.xlu2 %v4587_v45  ;;  %v4805_v45 = vpop.permute.xlu2 %1447 }
 0x340   :  { %4019 = vset.pattern.permute.xlu1 %v4578_v44  ;;  %2353 = vperm.xlu0 %4087, %v4551_v3   ;;  %v4803_v44 = vpop.permute.xlu0 %1405 }
 0x347   :  { %1567 = vperm.xlu2 %4020, %v4551_v3  }
 0x348   :  { %1561 = vperm.xlu1 %4019, %v4611_v48   ;;  %1659 = vrot.lane.b32.xlu0 %v1591_v57, %s4261_s10  ;;  %v4812_v51 = vpop.permute.xlu0 %1435  ;;  %v1460_v57 = vpop.permute.xlu2 %1459 }
 0x349   :  { %4098 = vset.pattern.permute.xlu0 %v4482_v60  ;;  %v1597_v2 = vmul.f32 %v1460_v57, %v4814_v63 }
 0x34f   :  { %4022 = vset.pattern.permute.xlu2 %v4566_v38  ;;  %v4823_v38 = vperm.slane %v1342_v30, 0  ;;  %v4836_v30 = vpop.permute.xlu1 %1453 }
 0x350   :  { %4021 = vset.pattern.permute.xlu1 %v4557_v40  ;;  %1665 = vrot.lane.b32.xlu0 %v1594_v6, %s4261_s10  ;;  %v4821_v59 = vpop.permute.xlu0 %1465  ;;  %v1478_v40 = vpop.permute.xlu2 %1477 }
 0x351   :  { %v1600_v6 = vmul.f32 %v1478_v40, %v4823_v38 }
 0x357   :  { %1579 = vperm.xlu2 %4022, %v4551_v3  }
 0x358   :  { %1573 = vperm.xlu1 %4021, %v4551_v3   ;;  %1671 = vrot.lane.b32.xlu0 %v1597_v2, %s4261_s10  ;;  %v1496_v57 = vpop.permute.xlu0 %1495  ;;  %v4847_v41 = vpop.permute.xlu2 %1489 }
 0x359   :  { %v1603_v2 = vmul.f32 %v1496_v57, %v4830_v31 }
 0x35a   :  { %v4840_v40 = vpop.permute.xlu1 %1471 }
 0x35f   :  { %4025 = vset.pattern.permute.xlu2 %v4655_v29 }
 0x360   :  { %4024 = vset.pattern.permute.xlu1 %v4646_v24  ;;  %1677 = vrot.lane.b32.xlu0 %v1600_v6, %s4261_s10  ;;  %v4873_v8 = vpop.permute.xlu0 %1525 }
 0x367   :  { %1789 = vperm.xlu2 %4025, %v4511_v9  }
 0x368   :  { %1783 = vperm.xlu1 %4024, %v4511_v9   ;;  %1683 = vrot.lane.b32.xlu0 %v1603_v2, %s4261_s10  ;;  %v4853_v2 = vpop.permute.xlu2 %1507 }
 0x36a   :  { %v4844_v6 = vpop.permute.xlu1 %1483 }
 0x36f   :  { %4028 = vset.pattern.permute.xlu2 %v4646_v24 }
 0x370   :  { %4027 = vset.pattern.permute.xlu1 %v4637_v54 }
 0x371   :  { %v4859_v25 = vpop.permute.xlu2 %1519 }
 0x377   :  { %1807 = vperm.xlu2 %4028, %v4514_v10  }
 0x378   :  { %1801 = vperm.xlu1 %4027, %v4511_v9  }
 0x37a   :  { %v4850_v57 = vpop.permute.xlu1 %1501 }
 0x37f   :  { %4030 = vset.pattern.permute.xlu2 %v4623_v49 }
 0x380   :  { %4029 = vset.pattern.permute.xlu1 %v4655_v29 }
 0x381   :  { %v4864_v36 = vpop.permute.xlu2 %1537 }
 0x387   :  { %1819 = vperm.xlu2 %4030, %v4514_v10  }
 0x388   :  { %1813 = vperm.xlu1 %4029, %v4514_v10  }
 0x38a   :  { %v1514_v27 = vpop.permute.xlu1 %1513 }
 0x38b   :  { %v1606_v13 = vmul.f32 %v1514_v27, %v4830_v31 }
 0x38d   :  { %1689 = vrot.lane.b32.xlu0 %v1606_v13, %s4261_s10  ;;  %v1345_v13 = vrot.slane %v4508_v7, 6 }
 0x38f   :  { %4033 = vset.pattern.permute.xlu2 %v4655_v29  ;;  %v4876_v1 = vperm.slane %v1345_v13, 0 }
 0x390   :  { %4032 = vset.pattern.permute.xlu1 %v4646_v24 }
 0x391   :  { %v1550_v61 = vpop.permute.xlu2 %1549 }
 0x392   :  { %v1612_v43 = vmul.f32 %v1550_v61, %v4876_v1 }
 0x397   :  { %1837 = vperm.xlu2 %4033, %v4545_v32  }
 0x398   :  { %1831 = vperm.xlu1 %4032, %v4545_v32  }
 0x39a   :  { %v1532_v62 = vpop.permute.xlu1 %1531 }
 0x39b   :  { %v1609_v27 = vmul.f32 %v1532_v62, %v4867_v14  ;;  %v4882_v62 = vpop.permute.xlu0 %1555 }
 0x39d   :  { %1695 = vrot.lane.b32.xlu0 %v1609_v27, %s4261_s10 }
 0x39f   :  { %4035 = vset.pattern.permute.xlu2 %v4637_v54 }
 0x3a0   :  { %4034 = vset.pattern.permute.xlu1 %v4623_v49 }
 0x3a1   :  { %v1568_v27 = vpop.permute.xlu2 %1567 }
 0x3a2   :  { %v1615_v26 = vmul.f32 %v1568_v27, %v4885_v34 }
 0x3a3   :  { %v1586_v61 = vpop.permute.xlu0 %1585 }
 0x3a4   :  { %v1618_v7 = vmul.f32 %v1586_v61, %v4885_v34 }
 0x3a5   :  { %1701 = vrot.lane.b32.xlu0 %v1612_v43, %s4261_s10 }
 0x3a7   :  { %1849 = vperm.xlu2 %4035, %v4545_v32  }
 0x3a8   :  { %1843 = vperm.xlu1 %4034, %v4545_v32  }
 0x3aa   :  { %v4897_v43 = vpop.permute.xlu1 %1543 }
 0x3ad   :  { %1707 = vrot.lane.b32.xlu0 %v1615_v26, %s4261_s10 }
 0x3af   :  { %4038 = vset.pattern.permute.xlu2 %v4623_v49 }
 0x3b0   :  { %4037 = vset.pattern.permute.xlu1 %v4655_v29 }
 0x3b1   :  { %v4908_v11 = vpop.permute.xlu2 %1579 }
 0x3b5   :  { %1713 = vrot.lane.b32.xlu0 %v1618_v7, %s4261_s10 }
 0x3b7   :  { %1867 = vperm.xlu2 %4038, %v4569_v42  }
 0x3b8   :  { %1861 = vperm.xlu1 %4037, %v4569_v42  }
 0x3ba   :  { %v4901_v26 = vpop.permute.xlu1 %1561 }
 0x3bf   :  { %4040 = vset.pattern.permute.xlu2 %v4646_v24 }
 0x3c0   :  { %4039 = vset.pattern.permute.xlu1 %v4637_v54 }
 0x3c1   :  { %v4914_v7 = vpop.permute.xlu2 %1789 }
 0x3c7   :  { %1879 = vperm.xlu2 %4040, %v4590_v46  }
 0x3c8   :  { %1873 = vperm.xlu1 %4039, %v4569_v42  }
 0x3ca   :  { %v4905_v13 = vpop.permute.xlu1 %1573 }
 0x3cf   :  { %4043 = vset.pattern.permute.xlu2 %v4637_v54 }
 0x3d0   :  { %4042 = vset.pattern.permute.xlu1 %v4623_v49 }
 0x3d1   :  { %v4918_v33 = vpop.permute.xlu2 %1807 }
 0x3d7   :  { %1897 = vperm.xlu2 %4043, %v4590_v46  }
 0x3d8   :  { %1891 = vperm.xlu1 %4042, %v4590_v46  }
 0x3da   :  { %v1784_v27 = vpop.permute.xlu1 %1783 }
 0x3db   :  { %v1971_v61 = vmul.f32 %v1784_v27, %v4511_v9  ;;  %v4924_v27 = vpop.permute.xlu0 %1795 }
 0x3dd   :  { %2035 = vrot.lane.b32.xlu0 %v1971_v61, %s4262_s12 }
 0x3df   :  { %4045 = vset.pattern.permute.xlu2 %v4655_v29 }
 0x3e0   :  { %4044 = vset.pattern.permute.xlu1 %v4646_v24 }
 0x3e1   :  { %v1820_v61 = vpop.permute.xlu2 %1819 }
 0x3e2   :  { %v1977_v22 = vmul.f32 %v1820_v61, %v4796_v52 }
 0x3e3   :  { %v4930_v19 = vpop.permute.xlu0 %1825 }
 0x3e7   :  { %1909 = vperm.xlu2 %4045, %v4599_v47  }
 0x3e8   :  { %1903 = vperm.xlu1 %4044, %v4599_v47  }
 0x3ea   :  { %v1802_v23 = vpop.permute.xlu1 %1801 }
 0x3eb   :  { %v1974_v28 = vmul.f32 %v1802_v23, %v4511_v9 }
 0x3ed   :  { %2041 = vrot.lane.b32.xlu0 %v1974_v28, %s4262_s12  ;;  %v1856_v28 = vpop.permute.xlu0 %1855 }
 0x3ee   :  { %v1983_v61 = vmul.f32 %v1856_v28, %v4823_v38 }
 0x3ef   :  { %4048 = vset.pattern.permute.xlu2 %v4646_v24 }
 0x3f0   :  { %4047 = vset.pattern.permute.xlu1 %v4637_v54 }
 0x3f1   :  { %v1838_v21 = vpop.permute.xlu2 %1837 }
 0x3f2   :  { %v1980_v23 = vmul.f32 %v1838_v21, %v4814_v63 }
 0x3f5   :  { %2047 = vrot.lane.b32.xlu0 %v1977_v22, %s4262_s12 }
 0x3f7   :  { %1927 = vperm.xlu2 %4048, %v4611_v48  }
 0x3f8   :  { %1921 = vperm.xlu1 %4047, %v4599_v47  }
 0x3fa   :  { %v4945_v21 = vpop.permute.xlu1 %1813 }
 0x3fd   :  { %2053 = vrot.lane.b32.xlu0 %v1980_v23, %s4262_s12 }
 0x3ff   :  { %4050 = vset.pattern.permute.xlu2 %v4623_v49 }
 0x400   :  { %4049 = vset.pattern.permute.xlu1 %v4655_v29 }
 0x405   :  { %2059 = vrot.lane.b32.xlu0 %v1983_v61, %s4262_s12 }
 0x407   :  { %1939 = vperm.xlu2 %4050, %v4611_v48  }
 0x408   :  { %1933 = vperm.xlu1 %4049, %v4611_v48  }
 0x40a   :  { %v4949_v22 = vpop.permute.xlu1 %1831 }
 0x40f   :  { %4053 = vset.pattern.permute.xlu2 %v4655_v29 }
 0x410   :  { %4052 = vset.pattern.permute.xlu1 %v4646_v24  ;;  %v4956_v24 = vpop.permute.xlu2 %1849 }
 0x417   :  { %1957 = vperm.xlu2 %4053, %v4551_v3  }
 0x418   :  { %1951 = vperm.xlu1 %4052, %v4551_v3  }
 0x41a   :  { %v4953_v23 = vpop.permute.xlu1 %1843 }
 0x41f   :  { %4055 = vset.pattern.permute.xlu2 %v4637_v54  ;;  %v4962_v54 = vpop.permute.xlu2 %1867 }
 0x420   :  { %4054 = vset.pattern.permute.xlu1 %v4623_v49 }
 0x427   :  { %1969 = vperm.xlu2 %4055, %v4551_v3   ;;  %v4968_v61 = vpop.permute.xlu2 %1879 }
 0x428   :  { %1963 = vperm.xlu1 %4054, %v4551_v3  }
 0x42a   :  { %v4959_v29 = vpop.permute.xlu1 %1861 }
 0x42f   :  { %4056 = vset.pattern.permute.xlu2 %v4731_v20 }
 0x430   :  { %4058 = vset.pattern.permute.xlu1 %v4697_v4 }
 0x431   :  { %v4972_v18 = vpop.permute.xlu2 %1897 }
 0x437   :  { %2167 = vperm.xlu2 %4056, %v4511_v9  }
 0x438   :  { %2179 = vperm.xlu1 %4058, %v4511_v9  }
 0x43a   :  { %v1874_v49 = vpop.permute.xlu1 %1873 }
 0x43b   :  { %v1986_v28 = vmul.f32 %v1874_v49, %v4823_v38  ;;  %v4978_v49 = vpop.permute.xlu0 %1885 }
 0x43d   :  { %2065 = vrot.lane.b32.xlu0 %v1986_v28, %s4262_s12 }
 0x43f   :  { %4059 = vset.pattern.permute.xlu2 %v4714_v12 }
 0x440   :  { %4060 = vset.pattern.permute.xlu1 %v4731_v20 }
 0x441   :  { %v1910_v28 = vpop.permute.xlu2 %1909 }
 0x442   :  { %v1992_v0 = vmul.f32 %v1910_v28, %v4867_v14 }
 0x443   :  { %v4984_v58 = vpop.permute.xlu0 %1915 }
 0x447   :  { %2185 = vperm.xlu2 %4059, %v4511_v9  }
 0x448   :  { %2191 = vperm.xlu1 %4060, %v4514_v10  }
 0x44a   :  { %v1892_v5 = vpop.permute.xlu1 %1891 }
 0x44b   :  { %v1989_v17 = vmul.f32 %v1892_v5, %v4830_v31 }
 0x44d   :  { %2071 = vrot.lane.b32.xlu0 %v1989_v17, %s4262_s12  ;;  %v1946_v17 = vpop.permute.xlu0 %1945 }
 0x44e   :  { %v1998_v28 = vmul.f32 %v1946_v17, %v4876_v1 }
 0x44f   :  { %4061 = vset.pattern.permute.xlu2 %v4680_v56 }
 0x450   :  { %4063 = vset.pattern.permute.xlu1 %v4714_v12 }
 0x451   :  { %v1928_v16 = vpop.permute.xlu2 %1927 }
 0x452   :  { %v1995_v5 = vmul.f32 %v1928_v16, %v4876_v1 }
 0x455   :  { %2077 = vrot.lane.b32.xlu0 %v1992_v0, %s4262_s12 }
 0x457   :  { %2197 = vperm.xlu2 %4061, %v4514_v10  }
 0x458   :  { %2209 = vperm.xlu1 %4063, %v4514_v10  }
 0x45a   :  { %v4999_v10 = vpop.permute.xlu1 %1903 }
 0x45b   :  { %6303 = vst [vmem:[#allocation42_spill] sm:$0xff] %v4999_v10 }
 0x45d   :  { %2083 = vrot.lane.b32.xlu0 %v1995_v5, %s4262_s12 }
 0x45f   :  { %4064 = vset.pattern.permute.xlu2 %v4731_v20 }
 0x460   :  { %4065 = vset.pattern.permute.xlu1 %v4680_v56 }
 0x461   :  { %v5015_v5 = vpop.permute.xlu2 %1939 }
 0x462   :  { %6307 = vst [vmem:[#allocation46_spill] sm:$0xff] %v5015_v5 }
 0x465   :  { %2089 = vrot.lane.b32.xlu0 %v1998_v28, %s4262_s12 }
 0x467   :  { %2215 = vperm.xlu2 %4064, %v4545_v32  }
 0x468   :  { %2221 = vperm.xlu1 %4065, %v4545_v32  }
 0x46a   :  { %v5003_v16 = vpop.permute.xlu1 %1921 }
 0x46b   :  { %6304 = vst [vmem:[#allocation43_spill] sm:$0xff] %v5003_v16 }
 0x46f   :  { %4066 = vset.pattern.permute.xlu2 %v4697_v4 }
 0x470   :  { %4068 = vset.pattern.permute.xlu1 %v4731_v20 }
 0x471   :  { %v5021_v16 = vpop.permute.xlu2 %1957 }
 0x472   :  { %6308 = vst [vmem:[#allocation47_spill] sm:$0xff] %v5021_v16  ;;  %v5037_v16 = vpop.permute.xlu0 %2173 }
 0x473   :  { %6313 = vst [vmem:[#allocation52_spill] sm:$0xff] %v5037_v16 }
 0x477   :  { %2227 = vperm.xlu2 %4066, %v4545_v32  }
 0x478   :  { %2239 = vperm.xlu1 %4068, %v4569_v42  }
 0x47a   :  { %v5007_v0 = vpop.permute.xlu1 %1933 }
 0x47b   :  { %6305 = vst [vmem:[#allocation44_spill] sm:$0xff] %v5007_v0 }
 0x47f   :  { %4069 = vset.pattern.permute.xlu2 %v4680_v56 }
 0x480   :  { %4070 = vset.pattern.permute.xlu1 %v4697_v4 }
 0x487   :  { %2245 = vperm.xlu2 %4069, %v4569_v42  }
 0x488   :  { %2251 = vperm.xlu1 %4070, %v4569_v42  }
 0x48a   :  { %v5011_v32 = vpop.permute.xlu1 %1951 }
 0x48b   :  { %6306 = vst [vmem:[#allocation45_spill] sm:$0xff] %v5011_v32  ;;  %v5025_v32 = vpop.permute.xlu2 %1969 }
 0x48c   :  { %6309 = vst [vmem:[#allocation48_spill] sm:$0xff] %v5025_v32 }
 0x48f   :  { %4071 = vset.pattern.permute.xlu2 %v4714_v12 }
 0x490   :  { %4073 = vset.pattern.permute.xlu1 %v4680_v56 }
 0x493   :  { %v5029_v5 = vpop.permute.xlu2 %2167 }
 0x494   :  { %6310 = vst [vmem:[#allocation49_spill] sm:$0xff] %v5029_v5 }
 0x497   :  { %2257 = vperm.xlu2 %4071, %v4569_v42  }
 0x498   :  { %2269 = vperm.xlu1 %4073, %v4590_v46  }
 0x49a   :  { %v1964_v17 = vpop.permute.xlu1 %1963 }
 0x49b   :  { %v2001_v28 = vmul.f32 %v1964_v17, %v4885_v34 }
 0x49d   :  { %2095 = vrot.lane.b32.xlu0 %v2001_v28, %s4262_s12 }
 0x49f   :  { %4074 = vset.pattern.permute.xlu2 %v4697_v4 }
 0x4a0   :  { %4075 = vset.pattern.permute.xlu1 %v4714_v12 }
 0x4a1   :  { %v5035_v28 = vpop.permute.xlu2 %2185 }
 0x4a2   :  { %6312 = vst [vmem:[#allocation51_spill] sm:$0xff] %v5035_v28 }
 0x4a7   :  { %2275 = vperm.xlu2 %4074, %v4590_v46  }
 0x4a8   :  { %2281 = vperm.xlu1 %4075, %v4590_v46  }
 0x4aa   :  { %v5031_v17 = vpop.permute.xlu1 %2179 }
 0x4ab   :  { %6311 = vst [vmem:[#allocation50_spill] sm:$0xff] %v5031_v17  ;;  %v5045_v17 = vpop.permute.xlu0 %2203 }
 0x4ac   :  { %6315 = vst [vmem:[#allocation54_spill] sm:$0xff] %v5045_v17 }
 0x4af   :  { %4076 = vset.pattern.permute.xlu2 %v4731_v20 }
 0x4b0   :  { %4078 = vset.pattern.permute.xlu1 %v4697_v4 }
 0x4b1   :  { %v5043_v5 = vpop.permute.xlu2 %2197 }
 0x4b2   :  { %6314 = vst [vmem:[#allocation53_spill] sm:$0xff] %v5043_v5 }
 0x4b3   :  { %v5051_v16 = vpop.permute.xlu0 %2233 }
 0x4b4   :  { %6316 = vst [vmem:[#allocation55_spill] sm:$0xff] %v5051_v16 }
 0x4b7   :  { %2287 = vperm.xlu2 %4076, %v4599_v47  }
 0x4b8   :  { %2299 = vperm.xlu1 %4078, %v4599_v47  }
 0x4ba   :  { %v2192_v0 = vpop.permute.xlu1 %2191 }
 0x4bb   :  { %v2359_v10 = vmul.f32 %v2192_v0, %v4796_v52  ;;  %v2264_v5 = vpop.permute.xlu0 %2263 }
 0x4bd   :  { %2427 = vrot.lane.b32.xlu0 %v2359_v10, %s4263_s13 }
 0x4bf   :  { %4079 = vset.pattern.permute.xlu2 %v4714_v12 }
 0x4c0   :  { %4080 = vset.pattern.permute.xlu1 %v4731_v20 }
 0x4c1   :  { %v5049_v28 = vpop.permute.xlu2 %2215 }
 0x4c3   :  { %v5061_v16 = vpop.permute.xlu0 %2293 }
 0x4c7   :  { %2305 = vperm.xlu2 %4079, %v4599_v47  }
 0x4c8   :  { %2311 = vperm.xlu1 %4080, %v4611_v48  }
 0x4ca   :  { %v2210_v0 = vpop.permute.xlu1 %2209 }
 0x4cb   :  { %v2362_v32 = vmul.f32 %v2210_v0, %v4796_v52  ;;  %v5065_v0 = vpop.permute.xlu0 %2323 }
 0x4cd   :  { %2433 = vrot.lane.b32.xlu0 %v2362_v32, %s4263_s13 }
 0x4cf   :  { %4081 = vset.pattern.permute.xlu2 %v4680_v56 }
 0x4d0   :  { %4083 = vset.pattern.permute.xlu1 %v4714_v12 }
 0x4d1   :  { %v2228_v10 = vpop.permute.xlu2 %2227 }
 0x4d2   :  { %v2365_v17 = vmul.f32 %v2228_v10, %v4814_v63  ;;  %v1589_v10 = vmul.f32 %v4786_v39, %v4511_v9 }
 0x4d5   :  { %2439 = vrot.lane.b32.xlu0 %v2365_v17, %s4263_s13  ;;  %v2371_v17 = vmul.f32 %v2264_v5, %v4830_v31 }
 0x4d7   :  { %2317 = vperm.xlu2 %4081, %v4611_v48  }
 0x4d8   :  { %2329 = vperm.xlu1 %4083, %v4611_v48   ;;  %v5072_v48 = vpop.permute.xlu0 %2353 }
 0x4da   :  { %v5086_v5 = vpop.permute.xlu1 %2221 }
 0x4df   :  { %4084 = vset.pattern.permute.xlu2 %v4731_v20 }
 0x4e0   :  { %4085 = vset.pattern.permute.xlu1 %v4680_v56  ;;  %v1587_v56 = vmul.f32 %v4775_v35, %v4511_v9  ;;  %v5080_v20 = vpop.permute.xlu0 %1659  ;;  %v1588_v35 = vmul.f32 %v4803_v44, %v4511_v9 }
 0x4e1   :  { %v2246_v32 = vpop.permute.xlu2 %2245 }
 0x4e2   :  { %v2368_v12 = vmul.f32 %v2246_v32, %v4823_v38 }
 0x4e4   :  { %2445 = vrot.lane.b32.xlu0 %v2368_v12, %s4263_s13  ;;  %v1595_v12 = vmul.f32 %v4805_v45, %v4814_v63 }
 0x4e7   :  { %2335 = vperm.xlu2 %4084, %v4551_v3  }
 0x4e8   :  { %2341 = vperm.xlu1 %4085, %v4551_v3   ;;  %v5092_v32 = vpop.permute.xlu0 %1665 }
 0x4ea   :  { %v5097_v39 = vpop.permute.xlu1 %2239 }
 0x4ec   :  { %2451 = vrot.lane.b32.xlu0 %v2371_v17, %s4263_s13  ;;  %v1593_v17 = vmul.f32 %v4812_v51, %v4796_v52 }
 0x4ef   :  { %4086 = vset.pattern.permute.xlu2 %v4697_v4  ;;  %v1592_v4 = vmul.f32 %v4794_v50, %v4796_v52 }
 0x4f0   :  { %1651 = vrot.lane.b32.xlu1 %v1587_v56, %s4261_s10  ;;  %v5104_v44 = vpop.permute.xlu0 %1671  ;;  %v1598_v56 = vmul.f32 %v4821_v59, %v4814_v63 }
 0x4f1   :  { %4088 = vset.pattern.permute.xlu1 %v4482_v60 }
 0x4f7   :  { %2347 = vperm.xlu2 %4086, %v4551_v3   ;;  %v1590_v3 = vmul.f32 %v4784_v37, %v4511_v9  ;;  %v5115_v37 = vpop.permute.xlu2 %2257 }
 0x4f8   :  { %1655 = vrot.lane.b32.xlu1 %v1589_v10, %s4261_s10  ;;  %v5117_v45 = vpop.permute.xlu0 %1677 }
 0x4f9   :  { %6317 = vst [vmem:[#allocation56_spill] sm:$0xff] %v5117_v45 }
 0x4fa   :  { %v5107_v50 = vpop.permute.xlu1 %2251 }
 0x4ff   :  { %1653 = vrot.lane.b32.xlu2 %v1588_v35, %s4261_s10  ;;  %v1596_v35 = vmul.f32 %v4836_v30, %v4814_v63  ;;  %v1604_v30 = vmul.f32 %v4850_v57, %v4830_v31 }
 0x500   :  { %1661 = vrot.lane.b32.xlu1 %v1592_v4, %s4261_s10  ;;  %4089 = vset.pattern.permute.xlu2 %v4526_v15  ;;  %v1601_v4 = vmul.f32 %v4844_v6, %v4823_v38 }
 0x501   :  { %v5127_v51 = vpop.permute.xlu2 %2275 }
 0x507   :  { %1657 = vrot.lane.b32.xlu2 %v1590_v3, %s4261_s10 }
 0x508   :  { %1667 = vrot.lane.b32.xlu1 %v1595_v12, %s4261_s10  ;;  %v5130_v12 = vpop.permute.xlu0 %1683 }
 0x50a   :  { %v5119_v10 = vpop.permute.xlu1 %2269 }
 0x50f   :  { %1663 = vrot.lane.b32.xlu2 %v1593_v17, %s4261_s10  ;;  %v1599_v17 = vmul.f32 %v4840_v40, %v4823_v38 }
 0x510   :  { %1673 = vrot.lane.b32.xlu1 %v1598_v56, %s4261_s10  ;;  %v5141_v56 = vpop.permute.xlu0 %1689 }
 0x511   :  { %v5139_v6 = vpop.permute.xlu2 %2287 }
 0x517   :  { %1669 = vrot.lane.b32.xlu2 %v1596_v35, %s4261_s10  ;;  %v1602_v35 = vmul.f32 %v4847_v41, %v4823_v38  ;;  %v1610_v41 = vmul.f32 %v4864_v36, %v4867_v14  ;;  %v1611_v36 = vmul.f32 %v4897_v43, %v4876_v1  ;;  %v1972_v43 = vmul.f32 %v4914_v7, %v4511_v9 }
 0x518   :  { %1679 = vrot.lane.b32.xlu1 %v1601_v4, %s4261_s10  ;;  %v1607_v4 = vmul.f32 %v4859_v25, %v4867_v14 }
 0x51a   :  { %v2282_v59 = vpop.permute.xlu1 %2281 }
 0x51b   :  { %v2374_v3 = vmul.f32 %v2282_v59, %v4830_v31 }
 0x51d   :  { %2457 = vrot.lane.b32.xlu0 %v2374_v3, %s4263_s13  ;;  %v5152_v3 = vpop.permute.xlu0 %1695 }
 0x51f   :  { %1675 = vrot.lane.b32.xlu2 %v1599_v17, %s4261_s10  ;;  %v1605_v17 = vmul.f32 %v4853_v2, %v4830_v31  ;;  %v1613_v2 = vmul.f32 %v4882_v62, %v4876_v1 }
 0x520   :  { %1685 = vrot.lane.b32.xlu1 %v1604_v30, %s4261_s10 }
 0x521   :  { %v5149_v40 = vpop.permute.xlu2 %2305 }
 0x527   :  { %1681 = vrot.lane.b32.xlu2 %v1602_v35, %s4261_s10  ;;  %v1608_v35 = vmul.f32 %v4873_v8, %v4867_v14 }
 0x528   :  { %1691 = vrot.lane.b32.xlu1 %v1607_v4, %s4261_s10  ;;  %v5167_v4 = vpop.permute.xlu0 %1701 }
 0x52a   :  { %v2300_v57 = vpop.permute.xlu1 %2299 }
 0x52b   :  { %v2377_v59 = vmul.f32 %v2300_v57, %v4867_v14  ;;  %v1616_v57 = vmul.f32 %v4905_v13, %v4885_v34  ;;  %v2386_v13 = vmul.f32 %v5072_v48, %v4885_v34 }
 0x52d   :  { %2463 = vrot.lane.b32.xlu0 %v2377_v59, %s4263_s13 }
 0x52f   :  { %1687 = vrot.lane.b32.xlu2 %v1605_v17, %s4261_s10  ;;  %v1614_v17 = vmul.f32 %v4901_v26, %v4876_v1  ;;  %v1975_v26 = vmul.f32 %v4918_v33, %v4796_v52  ;;  %v1978_v33 = vmul.f32 %v4930_v19, %v4796_v52 }
 0x530   :  { %1697 = vrot.lane.b32.xlu1 %v1610_v41, %s4261_s10  ;;  %v5176_v8 = vpop.permute.xlu0 %1707 }
 0x531   :  { %v2318_v25 = vpop.permute.xlu2 %2317 }
 0x532   :  { %v2380_v30 = vmul.f32 %v2318_v25, %v4876_v1 }
 0x535   :  { %2469 = vrot.lane.b32.xlu0 %v2380_v30, %s4263_s13  ;;  %v1617_v30 = vmul.f32 %v4908_v11, %v4885_v34  ;;  %v1973_v11 = vmul.f32 %v4924_v27, %v4511_v9  ;;  %v1981_v27 = vmul.f32 %v4953_v23, %v4814_v63 }
 0x537   :  { %1693 = vrot.lane.b32.xlu2 %v1608_v35, %s4261_s10 }
 0x538   :  { %1703 = vrot.lane.b32.xlu1 %v1613_v2, %s4261_s10  ;;  %v5189_v41 = vpop.permute.xlu0 %1713  ;;  %v5207_v2 = vperm.slane %v4634_v53, 3 }
 0x53a   :  { %v5191_v25 = vpop.permute.xlu1 %2311  ;;  %6319 = vst [vmem:[#allocation58_spill] sm:$0xff] %v5207_v2 }
 0x53f   :  { %1699 = vrot.lane.b32.xlu2 %v1611_v36, %s4261_s10 }
 0x540   :  { %1709 = vrot.lane.b32.xlu1 %v1616_v57, %s4261_s10  ;;  %v5202_v35 = vpop.permute.xlu0 %2035 }
 0x541   :  { %v2336_v59 = vpop.permute.xlu2 %2335  ;;  %6318 = vst [vmem:[#allocation57_spill] sm:$0xff] %v5202_v35 }
 0x542   :  { %v2383_v62 = vmul.f32 %v2336_v59, %v4885_v34 }
 0x544   :  { %2475 = vrot.lane.b32.xlu0 %v2383_v62, %s4263_s13  ;;  %v1976_v62 = vmul.f32 %v4945_v21, %v4796_v52  ;;  %v1984_v21 = vmul.f32 %v4959_v29, %v4823_v38 }
 0x547   :  { %1705 = vrot.lane.b32.xlu2 %v1614_v17, %s4261_s10 }
 0x548   :  { %2037 = vrot.lane.b32.xlu1 %v1972_v43, %s4262_s12  ;;  %v5218_v57 = vpop.permute.xlu0 %2041 }
 0x549   :  { %6320 = vst [vmem:[#allocation59_spill] sm:$0xff] %v5218_v57 }
 0x54a   :  { %v5204_v48 = vpop.permute.xlu1 %2329 }
 0x54c   :  { %2481 = vrot.lane.b32.xlu0 %v2386_v13, %s4263_s13  ;;  %v1979_v13 = vmul.f32 %v4949_v22, %v4814_v63  ;;  %v1987_v22 = vmul.f32 %v4968_v61, %v4830_v31 }
 0x54f   :  { %1711 = vrot.lane.b32.xlu2 %v1617_v30, %s4261_s10 }
 0x550   :  { %2043 = vrot.lane.b32.xlu1 %v1975_v26, %s4262_s12  ;;  %v5233_v43 = vpop.permute.xlu0 %2047  ;;  %v5247_v26 = vperm.slane %v4634_v53, 4 }
 0x551   :  { %v5200_v7 = vpop.permute.xlu2 %2347  ;;  %6323 = vst [vmem:[#allocation62_spill] sm:$0xff] %v5233_v43 }
 0x552   :  { %6325 = vst [vmem:[#allocation64_spill] sm:$0xff] %v5247_v26 }
 0x554   :  { %2638 = vperm.xlu0 %4098, %v5207_v2  }
 0x557   :  { %2039 = vrot.lane.b32.xlu2 %v1973_v11, %s4262_s12 }
 0x558   :  { %2049 = vrot.lane.b32.xlu1 %v1978_v33, %s4262_s12  ;;  %v5254_v29 = vpop.permute.xlu0 %2053 }
 0x559   :  { %v5216_v36 = vpop.permute.xlu2 %1653  ;;  %6326 = vst [vmem:[#allocation65_spill] sm:$0xff] %v5254_v29  ;;  %v5305_v29 = vperm.slane %v4634_v53, 5 }
 0x55a   :  { %v5220_v59 = vpop.permute.xlu1 %2341 }
 0x55b   :  { %6333 = vst [vmem:[#allocation68_spill] sm:$0xff] %v5305_v29 }
 0x55c   :  { %4099 = vset.pattern.permute.xlu0 %v4526_v15 }
 0x55f   :  { %2045 = vrot.lane.b32.xlu2 %v1976_v62, %s4262_s12  ;;  %v1985_v62 = vmul.f32 %v4962_v54, %v4823_v38  ;;  %v1993_v54 = vmul.f32 %v4984_v58, %v4867_v14  ;;  %v6330_v58 = vld [vmem:[#allocation44_spill] sm:$0xff] }
 0x560   :  { %2055 = vrot.lane.b32.xlu1 %v1981_v27, %s4262_s12  ;;  %v5268_v61 = vpop.permute.xlu0 %2059 }
 0x561   :  { %v5229_v19 = vpop.permute.xlu2 %1657 }
 0x562   :  { %6321 = vst [vmem:[#allocation60_spill] sm:$0xff] %v5229_v19  ;;  %v5231_v17 = vpop.permute.xlu1 %1651 }
 0x563   :  { %6322 = vst [vmem:[#allocation61_spill] sm:$0xff] %v5231_v17 }
 0x564   :  { %1225 = vperm.xlu0 %4099, %v4569_v42   ;;  %v1982_v42 = vmul.f32 %v4956_v24, %v4814_v63  ;;  %v1990_v24 = vmul.f32 %v4972_v18, %v4830_v31 }
 0x567   :  { %2051 = vrot.lane.b32.xlu2 %v1979_v13, %s4262_s12 }
 0x568   :  { %2061 = vrot.lane.b32.xlu1 %v1984_v21, %s4262_s12  ;;  %v1988_v21 = vmul.f32 %v4978_v49, %v4830_v31  ;;  %v5281_v18 = vpop.permute.xlu0 %2065 }
 0x569   :  { %v5242_v23 = vpop.permute.xlu2 %1663 }
 0x56a   :  { %6324 = vst [vmem:[#allocation63_spill] sm:$0xff] %v5242_v23  ;;  %v5244_v30 = vpop.permute.xlu1 %1655  ;;  %v6343_v23 = vld [vmem:[#allocation47_spill] sm:$0xff] }
 0x56b   :  { %v2000_v35 = vmul.f32 %v6343_v23, %v4885_v34  ;;  %v6348_v23 = vld [vmem:[#allocation50_spill] sm:$0xff] }
 0x56c   :  { %2669 = vperm.xlu0 %4099, %v5247_v26   ;;  %v2357_v2 = vmul.f32 %v6348_v23, %v4511_v9  ;;  %v6353_v23 = vld [vmem:[#allocation53_spill] sm:$0xff] }
 0x56f   :  { %2057 = vrot.lane.b32.xlu2 %v1982_v42, %s4262_s12 }
 0x570   :  { %2067 = vrot.lane.b32.xlu1 %v1987_v22, %s4262_s12 }
 0x571   :  { %v5258_v11 = vpop.permute.xlu2 %1669 }
 0x572   :  { %6327 = vst [vmem:[#allocation66_spill] sm:$0xff] %v5258_v11  ;;  %v5260_v33 = vpop.permute.xlu1 %1661 }
 0x574   :  { %4104 = vset.pattern.permute.xlu0 %v4487_v55 }
 0x577   :  { %2063 = vrot.lane.b32.xlu2 %v1985_v62, %s4262_s12  ;;  %v5289_v62 = vperm.slane %v4634_v53, 0 }
 0x578   :  { %2073 = vrot.lane.b32.xlu1 %v1990_v24, %s4262_s12  ;;  %v1996_v24 = vmul.f32 %v6330_v58, %v4876_v1  ;;  %v6335_v58 = vld [vmem:[#allocation45_spill] sm:$0xff] }
 0x579   :  { %v5271_v27 = vpop.permute.xlu2 %1675  ;;  %v1999_v57 = vmul.f32 %v6335_v58, %v4885_v34 }
 0x57a   :  { %v5273_v13 = vpop.permute.xlu1 %1667 }
 0x57c   :  { %1256 = vperm.xlu0 %4104, %v4590_v46   ;;  %v6329_v46 = vld [vmem:[#allocation42_spill] sm:$0xff] }
 0x57d   :  { %v1991_v49 = vmul.f32 %v6329_v46, %v4867_v14  ;;  %v6334_v46 = vld [vmem:[#allocation43_spill] sm:$0xff] }
 0x57e   :  { %v1994_v11 = vmul.f32 %v6334_v46, %v4867_v14  ;;  %v6340_v46 = vld [vmem:[#allocation48_spill] sm:$0xff] }
 0x57f   :  { %2069 = vrot.lane.b32.xlu2 %v1988_v21, %s4262_s12  ;;  %v5297_v21 = vpop.permute.xlu0 %2071  ;;  %v2002_v19 = vmul.f32 %v6340_v46, %v4885_v34  ;;  %v5345_v46 = vperm.slane %v4634_v53, 1 }
 0x580   :  { %2079 = vrot.lane.b32.xlu1 %v1993_v54, %s4262_s12  ;;  %6331 = vst [vmem:[#allocation42_spill] sm:$0xff] %v5297_v21 }
 0x581   :  { %v5284_v42 = vpop.permute.xlu2 %1681 }
 0x582   :  { %v5286_v22 = vpop.permute.xlu1 %1673 }
 0x583   :  { %6328 = vst [vmem:[#allocation67_spill] sm:$0xff] %v5286_v22 }
 0x584   :  { %2575 = vperm.xlu0 %4104, %v5289_v62  }
 0x587   :  { %2075 = vrot.lane.b32.xlu2 %v1991_v49, %s4262_s12 }
 0x588   :  { %2085 = vrot.lane.b32.xlu1 %v1996_v24, %s4262_s12  ;;  %v5316_v24 = vpop.permute.xlu0 %2077 }
 0x589   :  { %v5300_v54 = vpop.permute.xlu2 %1687  ;;  %6337 = vst [vmem:[#allocation45_spill] sm:$0xff] %v5316_v24 }
 0x58a   :  { %6332 = vst [vmem:[#allocation44_spill] sm:$0xff] %v5300_v54  ;;  %v5302_v45 = vpop.permute.xlu1 %1679  ;;  %v6338_v54 = vld [vmem:[#allocation12_spill] sm:$0xff] }
 0x58c   :  { %2700 = vperm.xlu0 %4104, %v5305_v29   ;;  %v6339_v29 = vld [vmem:[#allocation46_spill] sm:$0xff] }
 0x58d   :  { %v1997_v43 = vmul.f32 %v6339_v29, %v4876_v1  ;;  %v6344_v29 = vld [vmem:[#allocation49_spill] sm:$0xff] }
 0x58e   :  { %v2355_v17 = vmul.f32 %v6344_v29, %v4511_v9 }
 0x58f   :  { %2081 = vrot.lane.b32.xlu2 %v1994_v11, %s4262_s12 }
 0x590   :  { %2091 = vrot.lane.b32.xlu1 %v1999_v57, %s4262_s12  ;;  %v5331_v58 = vpop.permute.xlu0 %2083 }
 0x591   :  { %v5314_v49 = vpop.permute.xlu2 %1693  ;;  %6342 = vst [vmem:[#allocation46_spill] sm:$0xff] %v5331_v58  ;;  %v2360_v58 = vmul.f32 %v6353_v23, %v4796_v52 }
 0x592   :  { %6336 = vst [vmem:[#allocation43_spill] sm:$0xff] %v5314_v49  ;;  %v5318_v21 = vpop.permute.xlu1 %1685  ;;  %v6359_v49 = vld [vmem:[#allocation13_spill] sm:$0xff] }
 0x594   :  { %4109 = vset.pattern.permute.xlu0 %v6338_v54 }
 0x597   :  { %2087 = vrot.lane.b32.xlu2 %v1997_v43, %s4262_s12 }
 0x598   :  { %2097 = vrot.lane.b32.xlu1 %v2002_v19, %s4262_s12  ;;  %v5352_v29 = vpop.permute.xlu0 %2089 }
 0x599   :  { %v5327_v11 = vpop.permute.xlu2 %1699  ;;  %6349 = vst [vmem:[#allocation49_spill] sm:$0xff] %v5352_v29 }
 0x59a   :  { %6341 = vst [vmem:[#allocation12_spill] sm:$0xff] %v5327_v11  ;;  %v5329_v57 = vpop.permute.xlu1 %1691 }
 0x59c   :  { %1287 = vperm.xlu0 %4109, %v4599_v47   ;;  %v6347_v47 = vld [vmem:[#allocation52_spill] sm:$0xff] }
 0x59d   :  { %v2356_v26 = vmul.f32 %v6347_v47, %v4511_v9  ;;  %v6352_v47 = vld [vmem:[#allocation51_spill] sm:$0xff] }
 0x59f   :  { %2093 = vrot.lane.b32.xlu2 %v2000_v35, %s4262_s12 }
 0x5a0   :  { %2419 = vrot.lane.b32.xlu1 %v2355_v17, %s4263_s13  ;;  %v5368_v29 = vpop.permute.xlu0 %2095 }
 0x5a1   :  { %v5340_v43 = vpop.permute.xlu2 %1705  ;;  %6354 = vst [vmem:[#allocation51_spill] sm:$0xff] %v5368_v29  ;;  %v6357_v29 = vld [vmem:[#allocation55_spill] sm:$0xff] }
 0x5a2   :  { %6345 = vst [vmem:[#allocation48_spill] sm:$0xff] %v5340_v43  ;;  %v5342_v19 = vpop.permute.xlu1 %1697  ;;  %v2358_v43 = vmul.f32 %v6352_v47, %v4511_v9  ;;  %v2366_v24 = vmul.f32 %v6357_v29, %v4814_v63  ;;  %v2369_v29 = vmul.f32 %v5107_v50, %v4823_v38  ;;  %v6363_v50 = vld [vmem:[#allocation24_spill] sm:$0xff] }
 0x5a3   :  { %6346 = vst [vmem:[#allocation47_spill] sm:$0xff] %v5342_v19  ;;  %v5361_v19 = vperm.slane %v4634_v53, 6 }
 0x5a4   :  { %2606 = vperm.xlu0 %4109, %v5345_v46  }
 0x5a5   :  { %6351 = vst [vmem:[#allocation50_spill] sm:$0xff] %v5361_v19 }
 0x5a7   :  { %2421 = vrot.lane.b32.xlu2 %v2356_v26, %s4263_s13 }
 0x5a8   :  { %2423 = vrot.lane.b32.xlu1 %v2357_v2, %s4263_s13  ;;  %v5380_v47 = vpop.permute.xlu0 %2427 }
 0x5a9   :  { %v5356_v35 = vpop.permute.xlu2 %1711  ;;  %6356 = vst [vmem:[#allocation53_spill] sm:$0xff] %v5380_v47 }
 0x5aa   :  { %6350 = vst [vmem:[#allocation52_spill] sm:$0xff] %v5356_v35  ;;  %v5358_v17 = vpop.permute.xlu1 %1703  ;;  %v6355_v35 = vld [vmem:[#allocation54_spill] sm:$0xff] }
 0x5ab   :  { %v2361_v11 = vmul.f32 %v6355_v35, %v4796_v52 }
 0x5ac   :  { %2731 = vperm.xlu0 %4109, %v5361_v19   ;;  %v2363_v19 = vmul.f32 %v5049_v28, %v4814_v63  ;;  %v1367_v28 = vmul.f32 %v4796_v52, %v6359_v49 }
 0x5af   :  { %2425 = vrot.lane.b32.xlu2 %v2358_v43, %s4263_s13 }
 0x5b0   :  { %2429 = vrot.lane.b32.xlu1 %v2360_v58, %s4263_s13  ;;  %v2364_v58 = vmul.f32 %v5086_v5, %v4814_v63  ;;  %v5392_v35 = vpop.permute.xlu0 %2433  ;;  %v2367_v5 = vmul.f32 %v5097_v39, %v4823_v38  ;;  %v2370_v39 = vmul.f32 %v5115_v37, %v4823_v38 }
 0x5b1   :  { %v5372_v2 = vpop.permute.xlu2 %2039  ;;  %6358 = vst [vmem:[#allocation54_spill] sm:$0xff] %v5392_v35  ;;  %v6360_v35 = vld [vmem:[#allocation17_spill] sm:$0xff] }
 0x5b2   :  { %v5374_v26 = vpop.permute.xlu1 %1709  ;;  %v1370_v49 = vmul.f32 %v4796_v52, %v6360_v35  ;;  %v2372_v35 = vmul.f32 %v5119_v10, %v4830_v31  ;;  %v2373_v10 = vmul.f32 %v5127_v51, %v4830_v31  ;;  %v2376_v51 = vmul.f32 %v5061_v16, %v4867_v14 }
 0x5b7   :  { %2431 = vrot.lane.b32.xlu2 %v2361_v11, %s4263_s13  ;;  %v1751_v11 = vadd.f32 %v5080_v20, %v1367_v28  ;;  %v1754_v20 = vadd.f32 %v5092_v32, %v1370_v49 }
 0x5b8   :  { %2435 = vrot.lane.b32.xlu1 %v2363_v19, %s4263_s13 }
 0x5b9   :  { %v5384_v23 = vpop.permute.xlu2 %2045 }
 0x5ba   :  { %v5386_v43 = vpop.permute.xlu1 %2037 }
 0x5bf   :  { %2437 = vrot.lane.b32.xlu2 %v2364_v58, %s4263_s13  ;;  %v5410_v58 = vpop.permute.xlu0 %2439 }
 0x5c0   :  { %2441 = vrot.lane.b32.xlu1 %v2366_v24, %s4263_s13  ;;  %6361 = vst [vmem:[#allocation55_spill] sm:$0xff] %v5410_v58 }
 0x5c1   :  { %v5399_v19 = vpop.permute.xlu2 %2051 }
 0x5c2   :  { %v2044_v47 = vpop.permute.xlu1 %2043 }
 0x5c3   :  { %v5401_v22 = vadd.f32 %v2044_v47, %v1751_v11  ;;  %v1377_v11 = vmul.f32 %v4823_v38, %v6363_v50 }
 0x5c7   :  { %2443 = vrot.lane.b32.xlu2 %v2367_v5, %s4263_s13  ;;  %v6364_v5 = vld [vmem:[#allocation19_spill] sm:$0xff]  ;;  %v5427_v32 = vpop.permute.xlu0 %2445 }
 0x5c8   :  { %2447 = vrot.lane.b32.xlu1 %v2369_v29, %s4263_s13  ;;  %v1373_v58 = vmul.f32 %v4814_v63, %v6364_v5  ;;  %v1761_v29 = vadd.f32 %v5302_v45, %v1377_v11  ;;  %v6365_v5 = vld [vmem:[#allocation25_spill] sm:$0xff] }
 0x5c9   :  { %v5414_v24 = vpop.permute.xlu2 %2057 }
 0x5ca   :  { %v2050_v47 = vpop.permute.xlu1 %2049  ;;  %v1757_v49 = vadd.f32 %v5104_v44, %v1373_v58 }
 0x5cb   :  { %v5416_v28 = vadd.f32 %v2050_v47, %v1754_v20 }
 0x5cd   :  { %6362 = vst [vmem:[#allocation13_spill] sm:$0xff] %v5416_v28  ;;  %v2375_v28 = vmul.f32 %v5139_v6, %v4867_v14  ;;  %v2378_v6 = vmul.f32 %v5149_v40, %v4867_v14  ;;  %v2379_v40 = vmul.f32 %v5191_v25, %v4876_v1  ;;  %v2382_v25 = vmul.f32 %v5204_v48, %v4876_v1 }
 0x5cf   :  { %2449 = vrot.lane.b32.xlu2 %v2370_v39, %s4263_s13  ;;  %v1380_v39 = vmul.f32 %v4830_v31, %v6365_v5  ;;  %v5445_v58 = vpop.permute.xlu0 %2451 }
 0x5d0   :  { %2453 = vrot.lane.b32.xlu1 %v2372_v35, %s4263_s13 }
 0x5d1   :  { %v2064_v37 = vpop.permute.xlu2 %2063  ;;  %v1764_v45 = vadd.f32 %v5318_v21, %v1380_v39 }
 0x5d2   :  { %v5432_v20 = vadd.f32 %v2064_v37, %v1761_v29  ;;  %v2056_v47 = vpop.permute.xlu1 %2055  ;;  %v6366_v29 = vld [vmem:[#allocation27_spill] sm:$0xff]  ;;  %v6367_v37 = vld [vmem:[#allocation26_spill] sm:$0xff] }
 0x5d3   :  { %v5434_v50 = vadd.f32 %v2056_v47, %v1757_v49  ;;  %v1383_v49 = vmul.f32 %v4867_v14, %v6366_v29  ;;  %v1379_v21 = vmul.f32 %v4830_v31, %v6367_v37 }
 0x5d5   :  { %v1763_v47 = vadd.f32 %v5130_v12, %v1379_v21 }
 0x5d7   :  { %2455 = vrot.lane.b32.xlu2 %v2373_v10, %s4263_s13  ;;  %v5463_v5 = vpop.permute.xlu0 %2457 }
 0x5d8   :  { %2459 = vrot.lane.b32.xlu1 %v2375_v28, %s4263_s13  ;;  %v1767_v28 = vadd.f32 %v5329_v57, %v1383_v49 }
 0x5d9   :  { %v2070_v44 = vpop.permute.xlu2 %2069 }
 0x5da   :  { %v5447_v11 = vpop.permute.xlu1 %2061  ;;  %v5449_v35 = vadd.f32 %v2070_v44, %v1764_v45  ;;  %v2381_v44 = vmul.f32 %v5065_v0, %v4876_v1  ;;  %v6369_v0 = vld [vmem:[#allocation34_spill] sm:$0xff] }
 0x5db   :  { %v1389_v21 = vmul.f32 %v4876_v1, %v6369_v0 }
 0x5df   :  { %2461 = vrot.lane.b32.xlu2 %v2376_v51, %s4263_s13  ;;  %v6368_v51 = vld [vmem:[#allocation28_spill] sm:$0xff]  ;;  %v5480_v49 = vpop.permute.xlu0 %2463 }
 0x5e0   :  { %2465 = vrot.lane.b32.xlu1 %v2378_v6, %s4263_s13  ;;  %v1382_v57 = vmul.f32 %v4830_v31, %v6368_v51 }
 0x5e1   :  { %v2076_v10 = vpop.permute.xlu2 %2075 }
 0x5e2   :  { %v2068_v16 = vpop.permute.xlu1 %2067  ;;  %v5465_v39 = vadd.f32 %v2076_v10, %v1767_v28  ;;  %v1766_v12 = vadd.f32 %v5141_v56, %v1382_v57  ;;  %v2384_v28 = vmul.f32 %v5220_v59, %v4885_v34  ;;  %v1773_v56 = vadd.f32 %v5358_v17, %v1389_v21 }
 0x5e3   :  { %v5467_v45 = vadd.f32 %v2068_v16, %v1763_v47  ;;  %v6370_v47 = vld [vmem:[#allocation29_spill] sm:$0xff]  ;;  %v2385_v59 = vmul.f32 %v5200_v7, %v4885_v34  ;;  %v6373_v7 = vld [vmem:[#allocation38_spill] sm:$0xff] }
 0x5e4   :  { %v1385_v10 = vmul.f32 %v4867_v14, %v6370_v47 }
 0x5e6   :  { %v1769_v16 = vadd.f32 %v5152_v3, %v1385_v10 }
 0x5e7   :  { %2467 = vrot.lane.b32.xlu2 %v2379_v40, %s4263_s13  ;;  %v2470_v57 = vpop.permute.xlu0 %2469 }
 0x5e8   :  { %2471 = vrot.lane.b32.xlu1 %v2381_v44, %s4263_s13 }
 0x5e9   :  { %v5478_v29 = vpop.permute.xlu2 %2081 }
 0x5ea   :  { %v2074_v6 = vpop.permute.xlu1 %2073 }
 0x5eb   :  { %v5482_v37 = vadd.f32 %v2074_v6, %v1766_v12  ;;  %v6371_v12 = vld [vmem:[#allocation37_spill] sm:$0xff] }
 0x5ec   :  { %v1392_v6 = vmul.f32 %v4885_v34, %v6371_v12 }
 0x5ee   :  { %v1776_v3 = vadd.f32 %v5374_v26, %v1392_v6 }
 0x5ef   :  { %2473 = vrot.lane.b32.xlu2 %v2382_v25, %s4263_s13  ;;  %v6372_v25 = vld [vmem:[#allocation31_spill] sm:$0xff] }
 0x5f0   :  { %2477 = vrot.lane.b32.xlu1 %v2384_v28, %s4263_s13  ;;  %v1388_v17 = vmul.f32 %v4876_v1, %v6372_v25 }
 0x5f1   :  { %v2088_v40 = vpop.permute.xlu2 %2087 }
 0x5f2   :  { %v5496_v44 = vadd.f32 %v2088_v40, %v1773_v56  ;;  %v2080_v48 = vpop.permute.xlu1 %2079  ;;  %v1772_v0 = vadd.f32 %v5167_v4, %v1388_v17  ;;  %v1364_v56 = vmul.f32 %v6373_v7, %v4511_v9 }
 0x5f3   :  { %v5498_v51 = vadd.f32 %v2080_v48, %v1769_v16  ;;  %v5514_v16 = vpop.permute.xlu0 %2475 }
 0x5f4   :  { %6374 = vst [vmem:[#allocation17_spill] sm:$0xff] %v5514_v16  ;;  %v1748_v48 = vadd.f32 %v5216_v36, %v1364_v56 }
 0x5f6   :  { %v2132_v4 = vadd.f32 %v5386_v43, %v1748_v48 }
 0x5f7   :  { %2479 = vrot.lane.b32.xlu2 %v2385_v59, %s4263_s13  ;;  %v6375_v59 = vld [vmem:[#allocation41_spill] sm:$0xff] }
 0x5f8   :  { %2563 = vperm.xlu1 %4088, %v5289_v62   ;;  %v1391_v26 = vmul.f32 %v4885_v34, %v6375_v59 }
 0x5f9   :  { %v2094_v21 = vpop.permute.xlu2 %2093 }
 0x5fa   :  { %v5510_v28 = vadd.f32 %v2094_v21, %v1776_v3  ;;  %v2086_v47 = vpop.permute.xlu1 %2085  ;;  %v1775_v12 = vadd.f32 %v5176_v8, %v1391_v26 }
 0x5fb   :  { %v2156_v10 = vadd.f32 %v2086_v47, %v1772_v0  ;;  %v6377_v0 = vld [vmem:[#allocation39_spill] sm:$0xff] }
 0x5fc   :  { %v1394_v36 = vmul.f32 %v4885_v34, %v6377_v0 }
 0x5fd   :  { %v5516_v40 = vadd.f32 %v2470_v57, %v2156_v10  ;;  %v2482_v57 = vpop.permute.xlu0 %2481 }
 0x5fe   :  { %v1778_v43 = vadd.f32 %v5189_v41, %v1394_v36 }
 0x5ff   :  { %2569 = vperm.xlu2 %4089, %v5289_v62  }
 0x600   :  { %4090 = vset.pattern.permute.xlu1 %v6338_v54 }
 0x601   :  { %v2422_v6 = vpop.permute.xlu2 %2421 }
 0x602   :  { %v2092_v25 = vpop.permute.xlu1 %2091  ;;  %v5525_v17 = vadd.f32 %v2422_v6, %v2132_v4  ;;  %v6380_v6 = vld [vmem:[#allocation21_spill] sm:$0xff] }
 0x603   :  { %v5527_v3 = vadd.f32 %v2092_v25, %v1775_v12  ;;  %v1375_v25 = vmul.f32 %v4823_v38, %v6380_v6 }
 0x605   :  { %6376 = vst [vmem:[#allocation24_spill] sm:$0xff] %v5527_v3  ;;  %v5539_v7 = vpop.permute.xlu0 %2638  ;;  %v1759_v36 = vadd.f32 %v5271_v27, %v1375_v25 }
 0x607   :  { %4091 = vset.pattern.permute.xlu2 %v4482_v60 }
 0x608   :  { %2581 = vperm.xlu1 %4090, %v5289_v62   ;;  %v6379_v62 = vld [vmem:[#allocation14_spill] sm:$0xff] }
 0x609   :  { %v5534_v21 = vpop.permute.xlu2 %2425  ;;  %v1365_v59 = vmul.f32 %v6379_v62, %v4511_v9 }
 0x60a   :  { %v2098_v47 = vpop.permute.xlu1 %2097 }
 0x60b   :  { %v2162_v8 = vadd.f32 %v2098_v47, %v1778_v43  ;;  %v1749_v41 = vadd.f32 %v5244_v30, %v1365_v59  ;;  %v6381_v43 = vld [vmem:[#allocation15_spill] sm:$0xff] }
 0x60c   :  { %v1368_v30 = vmul.f32 %v4796_v52, %v6381_v43  ;;  %v6382_v59 = vld [vmem:[#allocation23_spill] sm:$0xff] }
 0x60d   :  { %v5536_v10 = vadd.f32 %v2482_v57, %v2162_v8  ;;  %v5550_v26 = vpop.permute.xlu0 %1225  ;;  %v2133_v4 = vadd.f32 %v5372_v2, %v1749_v41  ;;  %v2143_v2 = vadd.f32 %v5268_v61, %v1759_v36  ;;  %v1378_v41 = vmul.f32 %v4823_v38, %v6382_v59 }
 0x60e   :  { %v1752_v47 = vadd.f32 %v5260_v33, %v1368_v30  ;;  %v2608_v61 = vperm.slane %v4634_v53, 2 }
 0x60f   :  { %6378 = vst [vmem:[#allocation19_spill] sm:$0xff] %v5536_v10  ;;  %2588 = vperm.xlu2 %4091, %v5345_v46   ;;  %v1762_v33 = vadd.f32 %v5284_v42, %v1378_v41  ;;  %v6385_v41 = vld [vmem:[#allocation67_spill] sm:$0xff] }
 0x610   :  { %4092 = vset.pattern.permute.xlu1 %v4526_v15  ;;  %v2136_v8 = vadd.f32 %v5384_v23, %v1752_v47 }
 0x611   :  { %v5542_v56 = vpop.permute.xlu2 %2431  ;;  %v2146_v36 = vadd.f32 %v5281_v18, %v1762_v33 }
 0x612   :  { %v5544_v48 = vpop.permute.xlu1 %2419 }
 0x617   :  { %4093 = vset.pattern.permute.xlu2 %v4487_v55 }
 0x618   :  { %2594 = vperm.xlu1 %4092, %v5345_v46  }
 0x619   :  { %v5554_v12 = vpop.permute.xlu2 %2437 }
 0x61a   :  { %v2424_v57 = vpop.permute.xlu1 %2423 }
 0x61b   :  { %v5558_v0 = vadd.f32 %v2424_v57, %v2133_v4  ;;  %v5570_v4 = vpop.permute.xlu0 %2669 }
 0x61f   :  { %2600 = vperm.xlu2 %4093, %v5345_v46   ;;  %v6383_v46 = vld [vmem:[#allocation40_spill] sm:$0xff] }
 0x620   :  { %4094 = vset.pattern.permute.xlu1 %v4482_v60  ;;  %v1371_v57 = vmul.f32 %v4814_v63, %v6383_v46 }
 0x621   :  { %v2444_v62 = vpop.permute.xlu2 %2443 }
 0x622   :  { %v2430_v27 = vpop.permute.xlu1 %2429  ;;  %v5572_v6 = vadd.f32 %v2444_v62, %v2143_v2  ;;  %v1755_v23 = vadd.f32 %v5273_v13, %v1371_v57  ;;  %v6384_v62 = vld [vmem:[#allocation22_spill] sm:$0xff] }
 0x623   :  { %v5574_v25 = vadd.f32 %v2430_v27, %v2136_v8  ;;  %v5584_v47 = vpop.permute.xlu0 %1256  ;;  %v1374_v59 = vmul.f32 %v4814_v63, %v6384_v62 }
 0x624   :  { %v2139_v43 = vadd.f32 %v5399_v19, %v1755_v23  ;;  %v6386_v19 = vld [vmem:[#allocation30_spill] sm:$0xff]  ;;  %v6387_v23 = vld [vmem:[#allocation43_spill] sm:$0xff] }
 0x625   :  { %v1758_v13 = vadd.f32 %v6385_v41, %v1374_v59  ;;  %v1384_v33 = vmul.f32 %v4867_v14, %v6386_v19  ;;  %v6389_v59 = vld [vmem:[#allocation32_spill] sm:$0xff] }
 0x627   :  { %4095 = vset.pattern.permute.xlu2 %v4526_v15  ;;  %v2142_v18 = vadd.f32 %v5414_v24, %v1758_v13  ;;  %v1387_v24 = vmul.f32 %v4876_v1, %v6389_v59 }
 0x628   :  { %2613 = vperm.xlu1 %4094, %v2608_v61  }
 0x629   :  { %v2450_v30 = vpop.permute.xlu2 %2449 }
 0x62a   :  { %v2436_v2 = vpop.permute.xlu1 %2435  ;;  %v5586_v8 = vadd.f32 %v2450_v30, %v2146_v36  ;;  %v1768_v36 = vadd.f32 %v6387_v23, %v1384_v33  ;;  %v6388_v30 = vld [vmem:[#allocation45_spill] sm:$0xff]  ;;  %v6392_v23 = vld [vmem:[#allocation46_spill] sm:$0xff] }
 0x62b   :  { %v5588_v42 = vadd.f32 %v2436_v2, %v2139_v43  ;;  %v5602_v43 = vpop.permute.xlu0 %2575 }
 0x62c   :  { %v2152_v2 = vadd.f32 %v6388_v30, %v1768_v36  ;;  %v6393_v30 = vld [vmem:[#allocation33_spill] sm:$0xff] }
 0x62d   :  { %v1390_v16 = vmul.f32 %v4876_v1, %v6393_v30 }
 0x62f   :  { %2619 = vperm.xlu2 %4095, %v2608_v61  }
 0x630   :  { %4096 = vset.pattern.permute.xlu1 %v4487_v55 }
 0x631   :  { %v5595_v27 = vpop.permute.xlu2 %2455 }
 0x632   :  { %v2442_v46 = vpop.permute.xlu1 %2441 }
 0x633   :  { %v5599_v57 = vadd.f32 %v2442_v46, %v2142_v18  ;;  %v6390_v18 = vld [vmem:[#allocation12_spill] sm:$0xff]  ;;  %v5614_v33 = vpop.permute.xlu0 %2700 }
 0x634   :  { %v1771_v46 = vadd.f32 %v6390_v18, %v1387_v24  ;;  %6391 = vst [vmem:[#allocation25_spill] sm:$0xff] %v5614_v33  ;;  %v6397_v33 = vld [vmem:[#allocation36_spill] sm:$0xff] }
 0x635   :  { %v1393_v1 = vmul.f32 %v4885_v34, %v6397_v33 }
 0x636   :  { %v2155_v10 = vadd.f32 %v6392_v23, %v1771_v46 }
 0x637   :  { %4097 = vset.pattern.permute.xlu2 %v6338_v54 }
 0x638   :  { %2625 = vperm.xlu1 %4096, %v2608_v61  }
 0x639   :  { %v2462_v62 = vpop.permute.xlu2 %2461 }
 0x63a   :  { %v2448_v41 = vpop.permute.xlu1 %2447  ;;  %v5608_v13 = vadd.f32 %v2462_v62, %v2152_v2 }
 0x63b   :  { %v5611_v19 = vadd.f32 %v2448_v41, %v5432_v20  ;;  %v6394_v20 = vld [vmem:[#allocation48_spill] sm:$0xff]  ;;  %v1288_v24 = vpop.permute.xlu0 %1287  ;;  %v6396_v41 = vld [vmem:[#allocation49_spill] sm:$0xff] }
 0x63c   :  { %v1774_v62 = vadd.f32 %v6394_v20, %v1390_v16  ;;  %v1386_v46 = vmul.f32 %v4867_v14, %v1288_v24  ;;  %v6398_v16 = vld [vmem:[#allocation52_spill] sm:$0xff] }
 0x63d   :  { %v1777_v30 = vadd.f32 %v6398_v16, %v1393_v1 }
 0x63e   :  { %v2158_v18 = vadd.f32 %v6396_v41, %v1774_v62  ;;  %v6400_v62 = vld [vmem:[#allocation51_spill] sm:$0xff] }
 0x63f   :  { %2631 = vperm.xlu2 %4097, %v2608_v61   ;;  %v6395_v61 = vld [vmem:[#allocation58_spill] sm:$0xff]  ;;  %v2161_v14 = vadd.f32 %v6400_v62, %v1777_v30 }
 0x640   :  { %4100 = vset.pattern.permute.xlu1 %v4526_v15 }
 0x641   :  { %v2468_v36 = vpop.permute.xlu2 %2467 }
 0x642   :  { %v2454_v59 = vpop.permute.xlu1 %2453  ;;  %v5620_v3 = vadd.f32 %v2468_v36, %v2155_v10 }
 0x643   :  { %v5623_v2 = vadd.f32 %v2454_v59, %v5449_v35  ;;  %v6399_v59 = vld [vmem:[#allocation47_spill] sm:$0xff] }
 0x644   :  { %v1770_v20 = vadd.f32 %v6399_v59, %v1386_v46  ;;  %v6405_v59 = vld [vmem:[#allocation64_spill] sm:$0xff] }
 0x646   :  { %v2154_v24 = vadd.f32 %v5478_v29, %v1770_v20 }
 0x647   :  { %4101 = vset.pattern.permute.xlu2 %v4487_v55 }
 0x648   :  { %2644 = vperm.xlu1 %4100, %v6395_v61  }
 0x649   :  { %v2474_v23 = vpop.permute.xlu2 %2473 }
 0x64a   :  { %v2460_v10 = vpop.permute.xlu1 %2459  ;;  %v5632_v36 = vadd.f32 %v2474_v23, %v2158_v18 }
 0x64b   :  { %v5635_v35 = vadd.f32 %v2460_v10, %v5465_v39  ;;  %v6402_v39 = vlaneseq }
 0x64d   :  { %v2553_v23 = vand.u32 127, %v6402_v39  ;;  %v6410_v39 = vld [vmem:[#allocation57_spill] sm:$0xff] }
 0x64f   :  { %2650 = vperm.xlu2 %4101, %v6395_v61   ;;  %vm5651_vm2 = vcmp.eq.s32.totalorder %v4526_v15, %v2553_v23  ;;  %vm5668_vm3 = vcmp.eq.s32.totalorder %v4482_v60, %v2553_v23  ;;  %vm5707_vm5 = vcmp.eq.s32.totalorder %v4487_v55, %v2553_v23  ;;  %vm5714_vm6 = vcmp.eq.s32.totalorder %v6338_v54, %v2553_v23 }
 0x650   :  { %4102 = vset.pattern.permute.xlu1 %v6338_v54 }
 0x651   :  { %v2480_v41 = vpop.permute.xlu2 %2479 }
 0x652   :  { %v2466_v34 = vpop.permute.xlu1 %2465  ;;  %v5643_v33 = vadd.f32 %v2480_v41, %v2161_v14 }
 0x653   :  { %v5645_v18 = vadd.f32 %v2466_v34, %v2154_v24 }
 0x654   :  { %6401 = vst [vmem:[#allocation27_spill] sm:$0xff] %v5643_v33 }
 0x657   :  { %4103 = vset.pattern.permute.xlu2 %v4482_v60 }
 0x658   :  { %2656 = vperm.xlu1 %4102, %v6395_v61   ;;  %v6406_v61 = vld [vmem:[#allocation35_spill] sm:$0xff] }
 0x659   :  { %v2570_v1 = vpop.permute.xlu2 %2569  ;;  %v1363_v20 = vmul.f32 %v6406_v61, %v4511_v9 }
 0x65a   :  { %v2767_v29 = vsel %vm5651_vm2, %v2570_v1, 0.0  ;;  %v2472_v10 = vpop.permute.xlu1 %2471 }
 0x65b   :  { %v5658_v16 = vadd.f32 %v2767_v29, %v5525_v17  ;;  %v5661_v30 = vadd.f32 %v2472_v10, %v5496_v44  ;;  %v6409_v17 = vld [vmem:[#allocation61_spill] sm:$0xff]  ;;  %v2778_v44 = vsel %vm5668_vm3, %v5539_v7, 0.0 }
 0x65c   :  { %v1747_v41 = vadd.f32 %v6409_v17, %v1363_v20  ;;  %v2810_v34 = vadd.f32 %v2778_v44, %v5572_v6  ;;  %v6411_v29 = vld [vmem:[#allocation53_spill] sm:$0xff] }
 0x65d   :  { %v2519_v10 = vadd.f32 %v6411_v29, %v5401_v22  ;;  %v6413_v29 = vld [vmem:[#allocation16_spill] sm:$0xff] }
 0x65e   :  { %v2131_v1 = vadd.f32 %v6410_v39, %v1747_v41  ;;  %v2843_v7 = vrot.slane %v2810_v34, 4 }
 0x65f   :  { %2663 = vperm.xlu2 %4103, %v6405_v59  }
 0x660   :  { %4105 = vset.pattern.permute.xlu1 %v4487_v55 }
 0x662   :  { %v2478_v62 = vpop.permute.xlu1 %2477 }
 0x663   :  { %v5673_v24 = vadd.f32 %v2478_v62, %v5510_v28  ;;  %v2515_v28 = vadd.f32 %v5544_v48, %v2131_v1  ;;  %v6412_v48 = vld [vmem:[#allocation18_spill] sm:$0xff] }
 0x664   :  { %v1369_v1 = vmul.f32 %v4796_v52, %v6412_v48 }
 0x667   :  { %4106 = vset.pattern.permute.xlu2 %v6338_v54 }
 0x668   :  { %2675 = vperm.xlu1 %4105, %v6405_v59  }
 0x669   :  { %v2589_v61 = vpop.permute.xlu2 %2588 }
 0x66a   :  { %v2770_v20 = vsel %vm5668_vm3, %v2589_v61, 0.0  ;;  %v2564_v62 = vpop.permute.xlu1 %2563  ;;  %v6414_v61 = vld [vmem:[#allocation63_spill] sm:$0xff] }
 0x66b   :  { %v2802_v17 = vadd.f32 %v2770_v20, %v2519_v10  ;;  %v2766_v6 = vsel %vm5668_vm3, %v2564_v62, 0.0  ;;  %v1366_v10 = vmul.f32 %v6413_v29, %v4511_v9  ;;  %v1753_v20 = vadd.f32 %v6414_v61, %v1369_v1  ;;  %v6415_v62 = vld [vmem:[#allocation60_spill] sm:$0xff] }
 0x66c   :  { %v5690_v44 = vadd.f32 %v2766_v6, %v2515_v28  ;;  %v6416_v6 = vld [vmem:[#allocation62_spill] sm:$0xff] }
 0x66d   :  { %v2844_v41 = vsel %vm2831_vm4, %v2843_v7, %v2802_v17  ;;  %v2845_v39 = vrot.slane %v2802_v17, 4  ;;  %v1750_v28 = vadd.f32 %v6415_v62, %v1366_v10  ;;  %v2137_v33 = vadd.f32 %v6416_v6, %v1753_v20  ;;  %v6417_v7 = vld [vmem:[#allocation59_spill] sm:$0xff]  ;;  %v6418_v17 = vld [vmem:[#allocation68_spill] sm:$0xff]  ;;  %v6425_v62 = vld [vmem:[#allocation65_spill] sm:$0xff] }
 0x66f   :  { %v2846_v22 = vsel %vm2831_vm4, %v2810_v34, %v2845_v39  ;;  %2681 = vperm.xlu2 %4106, %v6405_v59   ;;  %v2134_v34 = vadd.f32 %v6417_v7, %v1750_v28  ;;  %v2521_v52 = vadd.f32 %v5542_v56, %v2137_v33  ;;  %v6424_v33 = vld [vmem:[#allocation66_spill] sm:$0xff] }
 0x670   :  { %4107 = vset.pattern.permute.xlu1 %v4482_v60 }
 0x671   :  { %v2518_v39 = vadd.f32 %v5534_v21, %v2134_v34  ;;  %v6423_v21 = vld [vmem:[#allocation20_spill] sm:$0xff] }
 0x672   :  { %v1372_v56 = vmul.f32 %v4814_v63, %v6423_v21  ;;  %v4264_v21 = vmov 1983009808  }
 0x674   :  { %v1756_v23 = vadd.f32 %v6424_v33, %v1372_v56  ;;  %v2836_v56 = vunpack.c.l.s4 %v4264_v21 }
 0x676   :  { %v2140_v28 = vadd.f32 %v6425_v62, %v1756_v23 }
 0x677   :  { %4108 = vset.pattern.permute.xlu2 %v4526_v15 }
 0x678   :  { %2688 = vperm.xlu1 %4107, %v6418_v17   ;;  %v2524_v6 = vadd.f32 %v5554_v12, %v2140_v28 }
 0x679   :  { %v2601_v9 = vpop.permute.xlu2 %2600 }
 0x67a   :  { %v2772_v1 = vsel %vm5707_vm5, %v2601_v9, 0.0  ;;  %v2582_v29 = vpop.permute.xlu1 %2581  ;;  %v2945_v9 = vrot.slane %v5658_v16, 4 }
 0x67b   :  { %v5720_v10 = vadd.f32 %v2772_v1, %v2521_v52  ;;  %v2769_v61 = vsel %vm5714_vm6, %v2582_v29, 0.0 }
 0x67c   :  { %v2801_v20 = vadd.f32 %v2769_v61, %v2518_v39 }
 0x67e   :  { %v3169_v28 = vrot.slane %v2801_v20, 4 }
 0x67f   :  { %2694 = vperm.xlu2 %4108, %v6418_v17  }
 0x680   :  { %4110 = vset.pattern.permute.xlu1 %v6338_v54 }
 0x687   :  { %4111 = vset.pattern.permute.xlu2 %v4482_v60 }
 0x688   :  { %2706 = vperm.xlu1 %4110, %v6418_v17   ;;  %v6426_v17 = vld [vmem:[#allocation50_spill] sm:$0xff] }
 0x689   :  { %v2620_v7 = vpop.permute.xlu2 %2619 }
 0x68a   :  { %v2775_v34 = vsel %vm5651_vm2, %v2620_v7, 0.0  ;;  %v2595_v52 = vpop.permute.xlu1 %2594 }
 0x68b   :  { %v2807_v39 = vadd.f32 %v2775_v34, %v2524_v6  ;;  %v2771_v63 = vsel %vm5651_vm2, %v2595_v52, 0.0  ;;  %v2833_v34 = vrot.slane %v5690_v44, 4 }
 0x68c   :  { %v5739_v1 = vadd.f32 %v2771_v63, %v5574_v25  ;;  %v5752_v25 = vunpack.c.0.s8 %v2836_v56 }
 0x68d   :  { %v2943_v29 = vrot.slane %v2807_v39, 4  ;;  %v5742_v61 = vsel %vm2831_vm4, %v2807_v39, %v2945_v9 }
 0x68e   :  { %v2850_v9 = vperm.slane %v2844_v41, %v5752_v25 }
 0x68f   :  { %v5746_v12 = vsel %vm2831_vm4, %v2943_v29, %v5658_v16  ;;  %2713 = vperm.xlu2 %4111, %v6426_v17   ;;  %v2854_v16 = vperm.slane %v2846_v22, %v5752_v25 }
 0x690   :  { %4112 = vset.pattern.permute.xlu1 %v4526_v15  ;;  %v2879_v41 = vrot.slane %v2850_v9, 4 }
 0x691   :  { %v2891_v22 = vrot.slane %v2854_v16, 4 }
 0x697   :  { %4113 = vset.pattern.permute.xlu2 %v4487_v55 }
 0x698   :  { %2719 = vperm.xlu1 %4112, %v6426_v17  }
 0x699   :  { %v2632_v33 = vpop.permute.xlu2 %2631 }
 0x69a   :  { %v2777_v23 = vsel %vm5714_vm6, %v2632_v33, 0.0  ;;  %v2614_v62 = vpop.permute.xlu1 %2613 }
 0x69b   :  { %v2809_v6 = vadd.f32 %v2777_v23, %v5599_v57  ;;  %v2774_v7 = vsel %vm5668_vm3, %v2614_v62, 0.0 }
 0x69c   :  { %v2806_v52 = vadd.f32 %v2774_v7, %v5588_v42 }
 0x69d   :  { %v3167_v39 = vrot.slane %v2809_v6, 4  ;;  %v5764_v63 = vsel %vm2831_vm4, %v2809_v6, %v3169_v28 }
 0x69e   :  { %v2830_v29 = vrot.slane %v2806_v52, 4  ;;  %v2834_v21 = vsel %vm2831_vm4, %v2806_v52, %v2833_v34  ;;  %v6427_v52 = vld [vmem:[#allocation55_spill] sm:$0xff] }
 0x69f   :  { %v5768_v56 = vsel %vm2831_vm4, %v3167_v39, %v2801_v20  ;;  %v2842_v57 = vperm.slane %v2834_v21, %v5752_v25  ;;  %2725 = vperm.xlu2 %4113, %v6426_v17   ;;  %v2525_v39 = vadd.f32 %v6427_v52, %v5434_v50 }
 0x6a0   :  { %v2832_v42 = vsel %vm2831_vm4, %v2830_v29, %v5690_v44  ;;  %4114 = vset.pattern.permute.xlu1 %v4482_v60  ;;  %v2733_v44 = vperm.slane %v4634_v53, 7  ;;  %v2768_v60 = vsel %vm5707_vm5, %v5602_v43, 0.0  ;;  %v3069_v29 = vrot.slane %v5720_v10, 4 }
 0x6a1   :  { %v2838_v33 = vperm.slane %v2832_v42, %v5752_v25  ;;  %v2893_v23 = vrot.slane %v2842_v57, 4  ;;  %v5777_v62 = vsel %vm2831_vm4, %v2891_v22, %v2842_v57  ;;  %v2800_v7 = vadd.f32 %v2768_v60, %v5558_v0 }
 0x6a2   :  { %v1376_v57 = vmul.f32 %v4823_v38, %v5550_v26 }
 0x6a3   :  { %v2881_v28 = vrot.slane %v2838_v33, 4  ;;  %v5780_v20 = vsel %vm2831_vm4, %v2879_v41, %v2838_v33  ;;  %v5783_v6 = vsel %vm2831_vm4, %v2854_v16, %v2893_v23  ;;  %v3057_v21 = vrot.slane %v2800_v7, 4 }
 0x6a5   :  { %v5786_v17 = vsel %vm2831_vm4, %v2850_v9, %v2881_v28 }
 0x6a7   :  { %4115 = vset.pattern.permute.xlu2 %v4526_v15 }
 0x6a8   :  { %2738 = vperm.xlu1 %4114, %v2733_v44  }
 0x6a9   :  { %v2651_v34 = vpop.permute.xlu2 %2650 }
 0x6aa   :  { %v2780_v16 = vsel %vm5707_vm5, %v2651_v34, 0.0  ;;  %v2626_v9 = vpop.permute.xlu1 %2625  ;;  %v6428_v34 = vld [vmem:[#allocation56_spill] sm:$0xff] }
 0x6ab   :  { %v2812_v53 = vadd.f32 %v2780_v16, %v5611_v19  ;;  %v2776_v43 = vsel %vm5707_vm5, %v2626_v9, 0.0  ;;  %v1760_v52 = vadd.f32 %v6428_v34, %v1376_v57  ;;  %v6429_v34 = vld [vmem:[#allocation13_spill] sm:$0xff] }
 0x6ac   :  { %v2808_v15 = vadd.f32 %v2776_v43, %v2525_v39 }
 0x6ad   :  { %v3067_v22 = vrot.slane %v2812_v53, 4  ;;  %v3070_v0 = vsel %vm2831_vm4, %v2812_v53, %v3069_v29  ;;  %v2607_v53 = vpop.permute.xlu0 %2606 }
 0x6ae   :  { %v3078_v50 = vperm.slane %v3070_v0, %v5752_v25  ;;  %v3055_v42 = vrot.slane %v2808_v15, 4  ;;  %v3058_v41 = vsel %vm2831_vm4, %v2808_v15, %v3057_v21  ;;  %v2954_v15 = vperm.slane %v5742_v61, %v5752_v25 }
 0x6af   :  { %v3068_v33 = vsel %vm2831_vm4, %v3067_v22, %v5720_v10  ;;  %v3066_v19 = vperm.slane %v3058_v41, %v5752_v25  ;;  %2744 = vperm.xlu2 %4115, %v2733_v44   ;;  %v2957_v0 = vrot.slane %v5739_v1, 4 }
 0x6b0   :  { %v3074_v23 = vperm.slane %v3068_v33, %v5752_v25  ;;  %v3115_v28 = vrot.slane %v3078_v50, 4  ;;  %v3056_v60 = vsel %vm2831_vm4, %v3055_v42, %v2800_v7  ;;  %4116 = vset.pattern.permute.xlu1 %v4487_v55  ;;  %v2144_v55 = vadd.f32 %v5447_v11, %v1760_v52  ;;  %v6430_v52 = vld [vmem:[#allocation54_spill] sm:$0xff] }
 0x6b1   :  { %v3062_v38 = vperm.slane %v3056_v60, %v5752_v25  ;;  %v3117_v26 = vrot.slane %v3066_v19, 4  ;;  %v3005_v42 = vrot.slane %v2954_v15, 4 }
 0x6b2   :  { %v3103_v39 = vrot.slane %v3074_v23, 4  ;;  %v5816_v16 = vsel %vm2831_vm4, %v3115_v28, %v3066_v19  ;;  %v2528_v43 = vadd.f32 %v5427_v32, %v2144_v55 }
 0x6b3   :  { %v3105_v10 = vrot.slane %v3062_v38, 4  ;;  %v5819_v9 = vsel %vm2831_vm4, %v3078_v50, %v3117_v26  ;;  %v2950_v50 = vperm.slane %v5746_v12, %v5752_v25 }
 0x6b4   :  { %v5822_v29 = vsel %vm2831_vm4, %v3103_v39, %v3062_v38  ;;  %v2522_v39 = vadd.f32 %v6430_v52, %v6429_v34 }
 0x6b5   :  { %v5825_v7 = vsel %vm2831_vm4, %v3074_v23, %v3105_v10  ;;  %v2993_v61 = vrot.slane %v2950_v50, 4  ;;  %v2732_v60 = vpop.permute.xlu0 %2731 }
 0x6b6   :  { %v2793_v10 = vsel %vm5714_vm6, %v2732_v60, 0.0 }
 0x6b7   :  { %4117 = vset.pattern.permute.xlu2 %v6338_v54  ;;  %v2825_v55 = vadd.f32 %v2793_v10, %v5632_v36 }
 0x6b8   :  { %2750 = vperm.xlu1 %4116, %v2733_v44  }
 0x6b9   :  { %v2664_v33 = vpop.permute.xlu2 %2663 }
 0x6ba   :  { %v2645_v21 = vpop.permute.xlu1 %2644 }
 0x6bb   :  { %v2779_v22 = vsel %vm5651_vm2, %v2645_v21, 0.0  ;;  %v2534_v21 = vadd.f32 %v5463_v5, %v5482_v37 }
 0x6bc   :  { %v2811_v57 = vadd.f32 %v2779_v22, %v2528_v43 }
 0x6be   :  { %v2955_v11 = vrot.slane %v2811_v57, 4  ;;  %v2958_v54 = vsel %vm2831_vm4, %v2811_v57, %v2957_v0  ;;  %v3191_v0 = vrot.slane %v2825_v55, 4  ;;  %v3178_v57 = vperm.slane %v5764_v63, %v5752_v25 }
 0x6bf   :  { %v2966_v41 = vperm.slane %v2958_v54, %v5752_v25  ;;  %2756 = vperm.xlu2 %4117, %v2733_v44   ;;  %v2773_v44 = vsel %vm5714_vm6, %v2607_v53, 0.0 }
 0x6c0   :  { %v2956_v32 = vsel %vm2831_vm4, %v2955_v11, %v5739_v1  ;;  %v2805_v43 = vadd.f32 %v2773_v44, %v2522_v39 }
 0x6c1   :  { %v2962_v19 = vperm.slane %v2956_v32, %v5752_v25  ;;  %v3003_v23 = vrot.slane %v2966_v41, 4  ;;  %v5843_v28 = vsel %vm2831_vm4, %v2966_v41, %v3005_v42  ;;  %v3174_v42 = vperm.slane %v5768_v56, %v5752_v25 }
 0x6c2   :  { %v3181_v54 = vrot.slane %v2805_v43, 4 }
 0x6c3   :  { %v2991_v12 = vrot.slane %v2962_v19, 4  ;;  %v5846_v38 = vsel %vm2831_vm4, %v2962_v19, %v2993_v61  ;;  %v5849_v26 = vsel %vm2831_vm4, %v3003_v23, %v2954_v15  ;;  %v3229_v61 = vrot.slane %v3178_v57, 4 }
 0x6c4   :  { %v3217_v60 = vrot.slane %v3174_v42, 4 }
 0x6c5   :  { %v5854_v1 = vsel %vm2831_vm4, %v2991_v12, %v2950_v50 }
 0x6c9   :  { %v2682_v15 = vpop.permute.xlu2 %2681 }
 0x6ca   :  { %v2785_v22 = vsel %vm5714_vm6, %v2682_v15, 0.0  ;;  %v2657_v53 = vpop.permute.xlu1 %2656 }
 0x6cb   :  { %v2817_v50 = vadd.f32 %v2785_v22, %v2534_v21  ;;  %v2781_v11 = vsel %vm5714_vm6, %v2657_v53, 0.0  ;;  %v1381_v53 = vmul.f32 %v4830_v31, %v5584_v47 }
 0x6cc   :  { %v2813_v36 = vadd.f32 %v2781_v11, %v5586_v8 }
 0x6cd   :  { %v5873_v5 = vsel %vm2831_vm4, %v3191_v0, %v2817_v50  ;;  %v3193_v37 = vrot.slane %v2817_v50, 4 }
 0x6ce   :  { %v3179_v41 = vrot.slane %v2813_v36, 4  ;;  %v3182_v32 = vsel %vm2831_vm4, %v2813_v36, %v3181_v54  ;;  %v6431_v54 = vld [vmem:[#allocation44_spill] sm:$0xff] }
 0x6cf   :  { %v5877_v63 = vsel %vm2831_vm4, %v2825_v55, %v3193_v37  ;;  %v3190_v19 = vperm.slane %v3182_v32, %v5752_v25  ;;  %v2782_v55 = vsel %vm5668_vm3, %v2664_v33, 0.0  ;;  %v1765_v33 = vadd.f32 %v6431_v54, %v1381_v53 }
 0x6d0   :  { %v3180_v23 = vsel %vm2831_vm4, %v3179_v41, %v2805_v43  ;;  %v2531_v43 = vadd.f32 %v5445_v58, %v5467_v45  ;;  %v6432_v45 = vld [vmem:[#allocation42_spill] sm:$0xff] }
 0x6d1   :  { %v3186_v8 = vperm.slane %v3180_v23, %v5752_v25  ;;  %v3227_v12 = vrot.slane %v3190_v19, 4  ;;  %v5883_v56 = vsel %vm2831_vm4, %v3190_v19, %v3229_v61 }
 0x6d2   :  { %v2814_v21 = vadd.f32 %v2782_v55, %v2531_v43 }
 0x6d3   :  { %v3215_v44 = vrot.slane %v3186_v8, 4  ;;  %v5886_v34 = vsel %vm2831_vm4, %v3227_v12, %v3178_v57  ;;  %v5889_v52 = vsel %vm2831_vm4, %v3186_v8, %v3217_v60 }
 0x6d4   :  { %v2857_v0 = vrot.slane %v2814_v21, 4 }
 0x6d5   :  { %v5892_v39 = vsel %vm2831_vm4, %v3215_v44, %v3174_v42  ;;  %v2149_v42 = vadd.f32 %v6432_v45, %v1765_v33  ;;  %v2783_v44 = vsel %vm5651_vm2, %v5570_v4, 0.0 }
 0x6d6   :  { %v2815_v43 = vadd.f32 %v2783_v44, %v5623_v2 }
 0x6d7   :  { %v2533_v31 = vadd.f32 %v5595_v27, %v2149_v42 }
 0x6d9   :  { %v2695_v10 = vpop.permute.xlu2 %2694 }
 0x6da   :  { %v2676_v58 = vpop.permute.xlu1 %2675  ;;  %v2787_v27 = vsel %vm5651_vm2, %v2695_v10, 0.0 }
 0x6db   :  { %v2784_v37 = vsel %vm5707_vm5, %v2676_v58, 0.0  ;;  %v2819_v55 = vadd.f32 %v2787_v27, %v5608_v13 }
 0x6dc   :  { %v2816_v47 = vadd.f32 %v2784_v37, %v2533_v31 }
 0x6de   :  { %v3081_v61 = vrot.slane %v2816_v47, 4 }
 0x6e9   :  { %v2714_v15 = vpop.permute.xlu2 %2713 }
 0x6ea   :  { %v2790_v22 = vsel %vm5668_vm3, %v2714_v15, 0.0 }
 0x6eb   :  { %v2822_v57 = vadd.f32 %v2790_v22, %v5620_v3  ;;  %v2689_v3 = vpop.permute.xlu1 %2688  ;;  %v4265_v22 = vmov 1934713408  }
 0x6ec   :  { %v2884_v53 = vunpack.c.l.s4 %v4265_v22 }
 0x6ed   :  { %v2855_v50 = vrot.slane %v2822_v57, 4  ;;  %v5904_v11 = vsel %vm2831_vm4, %v2822_v57, %v2857_v0  ;;  %v2981_v0 = vrot.slane %v2819_v55, 4 }
 0x6ee   :  { %v5939_v45 = vunpack.c.0.s8 %v2884_v53 }
 0x6ef   :  { %v5908_v36 = vsel %vm2831_vm4, %v2855_v50, %v2814_v21  ;;  %v2969_v50 = vrot.slane %v2815_v43, 4 }
 0x6f0   :  { %v3238_v14 = vperm.slane %v5883_v56, %v5939_v45 }
 0x6f9   :  { %v2726_v41 = vpop.permute.xlu2 %2725 }
 0x6fa   :  { %v2792_v32 = vsel %vm5707_vm5, %v2726_v41, 0.0  ;;  %v2707_v12 = vpop.permute.xlu1 %2706 }
 0x6fb   :  { %v2824_v19 = vadd.f32 %v2792_v32, %v5661_v30  ;;  %v2789_v44 = vsel %vm5714_vm6, %v2707_v12, 0.0 }
 0x6fd   :  { %v3079_v23 = vrot.slane %v2824_v19, 4  ;;  %v5918_v60 = vsel %vm2831_vm4, %v2824_v19, %v3081_v61  ;;  %v3002_v61 = vperm.slane %v5846_v38, %v5939_v45  ;;  %v5964_v38 = vperm.slane %v5780_v20, %v5939_v45 }
 0x6fe   :  { %v5980_v20 = vperm.slane %v5786_v17, %v5939_v45 }
 0x6ff   :  { %v5921_v8 = vsel %vm2831_vm4, %v3079_v23, %v2816_v47  ;;  %v3045_v22 = vrot.slane %v3002_v61, 4 }
 0x709   :  { %v2745_v30 = vpop.permute.xlu2 %2744 }
 0x70a   :  { %v2795_v21 = vsel %vm5651_vm2, %v2745_v30, 0.0  ;;  %v2720_v15 = vpop.permute.xlu1 %2719  ;;  %v2786_v30 = vsel %vm5668_vm3, %v2689_v3, 0.0  ;;  %v3198_v3 = vperm.slane %v5873_v5, %v5752_v25  ;;  %v6434_v5 = vld [vmem:[#allocation24_spill] sm:$0xff] }
 0x70b   :  { %v2827_v57 = vadd.f32 %v2795_v21, %v5673_v24  ;;  %v2791_v10 = vsel %vm5651_vm2, %v2720_v15, 0.0  ;;  %v5968_v21 = vperm.slane %v5783_v6, %v5939_v45  ;;  %v2818_v6 = vadd.f32 %v2786_v30, %v5635_v35 }
 0x70c   :  { %v2823_v4 = vadd.f32 %v2791_v10, %v5516_v40  ;;  %v3014_v40 = vperm.slane %v5843_v28, %v5939_v45  ;;  %v3202_v35 = vperm.slane %v5877_v63, %v5752_v25 }
 0x70d   :  { %v2979_v54 = vrot.slane %v2827_v57, 4  ;;  %v2982_v13 = vsel %vm2831_vm4, %v2827_v57, %v2981_v0  ;;  %v2821_v57 = vadd.f32 %v2789_v44, %v5645_v18  ;;  %v2869_v48 = vrot.slane %v2818_v6, 4 }
 0x70e   :  { %v2990_v2 = vperm.slane %v2982_v13, %v5752_v25  ;;  %v2967_v33 = vrot.slane %v2823_v4, 4  ;;  %v2970_v58 = vsel %vm2831_vm4, %v2823_v4, %v2969_v50  ;;  %v6433_v13 = vld [vmem:[#allocation25_spill] sm:$0xff] }
 0x70f   :  { %v2980_v42 = vsel %vm2831_vm4, %v2979_v54, %v2819_v55  ;;  %v2978_v24 = vperm.slane %v2970_v58, %v5752_v25  ;;  %v2537_v54 = vadd.f32 %v5480_v49, %v5498_v51  ;;  %v2788_v18 = vsel %vm5707_vm5, %v6433_v13, 0.0 }
 0x710   :  { %v2986_v46 = vperm.slane %v2980_v42, %v5752_v25  ;;  %v3027_v37 = vrot.slane %v2990_v2, 4  ;;  %v2968_v31 = vsel %vm2831_vm4, %v2967_v33, %v2815_v43  ;;  %v3053_v43 = vrot.slane %v3014_v40, 4 }
 0x711   :  { %v2974_v47 = vperm.slane %v2968_v31, %v5752_v25  ;;  %v3029_v41 = vrot.slane %v2978_v24, 4  ;;  %v2866_v51 = vperm.slane %v5904_v11, %v5752_v25  ;;  %v6436_v31 = vld [vmem:[#allocation19_spill] sm:$0xff] }
 0x712   :  { %v3015_v32 = vrot.slane %v2986_v46, 4  ;;  %v5951_v19 = vsel %vm2831_vm4, %v3027_v37, %v2978_v24  ;;  %v2929_v24 = vrot.slane %v5964_v38, 4  ;;  %v3205_v37 = vrot.slane %v2821_v57, 4 }
 0x713   :  { %v3017_v23 = vrot.slane %v2974_v47, 4  ;;  %v3030_v27 = vsel %vm2831_vm4, %v2990_v2, %v3029_v41  ;;  %v6435_v2 = vld [vmem:[#allocation17_spill] sm:$0xff]  ;;  %v2917_v30 = vrot.slane %v2866_v51, 4 }
 0x714   :  { %v5957_v55 = vsel %vm2831_vm4, %v3015_v32, %v2974_v47  ;;  %v3038_v28 = vperm.slane %v3030_v27, %v5939_v45  ;;  %v2543_v17 = vadd.f32 %v6435_v2, %v6434_v5  ;;  %v3241_v47 = vrot.slane %v3198_v3, 4 }
 0x715   :  { %v3018_v15 = vsel %vm2831_vm4, %v2986_v46, %v3017_v23  ;;  %v2941_v46 = vrot.slane %v5968_v21, 4  ;;  %v2933_v32 = vrot.slane %v5980_v20, 4  ;;  %v3253_v23 = vrot.slane %v3202_v35, 4 }
 0x716   :  { %v3026_v12 = vperm.slane %v3018_v15, %v5939_v45  ;;  %v3051_v53 = vrot.slane %v3038_v28, 4  ;;  %v5973_v0 = vsel %vm2831_vm4, %v3038_v28, %v3053_v43  ;;  %v2862_v27 = vperm.slane %v5908_v36, %v5752_v25 }
 0x718   :  { %v5984_v10 = vsel %vm2831_vm4, %v3026_v12, %v3045_v22  ;;  %v3043_v50 = vrot.slane %v3026_v12, 4  ;;  %v5987_v4 = vsel %vm2831_vm4, %v3051_v53, %v3014_v40  ;;  %v3226_v22 = vperm.slane %v5889_v52, %v5939_v45 }
 0x719   :  { %v2757_v33 = vpop.permute.xlu2 %2756  ;;  %v2905_v5 = vrot.slane %v2862_v27, 4 }
 0x71a   :  { %v2797_v58 = vsel %vm5714_vm6, %v2757_v33, 0.0  ;;  %v2739_v42 = vpop.permute.xlu1 %2738  ;;  %v6003_v49 = vsel %vm2831_vm4, %v3043_v50, %v3002_v61 }
 0x71b   :  { %v2829_v40 = vadd.f32 %v2797_v58, %v6436_v31  ;;  %v2794_v63 = vsel %vm5668_vm3, %v2739_v42, 0.0 }
 0x71c   :  { %v2826_v41 = vadd.f32 %v2794_v63, %v2543_v17 }
 0x71d   :  { %v3203_v61 = vrot.slane %v2829_v40, 4  ;;  %v3206_v44 = vsel %vm2831_vm4, %v2829_v40, %v3205_v37 }
 0x71e   :  { %v3214_v11 = vperm.slane %v3206_v44, %v5752_v25  ;;  %v2867_v28 = vrot.slane %v2826_v41, 4  ;;  %v2870_v43 = vsel %vm2831_vm4, %v2826_v41, %v2869_v48  ;;  %v3277_v41 = vrot.slane %v3238_v14, 4 }
 0x71f   :  { %v3204_v15 = vsel %vm2831_vm4, %v3203_v61, %v2821_v57  ;;  %v2878_v12 = vperm.slane %v2870_v43, %v5752_v25  ;;  %v3269_v61 = vrot.slane %v3226_v22, 4 }
 0x720   :  { %v3210_v36 = vperm.slane %v3204_v15, %v5752_v25  ;;  %v3251_v53 = vrot.slane %v3214_v11, 4  ;;  %v2868_v50 = vsel %vm2831_vm4, %v2867_v28, %v2818_v6  ;;  %v3254_v13 = vsel %vm2831_vm4, %v3214_v11, %v3253_v23 }
 0x721   :  { %v2874_v2 = vperm.slane %v2868_v50, %v5752_v25  ;;  %v2915_v17 = vrot.slane %v2878_v12, 4  ;;  %v2918_v56 = vsel %vm2831_vm4, %v2878_v12, %v2917_v30  ;;  %v3262_v31 = vperm.slane %v3254_v13, %v5939_v45 }
 0x722   :  { %v3239_v33 = vrot.slane %v3210_v36, 4  ;;  %v2926_v57 = vperm.slane %v2918_v56, %v5939_v45  ;;  %v6029_v58 = vsel %vm2831_vm4, %v3251_v53, %v3202_v35  ;;  %v3242_v52 = vsel %vm2831_vm4, %v3210_v36, %v3241_v47  ;;  %v6437_v53 = vld [vmem:[#allocation27_spill] sm:$0xff] }
 0x723   :  { %v2903_v42 = vrot.slane %v2874_v2, 4  ;;  %v2906_v37 = vsel %vm2831_vm4, %v2874_v2, %v2905_v5  ;;  %v2916_v6 = vsel %vm2831_vm4, %v2915_v17, %v2866_v51  ;;  %v3250_v47 = vperm.slane %v3242_v52, %v5939_v45 }
 0x724   :  { %v2914_v40 = vperm.slane %v2906_v37, %v5939_v45  ;;  %v2942_v63 = vsel %vm2831_vm4, %v2926_v57, %v2941_v46  ;;  %v2939_v48 = vrot.slane %v2926_v57, 4  ;;  %v6039_v35 = vsel %vm2831_vm4, %v3239_v33, %v3198_v3 }
 0x725   :  { %v2904_v23 = vsel %vm2831_vm4, %v2903_v42, %v2862_v27  ;;  %v2820_v46 = vadd.f32 %v2788_v18, %v2537_v54  ;;  %v3267_v43 = vrot.slane %v3250_v47, 4  ;;  %v3275_v27 = vrot.slane %v3262_v31, 4 }
 0x726   :  { %v2934_v44 = vsel %vm2831_vm4, %v2914_v40, %v2933_v32  ;;  %v2931_v11 = vrot.slane %v2914_v40, 4  ;;  %v6044_v51 = vperm.slane %v2904_v23, %v5939_v45  ;;  %v2940_v28 = vsel %vm2831_vm4, %v2939_v48, %v5968_v21 }
 0x727   :  { %3288 = vrot.lane.b32.xlu2 %v2934_v44, %s4261_s10  ;;  %v6054_v32 = vsel %vm2831_vm4, %v3262_v31, %v3277_v41  ;;  %v6057_v15 = vsel %vm2831_vm4, %v3250_v47, %v3269_v61  ;;  %v6062_v21 = vsel %vm2831_vm4, %v3267_v43, %v3226_v22  ;;  %v6065_v54 = vsel %vm2831_vm4, %v3275_v27, %v3238_v14 }
 0x728   :  { %v2932_v3 = vsel %vm2831_vm4, %v2931_v11, %v5980_v20  ;;  %v2930_v30 = vsel %vm2831_vm4, %v6044_v51, %v2929_v24  ;;  %v6069_v18 = vperm.slane %v5777_v62, %v5939_v45  ;;  %v3090_v24 = vperm.slane %v5918_v60, %v5752_v25 }
 0x729   :  { %3284 = vrot.lane.b32.xlu1 %v2932_v3, %s4262_s12  ;;  %3280 = vrot.lane.b32.xlu0 %v2930_v30, %s4263_s13  ;;  %v3093_v36 = vrot.slane %v2820_v46, 4  ;;  %v6077_v22 = vperm.slane %v2916_v6, %v5939_v45  ;;  %v3086_v14 = vperm.slane %v5921_v8, %v5752_v25  ;;  %v3126_v60 = vperm.slane %v5819_v9, %v5939_v45 }
 0x72a   :  { %v2751_v20 = vpop.permute.xlu1 %2750  ;;  %v2937_v62 = vrot.slane %v6069_v18, 4  ;;  %v3141_v2 = vrot.slane %v3090_v24, 4  ;;  %v3114_v8 = vperm.slane %v5825_v7, %v5939_v45  ;;  %v6098_v42 = vperm.slane %v5854_v1, %v5939_v45 }
 0x72b   :  { %v2796_v12 = vsel %vm5707_vm5, %v2751_v20, 0.0  ;;  %v3129_v33 = vrot.slane %v3086_v14, 4  ;;  %v3165_v6 = vrot.slane %v3126_v60, 4  ;;  %v6134_v27 = vperm.slane %v5822_v29, %v5939_v45 }
 0x72c   :  { %v2828_v50 = vadd.f32 %v2796_v12, %v6437_v53  ;;  %v2938_v56 = vsel %vm2831_vm4, %v6077_v22, %v2937_v62  ;;  %v3157_v23 = vrot.slane %v3114_v8, 4  ;;  %v3041_v47 = vrot.slane %v6098_v42, 4 }
 0x72d   :  { %v6139_v3 = vperm.slane %v5951_v19, %v5939_v45  ;;  %v6157_v19 = vperm.slane %v5886_v34, %v5939_v45  ;;  %v6161_v12 = vperm.slane %v5892_v39, %v5939_v45  ;;  %v6169_v53 = vperm.slane %v6039_v35, %v5939_v45 }
 0x72e   :  { %v3091_v13 = vrot.slane %v2828_v50, 4  ;;  %v3094_v5 = vsel %vm2831_vm4, %v2828_v50, %v3093_v36  ;;  %v6165_v36 = vperm.slane %v6029_v58, %v5939_v45  ;;  %v2927_v58 = vrot.slane %v6044_v51, 4 }
 0x72f   :  { %v3102_v59 = vperm.slane %v3094_v5, %v5752_v25  ;;  %3300 = vrot.lane.b32.xlu2 %v2942_v63, %s4261_s10  ;;  %v3273_v50 = vrot.slane %v6157_v19, 4  ;;  %v2935_v5 = vrot.slane %v6077_v22, 4 }
 0x730   :  { %v3092_v17 = vsel %vm2831_vm4, %v3091_v13, %v2820_v46 }
 0x731   :  { %v3098_v57 = vperm.slane %v3092_v17, %v5752_v25  ;;  %v3139_v52 = vrot.slane %v3102_v59, 4  ;;  %3296 = vrot.lane.b32.xlu1 %v2940_v28, %s4262_s12  ;;  %3292 = vrot.lane.b32.xlu0 %v2938_v56, %s4263_s13  ;;  %v3142_v9 = vsel %vm2831_vm4, %v3102_v59, %v3141_v2  ;;  %v6105_v25 = vperm.slane %v5957_v55, %v5939_v45 }
 0x732   :  { %v3150_v37 = vperm.slane %v3142_v9, %v5939_v45  ;;  %v6119_v28 = vperm.slane %v5816_v16, %v5939_v45  ;;  %v3274_v34 = vsel %vm2831_vm4, %v6165_v36, %v3273_v50  ;;  %v2936_v51 = vsel %vm2831_vm4, %v2935_v5, %v6069_v18 }
 0x733   :  { %v3127_v31 = vrot.slane %v3098_v57, 4  ;;  %v3140_v7 = vsel %vm2831_vm4, %v3139_v52, %v3090_v24  ;;  %v3130_v40 = vsel %vm2831_vm4, %v3098_v57, %v3129_v33  ;;  %v3042_v55 = vsel %vm2831_vm4, %v6105_v25, %v3041_v47 }
 0x734   :  { %v3163_v63 = vrot.slane %v3150_v37, 4  ;;  %v3138_v48 = vperm.slane %v3130_v40, %v5939_v45  ;;  %v3166_v41 = vsel %vm2831_vm4, %v3150_v37, %v3165_v6  ;;  %v6126_v43 = vperm.slane %v3140_v7, %v5939_v45 }
 0x735   :  { %v3128_v1 = vsel %vm2831_vm4, %v3127_v31, %v3086_v14  ;;  %v3161_v16 = vrot.slane %v6119_v28, 4  ;;  %v3265_v14 = vrot.slane %v6161_v12, 4  ;;  %v3039_v56 = vrot.slane %v6105_v25, 4 }
 0x736   :  { %v3164_v61 = vsel %vm2831_vm4, %v3163_v63, %v3126_v60  ;;  %v3155_v44 = vrot.slane %v3138_v48, 4  ;;  %v3158_v11 = vsel %vm2831_vm4, %v3138_v48, %v3157_v23 }
 0x737   :  { %3312 = vrot.lane.b32.xlu2 %v5984_v10, %s4261_s10  ;;  %v6130_v10 = vperm.slane %v5849_v26, %v5939_v45  ;;  %v3162_v30 = vsel %vm2831_vm4, %v6126_v43, %v3161_v16  ;;  %v3153_v26 = vrot.slane %v6134_v27, 4  ;;  %v3266_v39 = vsel %vm2831_vm4, %v6169_v53, %v3265_v14 }
 0x738   :  { %v3156_v46 = vsel %vm2831_vm4, %v3155_v44, %v3114_v8  ;;  %v3040_v33 = vsel %vm2831_vm4, %v3039_v56, %v6098_v42  ;;  %v3271_v44 = vrot.slane %v6165_v36, 4  ;;  %v3263_v16 = vrot.slane %v6169_v53, 4 }
 0x739   :  { %3308 = vrot.lane.b32.xlu1 %v6003_v49, %s4262_s12  ;;  %3304 = vrot.lane.b32.xlu0 %v3042_v55, %s4263_s13  ;;  %v6142_v49 = vperm.slane %v3128_v1, %v5939_v45  ;;  %v3049_v20 = vrot.slane %v6130_v10, 4 }
 0x73b   :  { %v3050_v29 = vsel %vm2831_vm4, %v6139_v3, %v3049_v20  ;;  %v3154_v24 = vsel %vm2831_vm4, %v6142_v49, %v3153_v26  ;;  %v3151_v25 = vrot.slane %v6142_v49, 4 }
 0x73d   :  { %v3152_v42 = vsel %vm2831_vm4, %v3151_v25, %v6134_v27 }
 0x73f   :  { %3340 = vrot.lane.b32.xlu2 %v3162_v30, %s4263_s13 }
 0x741   :  { %3316 = vrot.lane.b32.xlu0 %v3050_v29, %s4263_s13  ;;  %3328 = vrot.lane.b32.xlu1 %v3154_v24, %s4263_s13 }
 0x747   :  { %3320 = vrot.lane.b32.xlu2 %v5987_v4, %s4262_s12 }
 0x749   :  { %3364 = vrot.lane.b32.xlu1 %v3274_v34, %s4263_s13  ;;  %3352 = vrot.lane.b32.xlu0 %v3266_v39, %s4263_s13 }
 0x74f   :  { %3356 = vrot.lane.b32.xlu2 %v6062_v21, %s4262_s12 }
 0x751   :  { %3344 = vrot.lane.b32.xlu1 %v3164_v61, %s4262_s12  ;;  %3332 = vrot.lane.b32.xlu0 %v3156_v46, %s4262_s12  ;;  %v3272_v46 = vsel %vm2831_vm4, %v3271_v44, %v6157_v19  ;;  %v3264_v19 = vsel %vm2831_vm4, %v3263_v16, %v6161_v12 }
 0x757   :  { %3336 = vrot.lane.b32.xlu2 %v3158_v11, %s4261_s10 }
 0x759   :  { %3324 = vrot.lane.b32.xlu1 %v5973_v0, %s4261_s10  ;;  %3368 = vrot.lane.b32.xlu0 %v6065_v54, %s4262_s12  ;;  %v2928_v0 = vsel %vm2831_vm4, %v2927_v58, %v5964_v38 }
 0x75f   :  { %3372 = vrot.lane.b32.xlu2 %v6054_v32, %s4261_s10 }
 0x761   :  { %3360 = vrot.lane.b32.xlu1 %v6057_v15, %s4261_s10  ;;  %3348 = vrot.lane.b32.xlu0 %v3166_v41, %s4261_s10  ;;  %v3047_v41 = vrot.slane %v6139_v3, 4 }
 0x763   :  { %v3048_v11 = vsel %vm2831_vm4, %v3047_v41, %v6130_v10  ;;  %v3159_v10 = vrot.slane %v6126_v43, 4 }
 0x765   :  { %v3160_v53 = vsel %vm2831_vm4, %v3159_v10, %v6119_v28 }
 0x781   :  { %v3289_v45 = vpop.permute.xlu2 %3288 }
 0x789   :  { %v3301_v4 = vpop.permute.xlu2 %3300 }
 0x791   :  { %v3313_v35 = vpop.permute.xlu2 %3312 }
 0x799   :  { %v3341_v2 = vpop.permute.xlu2 %3340 }
 0x79a   :  { %v3392_v43 = vsel %vm147_vm0, %v3160_v53, %v3341_v2 }
 0x79b   :  { %v3285_v21 = vpop.permute.xlu1 %3284  ;;  %v3281_v54 = vpop.permute.xlu0 %3280 }
 0x79c   :  { %v3375_v13 = vsel %vm147_vm0, %v2928_v0, %v3281_v54 }
 0x79d   :  { %v3377_v32 = vsel %vm3376_vm7, %v3375_v13, %v3285_v21 }
 0x79e   :  { %v3379_v15 = vsel %vm3378_vm8, %v3377_v32, %v3289_v45 }
 0x79f   :  { %3401 = vst [vmem:[#allocation8] sm:$0xff] %v3379_v15 }
 0x7a1   :  { %v3321_v52 = vpop.permute.xlu2 %3320 }
 0x7a3   :  { %v3297_v62 = vpop.permute.xlu1 %3296  ;;  %v3293_v60 = vpop.permute.xlu0 %3292 }
 0x7a4   :  { %v3380_v59 = vsel %vm147_vm0, %v2936_v51, %v3293_v60 }
 0x7a5   :  { %v3381_v38 = vsel %vm3376_vm7, %v3380_v59, %v3297_v62 }
 0x7a6   :  { %v3382_v17 = vsel %vm3378_vm8, %v3381_v38, %v3301_v4 }
 0x7a7   :  { %3402 = vst [vmem:[#allocation8 + $0x8] sm:$0xff] %v3382_v17 }
 0x7a9   :  { %v3357_v31 = vpop.permute.xlu2 %3356 }
 0x7ab   :  { %v3309_v8 = vpop.permute.xlu1 %3308  ;;  %v3305_v22 = vpop.permute.xlu0 %3304 }
 0x7ac   :  { %v3383_v57 = vsel %vm147_vm0, %v3040_v33, %v3305_v22 }
 0x7ad   :  { %v3384_v18 = vsel %vm3376_vm7, %v3383_v57, %v3309_v8 }
 0x7ae   :  { %v3385_v9 = vsel %vm3378_vm8, %v3384_v18, %v3313_v35 }
 0x7af   :  { %3403 = vst [vmem:[#allocation8 + $0x10] sm:$0xff] %v3385_v9 }
 0x7b1   :  { %v3337_v63 = vpop.permute.xlu2 %3336 }
 0x7b3   :  { %v3329_v37 = vpop.permute.xlu1 %3328  ;;  %v3317_v6 = vpop.permute.xlu0 %3316 }
 0x7b4   :  { %v3389_v48 = vsel %vm147_vm0, %v3152_v42, %v3329_v37  ;;  %v3386_v55 = vsel %vm147_vm0, %v3048_v11, %v3317_v6 }
 0x7b5   :  { %v3387_v49 = vsel %vm3376_vm7, %v3386_v55, %v3321_v52 }
 0x7b9   :  { %v3373_v20 = vpop.permute.xlu2 %3372 }
 0x7bb   :  { %v3365_v7 = vpop.permute.xlu1 %3364  ;;  %v3353_v40 = vpop.permute.xlu0 %3352 }
 0x7bc   :  { %v3398_v27 = vsel %vm147_vm0, %v3272_v46, %v3365_v7  ;;  %v3395_v36 = vsel %vm147_vm0, %v3264_v19, %v3353_v40 }
 0x7bd   :  { %v3396_v34 = vsel %vm3376_vm7, %v3395_v36, %v3357_v31 }
 0x7c3   :  { %v3345_v1 = vpop.permute.xlu1 %3344  ;;  %v3333_v23 = vpop.permute.xlu0 %3332 }
 0x7c4   :  { %v3390_v47 = vsel %vm3376_vm7, %v3389_v48, %v3333_v23  ;;  %v3393_v50 = vsel %vm3376_vm7, %v3392_v43, %v3345_v1 }
 0x7c5   :  { %v3391_v61 = vsel %vm3378_vm8, %v3390_v47, %v3337_v63 }
 0x7c6   :  { %3405 = vst [vmem:[#allocation8 + $0x20] sm:$0xff] %v3391_v61 }
 0x7cb   :  { %v3325_v3 = vpop.permute.xlu1 %3324  ;;  %v3369_v30 = vpop.permute.xlu0 %3368 }
 0x7cc   :  { %v3388_v26 = vsel %vm3378_vm8, %v3387_v49, %v3325_v3  ;;  %v3399_v29 = vsel %vm3376_vm7, %v3398_v27, %v3369_v30 }
 0x7cd   :  { %3404 = vst [vmem:[#allocation8 + $0x18] sm:$0xff] %v3388_v26  ;;  %v3400_v24 = vsel %vm3378_vm8, %v3399_v29, %v3373_v20 }
 0x7ce   :  { %3408 = vst [vmem:[#allocation8 + $0x38] sm:$0xff] %v3400_v24 }
 0x7d3   :  { %v3361_v14 = vpop.permute.xlu1 %3360  ;;  %v3349_v39 = vpop.permute.xlu0 %3348 }
 0x7d4   :  { %v3397_v12 = vsel %vm3378_vm8, %v3396_v34, %v3361_v14  ;;  %v3394_v45 = vsel %vm3378_vm8, %v3393_v50, %v3349_v39 }
 0x7d5   :  { %3407 = vst [vmem:[#allocation8 + $0x30] sm:$0xff] %v3397_v12 }
 0x7d6   :  { %3406 = vst [vmem:[#allocation8 + $0x28] sm:$0xff] %v3394_v45 }
 0x7d7   :  { %3419 = dma.vmem_to_hbm [thread:$0]  %s3415_s15, 1024, %s3417_s0, [#allocation4]  }
 0x7d8   :  { %4252 = dma.done.wait [#allocation4], 1024  }
 0x7d9   :  { %4253 = vsyncadd [#allocation4], 4294966272 }
 0x7da   :  { %3424 = vsyncpa [#allocation3], 1 }
 0x7db   :  { %3425 = vsyncpa [#allocation6], 1 }
 0x7dc   :  { %3426 = vsyncpa [#allocation4], 1 }

</bundles_post_ra>
